<compile_context>
chip_gen: v5e
topology: v5e:2x2
jax: 0.10.0
libtpu: 0.0.40
codegen_flags: <defaults>
</compile_context>

<pallas_src>
import jax
import jax.numpy as jnp
from jax.experimental import pallas as pl
from jax.experimental.pallas import tpu as pltpu


def _lstm_linear_kernel(
    x_ref,        # (S*B, Ep)  time-major flattened input, zero-padded on E
    wih_ref,      # (Ep, 4H)   input->gates weight (transposed vs torch, padded)
    whh_ref,      # (H, 4H)    hidden->gates weight (transposed vs torch)
    b_ref,        # (1, 4H)    b_ih + b_hh
    h0_ref,       # (B, H)     initial hidden state
    c0_ref,       # (B, H)     initial cell state
    wlin_ref,     # (H, V)     linear weight (transposed vs torch)
    blin_ref,     # (1, V)     linear bias
    logits_ref,   # (S*B, V)   output logits, time-major flattened
    h_out_ref,    # (B, H)     final hidden state
    c_out_ref,    # (B, H)     final cell state
    hseq_scr,     # VMEM (S*B, H) hidden states for all timesteps
):
    B, H = h0_ref.shape
    SB = x_ref.shape[0]
    S = SB // B

    whh = whh_ref[...]

    # Hoisted, time-independent input projection: one big MXU matmul
    # (M = S*B instead of M = B per step) off the serial h-dependency chain.
    gates_x = (
        jnp.dot(x_ref[...], wih_ref[...], preferred_element_type=jnp.float32)
        + b_ref[...]
    )

    h = h0_ref[...]
    c = c0_ref[...]

    # Fully-unrolled recurrence (S is static at trace time).
    # PyTorch LSTM gate order: i, f, g, o.
    for t in range(S):
        gates = gates_x[t * B:(t + 1) * B, :] + jnp.dot(
            h, whh, preferred_element_type=jnp.float32)
        i_g = jax.nn.sigmoid(gates[:, 0 * H:1 * H])
        f_g = jax.nn.sigmoid(gates[:, 1 * H:2 * H])
        g_g = jnp.tanh(gates[:, 2 * H:3 * H])
        o_g = jax.nn.sigmoid(gates[:, 3 * H:4 * H])
        c = f_g * c + i_g * g_g
        h = o_g * jnp.tanh(c)
        hseq_scr[t * B:(t + 1) * B, :] = h

    # Deferred Linear head: one lane-dense (S*B, H) x (H, V) matmul epilogue.
    logits_ref[...] = (
        jnp.dot(hseq_scr[...], wlin_ref[...],
                preferred_element_type=jnp.float32)
        + blin_ref[...]
    )
    h_out_ref[...] = h
    c_out_ref[...] = c


@jax.jit
def gmodel_forward(x, params, h0, c0):
    """x: (batch, seq, embedding_dim) — batch_first, like the PyTorch module.

    Returns (logits (batch, seq, vocab), (h_n (1, batch, H), c_n (1, batch, H))).
    """
    wih_t, whh_t, bias, wlin_t, blin = params
    B, S, E = x.shape
    Ep = wih_t.shape[0]          # padded embedding dim (multiple of 128)
    H = whh_t.shape[0]
    V = wlin_t.shape[1]

    # Time-major, flattened; pad the contraction dim to match the padded weight.
    x_flat = jnp.transpose(x, (1, 0, 2)).reshape(S * B, E)
    if Ep > E:
        x_flat = jnp.pad(x_flat, ((0, 0), (0, Ep - E)))

    vmem_spec = pl.BlockSpec(memory_space=pltpu.MemorySpace.VMEM)

    logits_flat, h_n, c_n = pl.pallas_call(
        _lstm_linear_kernel,
        out_shape=(
            jax.ShapeDtypeStruct((S * B, V), jnp.float32),
            jax.ShapeDtypeStruct((B, H), jnp.float32),
            jax.ShapeDtypeStruct((B, H), jnp.float32),
        ),
        in_specs=[vmem_spec] * 8,
        out_specs=(vmem_spec, vmem_spec, vmem_spec),
        scratch_shapes=[pltpu.VMEM((S * B, H), jnp.float32)],
    )(x_flat, wih_t, whh_t, bias, h0, c0, wlin_t, blin)

    logits = jnp.transpose(logits_flat.reshape(S, B, V), (1, 0, 2))
    return logits, (h_n[None], c_n[None])


def init_gmodel_params(key, vocab_size, hidden_size=128, embedding_dim=300,
                       lane_multiple=128):
    """Deterministic init mimicking PyTorch uniform(-1/sqrt(H), 1/sqrt(H)).

    W_ih is pre-transposed and zero-padded on the embedding (contraction) dim
    up to a multiple of 128 for clean MXU feeds; padding is numerically inert.
    """
    H, E, V = hidden_size, embedding_dim, vocab_size
    k = 1.0 / jnp.sqrt(jnp.float32(H))
    keys = jax.random.split(key, 6)
    w_ih = jax.random.uniform(keys[0], (4 * H, E), jnp.float32, -k, k)   # torch layout
    w_hh = jax.random.uniform(keys[1], (4 * H, H), jnp.float32, -k, k)
    b_ih = jax.random.uniform(keys[2], (4 * H,), jnp.float32, -k, k)
    b_hh = jax.random.uniform(keys[3], (4 * H,), jnp.float32, -k, k)
    w_lin = jax.random.uniform(keys[4], (V, H), jnp.float32, -k, k)
    b_lin = jax.random.uniform(keys[5], (V,), jnp.float32, -k, k)

    Ep = ((E + lane_multiple - 1) // lane_multiple) * lane_multiple
    wih_t = jnp.zeros((Ep, 4 * H), jnp.float32).at[:E, :].set(w_ih.T)

    return (
        wih_t,                               # (Ep, 4H)
        w_hh.T,                              # (H, 4H)
        (b_ih + b_hh).reshape(1, 4 * H),     # (1, 4H)
        w_lin.T,                             # (H, V)
        b_lin.reshape(1, V),                 # (1, V)
    )


def _reference_forward(x, params, h0, c0):
    """Pure-JAX reference (lax.scan) matching torch.nn.LSTM + Linear semantics."""
    wih_t, whh_t, bias, wlin_t, blin = params
    H = whh_t.shape[0]
    Ep = wih_t.shape[0]
    B, S, E = x.shape

    x_tbe = jnp.transpose(x, (1, 0, 2))
    if Ep > E:
        x_tbe = jnp.pad(x_tbe, ((0, 0), (0, 0), (0, Ep - E)))

    def step(carry, x_t):
        h, c = carry
        gates = x_t @ wih_t + h @ whh_t + bias
        i = jax.nn.sigmoid(gates[:, 0 * H:1 * H])
        f = jax.nn.sigmoid(gates[:, 1 * H:2 * H])
        g = jnp.tanh(gates[:, 2 * H:3 * H])
        o = jax.nn.sigmoid(gates[:, 3 * H:4 * H])
        c_new = f * c + i * g
        h_new = o * jnp.tanh(c_new)
        return (h_new, c_new), h_new @ wlin_t + blin

    (h_n, c_n), logits_sbv = jax.lax.scan(step, (h0, c0), x_tbe)
    return jnp.transpose(logits_sbv, (1, 0, 2)), (h_n[None], c_n[None])


if __name__ == "__main__":
    # embedding_dim is fixed at 300 by GModel.__init__; hidden_size default 128 (D=1).
    BATCH, SEQ, EMBED, HIDDEN, VOCAB = 2, 8, 300, 128, 32

    key = jax.random.PRNGKey(0)
    k_param, k_x = jax.random.split(key)

    params = init_gmodel_params(k_param, vocab_size=VOCAB,
                                hidden_size=HIDDEN, embedding_dim=EMBED)

    x = jax.random.normal(k_x, (BATCH, SEQ, EMBED), jnp.float32)
    # prev_states=None in the PyTorch module -> zero initial hidden/cell state.
    h0 = jnp.zeros((BATCH, HIDDEN), jnp.float32)
    c0 = jnp.zeros((BATCH, HIDDEN), jnp.float32)

    logits, (h_n, c_n) = gmodel_forward(x, params, h0, c0)
    jax.block_until_ready((logits, h_n, c_n))

    # Numerical sanity check against a pure-JAX reference.
    ref_logits, (ref_h, ref_c) = _reference_forward(x, params, h0, c0)
    assert logits.shape == (BATCH, SEQ, VOCAB)
    assert h_n.shape == (1, BATCH, HIDDEN) and c_n.shape == (1, BATCH, HIDDEN)
    assert jnp.allclose(logits, ref_logits, atol=1e-4, rtol=1e-4)
    assert jnp.allclose(h_n, ref_h, atol=1e-4, rtol=1e-4)
    assert jnp.allclose(c_n, ref_c, atol=1e-4, rtol=1e-4)

    print("KERNEL_OK")
</pallas_src>

<mosaic_0001>
module attributes {stable_mosaic.version = 11 : i64} {
  func.func @_lstm_linear_kernel(%arg0: memref<16x384xf32, #tpu.memory_space<vmem>>, %arg1: memref<384x512xf32, #tpu.memory_space<vmem>>, %arg2: memref<128x512xf32, #tpu.memory_space<vmem>>, %arg3: memref<1x512xf32, #tpu.memory_space<vmem>>, %arg4: memref<2x128xf32, #tpu.memory_space<vmem>>, %arg5: memref<2x128xf32, #tpu.memory_space<vmem>>, %arg6: memref<128x32xf32, #tpu.memory_space<vmem>>, %arg7: memref<1x32xf32, #tpu.memory_space<vmem>>, %arg8: memref<16x32xf32, #tpu.memory_space<vmem>>, %arg9: memref<2x128xf32, #tpu.memory_space<vmem>>, %arg10: memref<2x128xf32, #tpu.memory_space<vmem>>, %arg11: memref<16x128xf32, #tpu.memory_space<vmem>>) attributes {dimension_semantics = [], scalar_prefetch = 0 : i64, scratch_operands = 1 : i64, tpu.core_type = #tpu.core_type<tc>} {
    %c0 = arith.constant 0 : index
    %c0_0 = arith.constant 0 : index
    %0 = vector.load %arg2[%c0, %c0_0] : memref<128x512xf32, #tpu.memory_space<vmem>>, vector<128x512xf32>
    %c0_1 = arith.constant 0 : index
    %c0_2 = arith.constant 0 : index
    %1 = vector.load %arg0[%c0_1, %c0_2] : memref<16x384xf32, #tpu.memory_space<vmem>>, vector<16x384xf32>
    %c0_3 = arith.constant 0 : index
    %c0_4 = arith.constant 0 : index
    %2 = vector.load %arg1[%c0_3, %c0_4] : memref<384x512xf32, #tpu.memory_space<vmem>>, vector<384x512xf32>
    %cst = arith.constant dense<0.000000e+00> : vector<16x512xf32>
    %3 = tpu.matmul %1, %2, %cst {dimension_numbers = #tpu.dot_dimension_numbers<[1], [0], [0], [1], [0, 0, 1, 1], [], []>} : vector<16x384xf32>, vector<384x512xf32>, vector<16x512xf32> -> vector<16x512xf32>
    %c0_5 = arith.constant 0 : index
    %c0_6 = arith.constant 0 : index
    %4 = vector.load %arg3[%c0_5, %c0_6] : memref<1x512xf32, #tpu.memory_space<vmem>>, vector<1x512xf32>
    %5 = vector.broadcast %4 : vector<1x512xf32> to vector<16x512xf32>
    %6 = arith.addf %3, %5 : vector<16x512xf32>
    %c0_7 = arith.constant 0 : index
    %c0_8 = arith.constant 0 : index
    %7 = vector.load %arg4[%c0_7, %c0_8] : memref<2x128xf32, #tpu.memory_space<vmem>>, vector<2x128xf32>
    %c0_9 = arith.constant 0 : index
    %c0_10 = arith.constant 0 : index
    %8 = vector.load %arg5[%c0_9, %c0_10] : memref<2x128xf32, #tpu.memory_space<vmem>>, vector<2x128xf32>
    %9 = vector.extract_strided_slice %6 {offsets = [0, 0], sizes = [2, 512], strides = [1, 1]} : vector<16x512xf32> to vector<2x512xf32>
    %cst_11 = arith.constant dense<0.000000e+00> : vector<2x512xf32>
    %10 = tpu.matmul %7, %0, %cst_11 {dimension_numbers = #tpu.dot_dimension_numbers<[1], [0], [0], [1], [0, 0, 1, 1], [], []>} : vector<2x128xf32>, vector<128x512xf32>, vector<2x512xf32> -> vector<2x512xf32>
    %11 = arith.addf %9, %10 : vector<2x512xf32>
    %12 = vector.extract_strided_slice %11 {offsets = [0, 0], sizes = [2, 128], strides = [1, 1]} : vector<2x512xf32> to vector<2x128xf32>
    %13 = arith.negf %12 : vector<2x128xf32>
    %14 = math.exp %13 : vector<2x128xf32>
    %cst_12 = arith.constant 1.000000e+00 : f32
    %15 = vector.broadcast %cst_12 : f32 to vector<2x128xf32>
    %16 = arith.addf %15, %14 : vector<2x128xf32>
    %17 = arith.divf %15, %16 : vector<2x128xf32>
    %18 = vector.extract_strided_slice %11 {offsets = [0, 128], sizes = [2, 128], strides = [1, 1]} : vector<2x512xf32> to vector<2x128xf32>
    %19 = arith.negf %18 : vector<2x128xf32>
    %20 = math.exp %19 : vector<2x128xf32>
    %cst_13 = arith.constant 1.000000e+00 : f32
    %21 = vector.broadcast %cst_13 : f32 to vector<2x128xf32>
    %22 = arith.addf %21, %20 : vector<2x128xf32>
    %23 = arith.divf %21, %22 : vector<2x128xf32>
    %24 = vector.extract_strided_slice %11 {offsets = [0, 256], sizes = [2, 128], strides = [1, 1]} : vector<2x512xf32> to vector<2x128xf32>
    %25 = math.tanh %24 : vector<2x128xf32>
    %26 = vector.extract_strided_slice %11 {offsets = [0, 384], sizes = [2, 128], strides = [1, 1]} : vector<2x512xf32> to vector<2x128xf32>
    %27 = arith.negf %26 : vector<2x128xf32>
    %28 = math.exp %27 : vector<2x128xf32>
    %cst_14 = arith.constant 1.000000e+00 : f32
    %29 = vector.broadcast %cst_14 : f32 to vector<2x128xf32>
    %30 = arith.addf %29, %28 : vector<2x128xf32>
    %31 = arith.divf %29, %30 : vector<2x128xf32>
    %32 = arith.mulf %23, %8 : vector<2x128xf32>
    %33 = arith.mulf %17, %25 : vector<2x128xf32>
    %34 = arith.addf %32, %33 : vector<2x128xf32>
    %35 = math.tanh %34 : vector<2x128xf32>
    %36 = arith.mulf %31, %35 : vector<2x128xf32>
    %c0_15 = arith.constant 0 : index
    %c0_16 = arith.constant 0 : index
    %37 = vector.load %arg11[%c0_15, %c0_16] : memref<16x128xf32, #tpu.memory_space<vmem>>, vector<2x128xf32>
    tpu.vector_store %arg11[%c0_15, %c0_16], %36 {strides = array<i32>} : memref<16x128xf32, #tpu.memory_space<vmem>>, vector<2x128xf32>,
    %38 = vector.extract_strided_slice %6 {offsets = [2, 0], sizes = [2, 512], strides = [1, 1]} : vector<16x512xf32> to vector<2x512xf32>
    %cst_17 = arith.constant dense<0.000000e+00> : vector<2x512xf32>
    %39 = tpu.matmul %36, %0, %cst_17 {dimension_numbers = #tpu.dot_dimension_numbers<[1], [0], [0], [1], [0, 0, 1, 1], [], []>} : vector<2x128xf32>, vector<128x512xf32>, vector<2x512xf32> -> vector<2x512xf32>
    %40 = arith.addf %38, %39 : vector<2x512xf32>
    %41 = vector.extract_strided_slice %40 {offsets = [0, 0], sizes = [2, 128], strides = [1, 1]} : vector<2x512xf32> to vector<2x128xf32>
    %42 = arith.negf %41 : vector<2x128xf32>
    %43 = math.exp %42 : vector<2x128xf32>
    %cst_18 = arith.constant 1.000000e+00 : f32
    %44 = vector.broadcast %cst_18 : f32 to vector<2x128xf32>
    %45 = arith.addf %44, %43 : vector<2x128xf32>
    %46 = arith.divf %44, %45 : vector<2x128xf32>
    %47 = vector.extract_strided_slice %40 {offsets = [0, 128], sizes = [2, 128], strides = [1, 1]} : vector<2x512xf32> to vector<2x128xf32>
    %48 = arith.negf %47 : vector<2x128xf32>
    %49 = math.exp %48 : vector<2x128xf32>
    %cst_19 = arith.constant 1.000000e+00 : f32
    %50 = vector.broadcast %cst_19 : f32 to vector<2x128xf32>
    %51 = arith.addf %50, %49 : vector<2x128xf32>
    %52 = arith.divf %50, %51 : vector<2x128xf32>
    %53 = vector.extract_strided_slice %40 {offsets = [0, 256], sizes = [2, 128], strides = [1, 1]} : vector<2x512xf32> to vector<2x128xf32>
    %54 = math.tanh %53 : vector<2x128xf32>
    %55 = vector.extract_strided_slice %40 {offsets = [0, 384], sizes = [2, 128], strides = [1, 1]} : vector<2x512xf32> to vector<2x128xf32>
    %56 = arith.negf %55 : vector<2x128xf32>
    %57 = math.exp %56 : vector<2x128xf32>
    %cst_20 = arith.constant 1.000000e+00 : f32
    %58 = vector.broadcast %cst_20 : f32 to vector<2x128xf32>
    %59 = arith.addf %58, %57 : vector<2x128xf32>
    %60 = arith.divf %58, %59 : vector<2x128xf32>
    %61 = arith.mulf %52, %34 : vector<2x128xf32>
    %62 = arith.mulf %46, %54 : vector<2x128xf32>
    %63 = arith.addf %61, %62 : vector<2x128xf32>
    %64 = math.tanh %63 : vector<2x128xf32>
    %65 = arith.mulf %60, %64 : vector<2x128xf32>
    %c2 = arith.constant 2 : index
    %c0_21 = arith.constant 0 : index
    %66 = vector.load %arg11[%c2, %c0_21] : memref<16x128xf32, #tpu.memory_space<vmem>>, vector<2x128xf32>
    tpu.vector_store %arg11[%c2, %c0_21], %65 {strides = array<i32>} : memref<16x128xf32, #tpu.memory_space<vmem>>, vector<2x128xf32>,
    %67 = vector.extract_strided_slice %6 {offsets = [4, 0], sizes = [2, 512], strides = [1, 1]} : vector<16x512xf32> to vector<2x512xf32>
    %cst_22 = arith.constant dense<0.000000e+00> : vector<2x512xf32>
    %68 = tpu.matmul %65, %0, %cst_22 {dimension_numbers = #tpu.dot_dimension_numbers<[1], [0], [0], [1], [0, 0, 1, 1], [], []>} : vector<2x128xf32>, vector<128x512xf32>, vector<2x512xf32> -> vector<2x512xf32>
    %69 = arith.addf %67, %68 : vector<2x512xf32>
    %70 = vector.extract_strided_slice %69 {offsets = [0, 0], sizes = [2, 128], strides = [1, 1]} : vector<2x512xf32> to vector<2x128xf32>
    %71 = arith.negf %70 : vector<2x128xf32>
    %72 = math.exp %71 : vector<2x128xf32>
    %cst_23 = arith.constant 1.000000e+00 : f32
    %73 = vector.broadcast %cst_23 : f32 to vector<2x128xf32>
    %74 = arith.addf %73, %72 : vector<2x128xf32>
    %75 = arith.divf %73, %74 : vector<2x128xf32>
    %76 = vector.extract_strided_slice %69 {offsets = [0, 128], sizes = [2, 128], strides = [1, 1]} : vector<2x512xf32> to vector<2x128xf32>
    %77 = arith.negf %76 : vector<2x128xf32>
    %78 = math.exp %77 : vector<2x128xf32>
    %cst_24 = arith.constant 1.000000e+00 : f32
    %79 = vector.broadcast %cst_24 : f32 to vector<2x128xf32>
    %80 = arith.addf %79, %78 : vector<2x128xf32>
    %81 = arith.divf %79, %80 : vector<2x128xf32>
    %82 = vector.extract_strided_slice %69 {offsets = [0, 256], sizes = [2, 128], strides = [1, 1]} : vector<2x512xf32> to vector<2x128xf32>
    %83 = math.tanh %82 : vector<2x128xf32>
    %84 = vector.extract_strided_slice %69 {offsets = [0, 384], sizes = [2, 128], strides = [1, 1]} : vector<2x512xf32> to vector<2x128xf32>
    %85 = arith.negf %84 : vector<2x128xf32>
    %86 = math.exp %85 : vector<2x128xf32>
    %cst_25 = arith.constant 1.000000e+00 : f32
    %87 = vector.broadcast %cst_25 : f32 to vector<2x128xf32>
    %88 = arith.addf %87, %86 : vector<2x128xf32>
    %89 = arith.divf %87, %88 : vector<2x128xf32>
    %90 = arith.mulf %81, %63 : vector<2x128xf32>
    %91 = arith.mulf %75, %83 : vector<2x128xf32>
    %92 = arith.addf %90, %91 : vector<2x128xf32>
    %93 = math.tanh %92 : vector<2x128xf32>
    %94 = arith.mulf %89, %93 : vector<2x128xf32>
    %c4 = arith.constant 4 : index
    %c0_26 = arith.constant 0 : index
    %95 = vector.load %arg11[%c4, %c0_26] : memref<16x128xf32, #tpu.memory_space<vmem>>, vector<2x128xf32>
    tpu.vector_store %arg11[%c4, %c0_26], %94 {strides = array<i32>} : memref<16x128xf32, #tpu.memory_space<vmem>>, vector<2x128xf32>,
    %96 = vector.extract_strided_slice %6 {offsets = [6, 0], sizes = [2, 512], strides = [1, 1]} : vector<16x512xf32> to vector<2x512xf32>
    %cst_27 = arith.constant dense<0.000000e+00> : vector<2x512xf32>
    %97 = tpu.matmul %94, %0, %cst_27 {dimension_numbers = #tpu.dot_dimension_numbers<[1], [0], [0], [1], [0, 0, 1, 1], [], []>} : vector<2x128xf32>, vector<128x512xf32>, vector<2x512xf32> -> vector<2x512xf32>
    %98 = arith.addf %96, %97 : vector<2x512xf32>
    %99 = vector.extract_strided_slice %98 {offsets = [0, 0], sizes = [2, 128], strides = [1, 1]} : vector<2x512xf32> to vector<2x128xf32>
    %100 = arith.negf %99 : vector<2x128xf32>
    %101 = math.exp %100 : vector<2x128xf32>
    %cst_28 = arith.constant 1.000000e+00 : f32
    %102 = vector.broadcast %cst_28 : f32 to vector<2x128xf32>
    %103 = arith.addf %102, %101 : vector<2x128xf32>
    %104 = arith.divf %102, %103 : vector<2x128xf32>
    %105 = vector.extract_strided_slice %98 {offsets = [0, 128], sizes = [2, 128], strides = [1, 1]} : vector<2x512xf32> to vector<2x128xf32>
    %106 = arith.negf %105 : vector<2x128xf32>
    %107 = math.exp %106 : vector<2x128xf32>
    %cst_29 = arith.constant 1.000000e+00 : f32
    %108 = vector.broadcast %cst_29 : f32 to vector<2x128xf32>
    %109 = arith.addf %108, %107 : vector<2x128xf32>
    %110 = arith.divf %108, %109 : vector<2x128xf32>
    %111 = vector.extract_strided_slice %98 {offsets = [0, 256], sizes = [2, 128], strides = [1, 1]} : vector<2x512xf32> to vector<2x128xf32>
    %112 = math.tanh %111 : vector<2x128xf32>
    %113 = vector.extract_strided_slice %98 {offsets = [0, 384], sizes = [2, 128], strides = [1, 1]} : vector<2x512xf32> to vector<2x128xf32>
    %114 = arith.negf %113 : vector<2x128xf32>
    %115 = math.exp %114 : vector<2x128xf32>
    %cst_30 = arith.constant 1.000000e+00 : f32
    %116 = vector.broadcast %cst_30 : f32 to vector<2x128xf32>
    %117 = arith.addf %116, %115 : vector<2x128xf32>
    %118 = arith.divf %116, %117 : vector<2x128xf32>
    %119 = arith.mulf %110, %92 : vector<2x128xf32>
    %120 = arith.mulf %104, %112 : vector<2x128xf32>
    %121 = arith.addf %119, %120 : vector<2x128xf32>
    %122 = math.tanh %121 : vector<2x128xf32>
    %123 = arith.mulf %118, %122 : vector<2x128xf32>
    %c6 = arith.constant 6 : index
    %c0_31 = arith.constant 0 : index
    %124 = vector.load %arg11[%c6, %c0_31] : memref<16x128xf32, #tpu.memory_space<vmem>>, vector<2x128xf32>
    tpu.vector_store %arg11[%c6, %c0_31], %123 {strides = array<i32>} : memref<16x128xf32, #tpu.memory_space<vmem>>, vector<2x128xf32>,
    %125 = vector.extract_strided_slice %6 {offsets = [8, 0], sizes = [2, 512], strides = [1, 1]} : vector<16x512xf32> to vector<2x512xf32>
    %cst_32 = arith.constant dense<0.000000e+00> : vector<2x512xf32>
    %126 = tpu.matmul %123, %0, %cst_32 {dimension_numbers = #tpu.dot_dimension_numbers<[1], [0], [0], [1], [0, 0, 1, 1], [], []>} : vector<2x128xf32>, vector<128x512xf32>, vector<2x512xf32> -> vector<2x512xf32>
    %127 = arith.addf %125, %126 : vector<2x512xf32>
    %128 = vector.extract_strided_slice %127 {offsets = [0, 0], sizes = [2, 128], strides = [1, 1]} : vector<2x512xf32> to vector<2x128xf32>
    %129 = arith.negf %128 : vector<2x128xf32>
    %130 = math.exp %129 : vector<2x128xf32>
    %cst_33 = arith.constant 1.000000e+00 : f32
    %131 = vector.broadcast %cst_33 : f32 to vector<2x128xf32>
    %132 = arith.addf %131, %130 : vector<2x128xf32>
    %133 = arith.divf %131, %132 : vector<2x128xf32>
    %134 = vector.extract_strided_slice %127 {offsets = [0, 128], sizes = [2, 128], strides = [1, 1]} : vector<2x512xf32> to vector<2x128xf32>
    %135 = arith.negf %134 : vector<2x128xf32>
    %136 = math.exp %135 : vector<2x128xf32>
    %cst_34 = arith.constant 1.000000e+00 : f32
    %137 = vector.broadcast %cst_34 : f32 to vector<2x128xf32>
    %138 = arith.addf %137, %136 : vector<2x128xf32>
    %139 = arith.divf %137, %138 : vector<2x128xf32>
    %140 = vector.extract_strided_slice %127 {offsets = [0, 256], sizes = [2, 128], strides = [1, 1]} : vector<2x512xf32> to vector<2x128xf32>
    %141 = math.tanh %140 : vector<2x128xf32>
    %142 = vector.extract_strided_slice %127 {offsets = [0, 384], sizes = [2, 128], strides = [1, 1]} : vector<2x512xf32> to vector<2x128xf32>
    %143 = arith.negf %142 : vector<2x128xf32>
    %144 = math.exp %143 : vector<2x128xf32>
    %cst_35 = arith.constant 1.000000e+00 : f32
    %145 = vector.broadcast %cst_35 : f32 to vector<2x128xf32>
    %146 = arith.addf %145, %144 : vector<2x128xf32>
    %147 = arith.divf %145, %146 : vector<2x128xf32>
    %148 = arith.mulf %139, %121 : vector<2x128xf32>
    %149 = arith.mulf %133, %141 : vector<2x128xf32>
    %150 = arith.addf %148, %149 : vector<2x128xf32>
    %151 = math.tanh %150 : vector<2x128xf32>
    %152 = arith.mulf %147, %151 : vector<2x128xf32>
    %c8 = arith.constant 8 : index
    %c0_36 = arith.constant 0 : index
    %153 = vector.load %arg11[%c8, %c0_36] : memref<16x128xf32, #tpu.memory_space<vmem>>, vector<2x128xf32>
    tpu.vector_store %arg11[%c8, %c0_36], %152 {strides = array<i32>} : memref<16x128xf32, #tpu.memory_space<vmem>>, vector<2x128xf32>,
    %154 = vector.extract_strided_slice %6 {offsets = [10, 0], sizes = [2, 512], strides = [1, 1]} : vector<16x512xf32> to vector<2x512xf32>
    %cst_37 = arith.constant dense<0.000000e+00> : vector<2x512xf32>
    %155 = tpu.matmul %152, %0, %cst_37 {dimension_numbers = #tpu.dot_dimension_numbers<[1], [0], [0], [1], [0, 0, 1, 1], [], []>} : vector<2x128xf32>, vector<128x512xf32>, vector<2x512xf32> -> vector<2x512xf32>
    %156 = arith.addf %154, %155 : vector<2x512xf32>
    %157 = vector.extract_strided_slice %156 {offsets = [0, 0], sizes = [2, 128], strides = [1, 1]} : vector<2x512xf32> to vector<2x128xf32>
    %158 = arith.negf %157 : vector<2x128xf32>
    %159 = math.exp %158 : vector<2x128xf32>
    %cst_38 = arith.constant 1.000000e+00 : f32
    %160 = vector.broadcast %cst_38 : f32 to vector<2x128xf32>
    %161 = arith.addf %160, %159 : vector<2x128xf32>
    %162 = arith.divf %160, %161 : vector<2x128xf32>
    %163 = vector.extract_strided_slice %156 {offsets = [0, 128], sizes = [2, 128], strides = [1, 1]} : vector<2x512xf32> to vector<2x128xf32>
    %164 = arith.negf %163 : vector<2x128xf32>
    %165 = math.exp %164 : vector<2x128xf32>
    %cst_39 = arith.constant 1.000000e+00 : f32
    %166 = vector.broadcast %cst_39 : f32 to vector<2x128xf32>
    %167 = arith.addf %166, %165 : vector<2x128xf32>
    %168 = arith.divf %166, %167 : vector<2x128xf32>
    %169 = vector.extract_strided_slice %156 {offsets = [0, 256], sizes = [2, 128], strides = [1, 1]} : vector<2x512xf32> to vector<2x128xf32>
    %170 = math.tanh %169 : vector<2x128xf32>
    %171 = vector.extract_strided_slice %156 {offsets = [0, 384], sizes = [2, 128], strides = [1, 1]} : vector<2x512xf32> to vector<2x128xf32>
    %172 = arith.negf %171 : vector<2x128xf32>
    %173 = math.exp %172 : vector<2x128xf32>
    %cst_40 = arith.constant 1.000000e+00 : f32
    %174 = vector.broadcast %cst_40 : f32 to vector<2x128xf32>
    %175 = arith.addf %174, %173 : vector<2x128xf32>
    %176 = arith.divf %174, %175 : vector<2x128xf32>
    %177 = arith.mulf %168, %150 : vector<2x128xf32>
    %178 = arith.mulf %162, %170 : vector<2x128xf32>
    %179 = arith.addf %177, %178 : vector<2x128xf32>
    %180 = math.tanh %179 : vector<2x128xf32>
    %181 = arith.mulf %176, %180 : vector<2x128xf32>
    %c10 = arith.constant 10 : index
    %c0_41 = arith.constant 0 : index
    %182 = vector.load %arg11[%c10, %c0_41] : memref<16x128xf32, #tpu.memory_space<vmem>>, vector<2x128xf32>
    tpu.vector_store %arg11[%c10, %c0_41], %181 {strides = array<i32>} : memref<16x128xf32, #tpu.memory_space<vmem>>, vector<2x128xf32>,
    %183 = vector.extract_strided_slice %6 {offsets = [12, 0], sizes = [2, 512], strides = [1, 1]} : vector<16x512xf32> to vector<2x512xf32>
    %cst_42 = arith.constant dense<0.000000e+00> : vector<2x512xf32>
    %184 = tpu.matmul %181, %0, %cst_42 {dimension_numbers = #tpu.dot_dimension_numbers<[1], [0], [0], [1], [0, 0, 1, 1], [], []>} : vector<2x128xf32>, vector<128x512xf32>, vector<2x512xf32> -> vector<2x512xf32>
    %185 = arith.addf %183, %184 : vector<2x512xf32>
    %186 = vector.extract_strided_slice %185 {offsets = [0, 0], sizes = [2, 128], strides = [1, 1]} : vector<2x512xf32> to vector<2x128xf32>
    %187 = arith.negf %186 : vector<2x128xf32>
    %188 = math.exp %187 : vector<2x128xf32>
    %cst_43 = arith.constant 1.000000e+00 : f32
    %189 = vector.broadcast %cst_43 : f32 to vector<2x128xf32>
    %190 = arith.addf %189, %188 : vector<2x128xf32>
    %191 = arith.divf %189, %190 : vector<2x128xf32>
    %192 = vector.extract_strided_slice %185 {offsets = [0, 128], sizes = [2, 128], strides = [1, 1]} : vector<2x512xf32> to vector<2x128xf32>
    %193 = arith.negf %192 : vector<2x128xf32>
    %194 = math.exp %193 : vector<2x128xf32>
    %cst_44 = arith.constant 1.000000e+00 : f32
    %195 = vector.broadcast %cst_44 : f32 to vector<2x128xf32>
    %196 = arith.addf %195, %194 : vector<2x128xf32>
    %197 = arith.divf %195, %196 : vector<2x128xf32>
    %198 = vector.extract_strided_slice %185 {offsets = [0, 256], sizes = [2, 128], strides = [1, 1]} : vector<2x512xf32> to vector<2x128xf32>
    %199 = math.tanh %198 : vector<2x128xf32>
    %200 = vector.extract_strided_slice %185 {offsets = [0, 384], sizes = [2, 128], strides = [1, 1]} : vector<2x512xf32> to vector<2x128xf32>
    %201 = arith.negf %200 : vector<2x128xf32>
    %202 = math.exp %201 : vector<2x128xf32>
    %cst_45 = arith.constant 1.000000e+00 : f32
    %203 = vector.broadcast %cst_45 : f32 to vector<2x128xf32>
    %204 = arith.addf %203, %202 : vector<2x128xf32>
    %205 = arith.divf %203, %204 : vector<2x128xf32>
    %206 = arith.mulf %197, %179 : vector<2x128xf32>
    %207 = arith.mulf %191, %199 : vector<2x128xf32>
    %208 = arith.addf %206, %207 : vector<2x128xf32>
    %209 = math.tanh %208 : vector<2x128xf32>
    %210 = arith.mulf %205, %209 : vector<2x128xf32>
    %c12 = arith.constant 12 : index
    %c0_46 = arith.constant 0 : index
    %211 = vector.load %arg11[%c12, %c0_46] : memref<16x128xf32, #tpu.memory_space<vmem>>, vector<2x128xf32>
    tpu.vector_store %arg11[%c12, %c0_46], %210 {strides = array<i32>} : memref<16x128xf32, #tpu.memory_space<vmem>>, vector<2x128xf32>,
    %212 = vector.extract_strided_slice %6 {offsets = [14, 0], sizes = [2, 512], strides = [1, 1]} : vector<16x512xf32> to vector<2x512xf32>
    %cst_47 = arith.constant dense<0.000000e+00> : vector<2x512xf32>
    %213 = tpu.matmul %210, %0, %cst_47 {dimension_numbers = #tpu.dot_dimension_numbers<[1], [0], [0], [1], [0, 0, 1, 1], [], []>} : vector<2x128xf32>, vector<128x512xf32>, vector<2x512xf32> -> vector<2x512xf32>
    %214 = arith.addf %212, %213 : vector<2x512xf32>
    %215 = vector.extract_strided_slice %214 {offsets = [0, 0], sizes = [2, 128], strides = [1, 1]} : vector<2x512xf32> to vector<2x128xf32>
    %216 = arith.negf %215 : vector<2x128xf32>
    %217 = math.exp %216 : vector<2x128xf32>
    %cst_48 = arith.constant 1.000000e+00 : f32
    %218 = vector.broadcast %cst_48 : f32 to vector<2x128xf32>
    %219 = arith.addf %218, %217 : vector<2x128xf32>
    %220 = arith.divf %218, %219 : vector<2x128xf32>
    %221 = vector.extract_strided_slice %214 {offsets = [0, 128], sizes = [2, 128], strides = [1, 1]} : vector<2x512xf32> to vector<2x128xf32>
    %222 = arith.negf %221 : vector<2x128xf32>
    %223 = math.exp %222 : vector<2x128xf32>
    %cst_49 = arith.constant 1.000000e+00 : f32
    %224 = vector.broadcast %cst_49 : f32 to vector<2x128xf32>
    %225 = arith.addf %224, %223 : vector<2x128xf32>
    %226 = arith.divf %224, %225 : vector<2x128xf32>
    %227 = vector.extract_strided_slice %214 {offsets = [0, 256], sizes = [2, 128], strides = [1, 1]} : vector<2x512xf32> to vector<2x128xf32>
    %228 = math.tanh %227 : vector<2x128xf32>
    %229 = vector.extract_strided_slice %214 {offsets = [0, 384], sizes = [2, 128], strides = [1, 1]} : vector<2x512xf32> to vector<2x128xf32>
    %230 = arith.negf %229 : vector<2x128xf32>
    %231 = math.exp %230 : vector<2x128xf32>
    %cst_50 = arith.constant 1.000000e+00 : f32
    %232 = vector.broadcast %cst_50 : f32 to vector<2x128xf32>
    %233 = arith.addf %232, %231 : vector<2x128xf32>
    %234 = arith.divf %232, %233 : vector<2x128xf32>
    %235 = arith.mulf %226, %208 : vector<2x128xf32>
    %236 = arith.mulf %220, %228 : vector<2x128xf32>
    %237 = arith.addf %235, %236 : vector<2x128xf32>
    %238 = math.tanh %237 : vector<2x128xf32>
    %239 = arith.mulf %234, %238 : vector<2x128xf32>
    %c14 = arith.constant 14 : index
    %c0_51 = arith.constant 0 : index
    %240 = vector.load %arg11[%c14, %c0_51] : memref<16x128xf32, #tpu.memory_space<vmem>>, vector<2x128xf32>
    tpu.vector_store %arg11[%c14, %c0_51], %239 {strides = array<i32>} : memref<16x128xf32, #tpu.memory_space<vmem>>, vector<2x128xf32>,
    %c0_52 = arith.constant 0 : index
    %c0_53 = arith.constant 0 : index
    %241 = vector.load %arg11[%c0_52, %c0_53] : memref<16x128xf32, #tpu.memory_space<vmem>>, vector<16x128xf32>
    %c0_54 = arith.constant 0 : index
    %c0_55 = arith.constant 0 : index
    %242 = vector.load %arg6[%c0_54, %c0_55] : memref<128x32xf32, #tpu.memory_space<vmem>>, vector<128x32xf32>
    %cst_56 = arith.constant dense<0.000000e+00> : vector<16x32xf32>
    %243 = tpu.matmul %241, %242, %cst_56 {dimension_numbers = #tpu.dot_dimension_numbers<[1], [0], [0], [1], [0, 0, 1, 1], [], []>} : vector<16x128xf32>, vector<128x32xf32>, vector<16x32xf32> -> vector<16x32xf32>
    %c0_57 = arith.constant 0 : index
    %c0_58 = arith.constant 0 : index
    %244 = vector.load %arg7[%c0_57, %c0_58] : memref<1x32xf32, #tpu.memory_space<vmem>>, vector<1x32xf32>
    %245 = vector.broadcast %244 : vector<1x32xf32> to vector<16x32xf32>
    %246 = arith.addf %243, %245 : vector<16x32xf32>
    %c0_59 = arith.constant 0 : index
    %c0_60 = arith.constant 0 : index
    %247 = vector.load %arg8[%c0_59, %c0_60] : memref<16x32xf32, #tpu.memory_space<vmem>>, vector<16x32xf32>
    tpu.vector_store %arg8[%c0_59, %c0_60], %246 {strides = array<i32>} : memref<16x32xf32, #tpu.memory_space<vmem>>, vector<16x32xf32>,
    %c0_61 = arith.constant 0 : index
    %c0_62 = arith.constant 0 : index
    %248 = vector.load %arg9[%c0_61, %c0_62] : memref<2x128xf32, #tpu.memory_space<vmem>>, vector<2x128xf32>
    tpu.vector_store %arg9[%c0_61, %c0_62], %239 {strides = array<i32>} : memref<2x128xf32, #tpu.memory_space<vmem>>, vector<2x128xf32>,
    %c0_63 = arith.constant 0 : index
    %c0_64 = arith.constant 0 : index
    %249 = vector.load %arg10[%c0_63, %c0_64] : memref<2x128xf32, #tpu.memory_space<vmem>>, vector<2x128xf32>
    tpu.vector_store %arg10[%c0_63, %c0_64], %237 {strides = array<i32>} : memref<2x128xf32, #tpu.memory_space<vmem>>, vector<2x128xf32>,
    return
  }
}

</mosaic_0001>

<bundles_post_ra>
// kernel: gmodel_forward.1
= control target key start
LH: loop header
LB: loop body
LE: loop exit
PB: predicated region body
PF: predicated region fallthrough
CT: control target
= control target key end

     0   :  { %16 = vsyncpa [#allocation4], 0  ;;  %s3385_s0 = inlined_call_operand.vmem [shape: f32[16,384], index: 0, kind: input, shape index: {}]   ;;  %s3386_s1 = inlined_call_operand.hbm [shape: f32[384,512], index: 1, kind: input, shape index: {}]   ;;  %s3387_s2 = inlined_call_operand.hbm [shape: f32[128,512], index: 2, kind: input, shape index: {}]   ;;  %s3388_s3 = inlined_call_operand.vmem [shape: f32[1,512], index: 3, kind: input, shape index: {}]   ;;  %s3389_s4 = inlined_call_operand.vmem [shape: f32[2,128], index: 4, kind: input, shape index: {}]   ;;  %s3390_s5 = inlined_call_operand.vmem [shape: f32[2,128], index: 5, kind: input, shape index: {}]   ;;  %s3391_s6 = inlined_call_operand.vmem [shape: f32[128,32], index: 6, kind: input, shape index: {}]   ;;  %s3392_s7 = inlined_call_operand.vmem [shape: f32[1,32], index: 7, kind: input, shape index: {}]   ;;  %s3393_s8 = inlined_call_operand.vmem [shape: f32[16,32], index: 8, kind: output, shape index: {0}]   ;;  %s3394_s9 = inlined_call_operand.hbm [shape: f32[2,128], index: 9, kind: output, shape index: {1}]   ;;  %s3395_s10 = inlined_call_operand.hbm [shape: f32[2,128], index: 10, kind: output, shape index: {2}]  }
   0x1   :  { %17 = vsyncpa [#allocation7], 0 }
   0x2   :  { %18 = vsyncpa [#allocation5], 0 }
   0x3   :  { %19 = vsyncpa [#allocation10], 0  ;;  %s26_s15 = sshll.u32 %s3386_s1, 4  ;;  %s2331_s16 = smov [#allocation3]   ;;  %s27_s15 = int_to_ptr.hbm [resolvable:$true] %s26_s15 }
   0x4   :  { %s28_s17 = sshll.u32 %s2331_s16, 4  ;;  %s39_s20 = sshll.u32 %s3387_s2, 4  ;;  %s29_s17 = int_to_ptr.vmem [resolvable:$true] %s28_s17  ;;  %s40_s20 = int_to_ptr.hbm [resolvable:$true] %s39_s20 }
   0x5   :  { %s2332_s21 = smov 512   ;;  %s2333_s22 = smov 32  }
   0x6   :  { %34 = dma.hbm_to_vmem [thread:$0]  %s27_s15, 24576, %s29_s17, [#allocation4], %s2332_s21, %s2332_s21, %s2333_s22  }
   0x7   :  { %s2334_s23 = smov [#allocation6]  }
   0x8   :  { %s41_s24 = sshll.u32 %s2334_s23, 4  ;;  %s42_s24 = int_to_ptr.vmem [resolvable:$true] %s41_s24 }
   0x9   :  { %47 = dma.hbm_to_vmem [thread:$0]  %s40_s20, 8192, %s42_s24, [#allocation7], %s2332_s21, %s2332_s21, %s2333_s22  }
   0xa   :  { %2323 = dma.done.wait [#allocation4], 24576  }
   0xb   :  { %2324 = vsyncadd [#allocation4], 4294942720 }
   0xc   :  { %2325 = dma.done.wait [#allocation7], 8192  }
   0xd   :  { %2326 = vsyncadd [#allocation7], 4294959104  ;;  %v196_v0 = vld [vmem:[#allocation3 + $0x1e0] sm:$0xff]  ;;  %v261_v2 = vld [vmem:[#allocation3 + $0x3e8] sm:$0xff]  ;;  %s1967_s27 = sshll.u32 %s3394_s9, 4  ;;  %s2336_s28 = smov [#allocation9]   ;;  %s1968_s27 = int_to_ptr.hbm [resolvable:$true] %s1967_s27 }
   0xe   :  { %v324_v1 = vld [vmem:[#allocation3 + $0x5e0] sm:$0xff]  ;;  %338 = vmatpush.msra.mxu1 %v196_v0  ;;  %v197_v5 = vld [vmem:[#allocation3 + $0x1e8] sm:$0xff]  ;;  %430 = vmatpush.msra.mxu0 %v261_v2  ;;  %v198_v0 = vld [vmem:[#allocation3 + $0x1f0] sm:$0xff]  ;;  %s1976_s29 = sshll.u32 %s2336_s28, 4  ;;  %s1978_s12 = sshll.u32 %s3395_s10, 4  ;;  %s1977_s29 = int_to_ptr.vmem [resolvable:$true] %s1976_s29  ;;  %s1979_s12 = int_to_ptr.hbm [resolvable:$true] %s1978_s12 }
   0xf   :  { %384 = vmatpush.msra.mxu2 %v324_v1  ;;  %v192_v3 = vld [vmem:[#allocation3 + $0x1c0] sm:$0xff]  ;;  %407 = vmatpush.msra.mxu3 %v197_v5  ;;  %v257_v6 = vld [vmem:[#allocation3 + $0x3c8] sm:$0xff]  ;;  %v326_v1 = vld [vmem:[#allocation3 + $0x5f0] sm:$0xff] }
  0x10   :  { %v320_v4 = vld [vmem:[#allocation3 + $0x5c0] sm:$0xff]  ;;  %339 = vmatpush.msra.mxu1 %v192_v3  ;;  %v193_v9 = vld [vmem:[#allocation3 + $0x1c8] sm:$0xff]  ;;  %431 = vmatpush.msra.mxu0 %v257_v6  ;;  %v262_v5 = vld [vmem:[#allocation3 + $0x3f0] sm:$0xff] }
  0x11   :  { %v188_v7 = vld [vmem:[#allocation3 + $0x1a0] sm:$0xff]  ;;  %385 = vmatpush.msra.mxu2 %v320_v4  ;;  %v253_v10 = vld [vmem:[#allocation3 + $0x3a8] sm:$0xff]  ;;  %408 = vmatpush.msra.mxu3 %v193_v9  ;;  %v194_v4 = vld [vmem:[#allocation3 + $0x1d0] sm:$0xff] }
  0x12   :  { %v316_v8 = vld [vmem:[#allocation3 + $0x5a0] sm:$0xff]  ;;  %v189_v13 = vld [vmem:[#allocation3 + $0x1a8] sm:$0xff]  ;;  %340 = vmatpush.msra.mxu1 %v188_v7  ;;  %432 = vmatpush.msra.mxu0 %v253_v10  ;;  %v322_v6 = vld [vmem:[#allocation3 + $0x5d0] sm:$0xff] }
  0x13   :  { %v184_v11 = vld [vmem:[#allocation3 + $0x180] sm:$0xff]  ;;  %386 = vmatpush.msra.mxu2 %v316_v8  ;;  %v249_v14 = vld [vmem:[#allocation3 + $0x388] sm:$0xff]  ;;  %409 = vmatpush.msra.mxu3 %v189_v13  ;;  %v190_v8 = vld [vmem:[#allocation3 + $0x1b0] sm:$0xff] }
  0x14   :  { %v312_v12 = vld [vmem:[#allocation3 + $0x580] sm:$0xff]  ;;  %v185_v15 = vld [vmem:[#allocation3 + $0x188] sm:$0xff]  ;;  %341 = vmatpush.msra.mxu1 %v184_v11  ;;  %433 = vmatpush.msra.mxu0 %v249_v14  ;;  %v258_v9 = vld [vmem:[#allocation3 + $0x3d0] sm:$0xff] }
  0x15   :  { %v180_v16 = vld [vmem:[#allocation3 + $0x160] sm:$0xff]  ;;  %387 = vmatpush.msra.mxu2 %v312_v12  ;;  %v245_v18 = vld [vmem:[#allocation3 + $0x368] sm:$0xff]  ;;  %410 = vmatpush.msra.mxu3 %v185_v15  ;;  %v318_v10 = vld [vmem:[#allocation3 + $0x5b0] sm:$0xff] }
  0x16   :  { %v308_v17 = vld [vmem:[#allocation3 + $0x560] sm:$0xff]  ;;  %v181_v19 = vld [vmem:[#allocation3 + $0x168] sm:$0xff]  ;;  %342 = vmatpush.msra.mxu1 %v180_v16  ;;  %434 = vmatpush.msra.mxu0 %v245_v18  ;;  %v186_v12 = vld [vmem:[#allocation3 + $0x190] sm:$0xff] }
  0x17   :  { %v176_v20 = vld [vmem:[#allocation3 + $0x140] sm:$0xff]  ;;  %388 = vmatpush.msra.mxu2 %v308_v17  ;;  %v241_v22 = vld [vmem:[#allocation3 + $0x348] sm:$0xff]  ;;  %411 = vmatpush.msra.mxu3 %v181_v19  ;;  %v254_v13 = vld [vmem:[#allocation3 + $0x3b0] sm:$0xff] }
  0x18   :  { %v304_v21 = vld [vmem:[#allocation3 + $0x540] sm:$0xff]  ;;  %v177_v23 = vld [vmem:[#allocation3 + $0x148] sm:$0xff]  ;;  %343 = vmatpush.msra.mxu1 %v176_v20  ;;  %435 = vmatpush.msra.mxu0 %v241_v22  ;;  %v314_v14 = vld [vmem:[#allocation3 + $0x590] sm:$0xff] }
  0x19   :  { %v172_v24 = vld [vmem:[#allocation3 + $0x120] sm:$0xff]  ;;  %389 = vmatpush.msra.mxu2 %v304_v21  ;;  %v237_v26 = vld [vmem:[#allocation3 + $0x328] sm:$0xff]  ;;  %412 = vmatpush.msra.mxu3 %v177_v23  ;;  %v182_v16 = vld [vmem:[#allocation3 + $0x170] sm:$0xff] }
  0x1a   :  { %v300_v25 = vld [vmem:[#allocation3 + $0x520] sm:$0xff]  ;;  %v173_v27 = vld [vmem:[#allocation3 + $0x128] sm:$0xff]  ;;  %344 = vmatpush.msra.mxu1 %v172_v24  ;;  %436 = vmatpush.msra.mxu0 %v237_v26  ;;  %v250_v17 = vld [vmem:[#allocation3 + $0x390] sm:$0xff] }
  0x1b   :  { %v168_v28 = vld [vmem:[#allocation3 + $0x100] sm:$0xff]  ;;  %390 = vmatpush.msra.mxu2 %v300_v25  ;;  %v233_v30 = vld [vmem:[#allocation3 + $0x308] sm:$0xff]  ;;  %413 = vmatpush.msra.mxu3 %v173_v27  ;;  %v310_v18 = vld [vmem:[#allocation3 + $0x570] sm:$0xff] }
  0x1c   :  { %v296_v29 = vld [vmem:[#allocation3 + $0x500] sm:$0xff]  ;;  %v169_v31 = vld [vmem:[#allocation3 + $0x108] sm:$0xff]  ;;  %345 = vmatpush.msra.mxu1 %v168_v28  ;;  %437 = vmatpush.msra.mxu0 %v233_v30  ;;  %v178_v20 = vld [vmem:[#allocation3 + $0x150] sm:$0xff] }
  0x1d   :  { %v164_v32 = vld [vmem:[#allocation3 + $0xe0] sm:$0xff]  ;;  %391 = vmatpush.msra.mxu2 %v296_v29  ;;  %v229_v34 = vld [vmem:[#allocation3 + $0x2e8] sm:$0xff]  ;;  %414 = vmatpush.msra.mxu3 %v169_v31  ;;  %v246_v21 = vld [vmem:[#allocation3 + $0x370] sm:$0xff] }
  0x1e   :  { %v292_v33 = vld [vmem:[#allocation3 + $0x4e0] sm:$0xff]  ;;  %v165_v35 = vld [vmem:[#allocation3 + $0xe8] sm:$0xff]  ;;  %346 = vmatpush.msra.mxu1 %v164_v32  ;;  %438 = vmatpush.msra.mxu0 %v229_v34  ;;  %v306_v22 = vld [vmem:[#allocation3 + $0x550] sm:$0xff] }
  0x1f   :  { %v160_v36 = vld [vmem:[#allocation3 + $0xc0] sm:$0xff]  ;;  %392 = vmatpush.msra.mxu2 %v292_v33  ;;  %v225_v38 = vld [vmem:[#allocation3 + $0x2c8] sm:$0xff]  ;;  %415 = vmatpush.msra.mxu3 %v165_v35  ;;  %v174_v24 = vld [vmem:[#allocation3 + $0x130] sm:$0xff] }
  0x20   :  { %v288_v37 = vld [vmem:[#allocation3 + $0x4c0] sm:$0xff]  ;;  %v161_v39 = vld [vmem:[#allocation3 + $0xc8] sm:$0xff]  ;;  %347 = vmatpush.msra.mxu1 %v160_v36  ;;  %439 = vmatpush.msra.mxu0 %v225_v38  ;;  %v242_v25 = vld [vmem:[#allocation3 + $0x350] sm:$0xff] }
  0x21   :  { %v156_v40 = vld [vmem:[#allocation3 + $0xa0] sm:$0xff]  ;;  %393 = vmatpush.msra.mxu2 %v288_v37  ;;  %v221_v42 = vld [vmem:[#allocation3 + $0x2a8] sm:$0xff]  ;;  %416 = vmatpush.msra.mxu3 %v161_v39  ;;  %v302_v26 = vld [vmem:[#allocation3 + $0x530] sm:$0xff] }
  0x22   :  { %v284_v41 = vld [vmem:[#allocation3 + $0x4a0] sm:$0xff]  ;;  %v157_v43 = vld [vmem:[#allocation3 + $0xa8] sm:$0xff]  ;;  %348 = vmatpush.msra.mxu1 %v156_v40  ;;  %440 = vmatpush.msra.mxu0 %v221_v42  ;;  %v170_v28 = vld [vmem:[#allocation3 + $0x110] sm:$0xff] }
  0x23   :  { %v152_v44 = vld [vmem:[#allocation3 + $0x80] sm:$0xff]  ;;  %394 = vmatpush.msra.mxu2 %v284_v41  ;;  %v217_v46 = vld [vmem:[#allocation3 + $0x288] sm:$0xff]  ;;  %417 = vmatpush.msra.mxu3 %v157_v43  ;;  %v238_v29 = vld [vmem:[#allocation3 + $0x330] sm:$0xff] }
  0x24   :  { %v280_v45 = vld [vmem:[#allocation3 + $0x480] sm:$0xff]  ;;  %v153_v47 = vld [vmem:[#allocation3 + $0x88] sm:$0xff]  ;;  %349 = vmatpush.msra.mxu1 %v152_v44  ;;  %441 = vmatpush.msra.mxu0 %v217_v46  ;;  %v298_v30 = vld [vmem:[#allocation3 + $0x510] sm:$0xff] }
  0x25   :  { %v148_v48 = vld [vmem:[#allocation3 + $0x60] sm:$0xff]  ;;  %395 = vmatpush.msra.mxu2 %v280_v45  ;;  %v213_v50 = vld [vmem:[#allocation3 + $0x268] sm:$0xff]  ;;  %418 = vmatpush.msra.mxu3 %v153_v47  ;;  %v166_v32 = vld [vmem:[#allocation3 + $0xf0] sm:$0xff] }
  0x26   :  { %v276_v49 = vld [vmem:[#allocation3 + $0x460] sm:$0xff]  ;;  %v149_v51 = vld [vmem:[#allocation3 + $0x68] sm:$0xff]  ;;  %350 = vmatpush.msra.mxu1 %v148_v48  ;;  %442 = vmatpush.msra.mxu0 %v213_v50  ;;  %v234_v33 = vld [vmem:[#allocation3 + $0x310] sm:$0xff] }
  0x27   :  { %v144_v52 = vld [vmem:[#allocation3 + $0x40] sm:$0xff]  ;;  %396 = vmatpush.msra.mxu2 %v276_v49  ;;  %v209_v54 = vld [vmem:[#allocation3 + $0x248] sm:$0xff]  ;;  %419 = vmatpush.msra.mxu3 %v149_v51  ;;  %v294_v34 = vld [vmem:[#allocation3 + $0x4f0] sm:$0xff] }
  0x28   :  { %v272_v53 = vld [vmem:[#allocation3 + $0x440] sm:$0xff]  ;;  %v145_v55 = vld [vmem:[#allocation3 + $0x48] sm:$0xff]  ;;  %351 = vmatpush.msra.mxu1 %v144_v52  ;;  %443 = vmatpush.msra.mxu0 %v209_v54  ;;  %v2401_v35 = vld [vmem:[%s3385_s0] sm:$0xff] }
  0x29   :  { %v140_v56 = vld [vmem:[#allocation3 + $0x20] sm:$0xff]  ;;  %397 = vmatpush.msra.mxu2 %v272_v53  ;;  %v205_v58 = vld [vmem:[#allocation3 + $0x228] sm:$0xff]  ;;  %420 = vmatpush.msra.mxu3 %v145_v55  ;;  %v162_v37 = vld [vmem:[#allocation3 + $0xd0] sm:$0xff] }
  0x2a   :  { %v268_v57 = vld [vmem:[#allocation3 + $0x420] sm:$0xff]  ;;  %v141_v59 = vld [vmem:[#allocation3 + $0x28] sm:$0xff]  ;;  %352 = vmatpush.msra.mxu1 %v140_v56  ;;  %444 = vmatpush.msra.mxu0 %v205_v58  ;;  %v230_v38 = vld [vmem:[#allocation3 + $0x2f0] sm:$0xff] }
  0x2b   :  { %v136_v60 = vld [vmem:[#allocation3] sm:$0xff]  ;;  %398 = vmatpush.msra.mxu2 %v268_v57  ;;  %v201_v62 = vld [vmem:[#allocation3 + $0x208] sm:$0xff]  ;;  %421 = vmatpush.msra.mxu3 %v141_v59  ;;  %v290_v39 = vld [vmem:[#allocation3 + $0x4d0] sm:$0xff] }
  0x2c   :  { %v264_v61 = vld [vmem:[#allocation3 + $0x400] sm:$0xff]  ;;  %353 = vmatpush.msra.mxu1 %v136_v60  ;;  %v137_v2 = vld [vmem:[#allocation3 + $0x8] sm:$0xff]  ;;  %445 = vmatpush.msra.mxu0 %v201_v62  ;;  %v158_v41 = vld [vmem:[#allocation3 + $0xb0] sm:$0xff] }
  0x2d   :  { %v260_v63 = vld [vmem:[#allocation3 + $0x3e0] sm:$0xff]  ;;  %399 = vmatpush.msra.mxu2 %v264_v61  ;;  %422 = vmatpush.msra.mxu3 %v137_v2  ;;  %v226_v42 = vld [vmem:[#allocation3 + $0x2d0] sm:$0xff]  ;;  %v2407_v52 = vld [vmem:[%s3385_s0 + $0x18] sm:$0xff] }
  0x2e   :  { %v256_v3 = vld [vmem:[#allocation3 + $0x3c0] sm:$0xff]  ;;  %361 = vmatpush.msrb.mxu1 %v260_v63  ;;  %522 = vmatpush.msrb.mxu0 %v326_v1  ;;  %v286_v43 = vld [vmem:[#allocation3 + $0x4b0] sm:$0xff]  ;;  %v2418_v63 = vld [vmem:[%s3385_s0 + $0x8] sm:$0xff] }
  0x2f   :  { %476 = vmatpush.msrb.mxu2 %v198_v0  ;;  %v252_v7 = vld [vmem:[#allocation3 + $0x3a0] sm:$0xff]  ;;  %499 = vmatpush.msrb.mxu3 %v262_v5  ;;  %v154_v45 = vld [vmem:[#allocation3 + $0x90] sm:$0xff] }
  0x30   :  { %362 = vmatpush.msrb.mxu1 %v256_v3  ;;  %v248_v11 = vld [vmem:[#allocation3 + $0x380] sm:$0xff]  ;;  %523 = vmatpush.msrb.mxu0 %v322_v6  ;;  %v222_v46 = vld [vmem:[#allocation3 + $0x2b0] sm:$0xff]  ;;  %v325_v3 = vld [vmem:[#allocation3 + $0x5e8] sm:$0xff] }
  0x31   :  { %477 = vmatpush.msrb.mxu2 %v194_v4  ;;  %500 = vmatpush.msrb.mxu3 %v258_v9  ;;  %v244_v15 = vld [vmem:[#allocation3 + $0x360] sm:$0xff]  ;;  %v282_v47 = vld [vmem:[#allocation3 + $0x490] sm:$0xff]  ;;  %v263_v4 = vld [vmem:[#allocation3 + $0x3f8] sm:$0xff] }
  0x32   :  { %363 = vmatpush.msrb.mxu1 %v252_v7  ;;  %524 = vmatpush.msrb.mxu0 %v318_v10  ;;  %v240_v19 = vld [vmem:[#allocation3 + $0x340] sm:$0xff]  ;;  %v150_v49 = vld [vmem:[#allocation3 + $0x70] sm:$0xff]  ;;  %v321_v7 = vld [vmem:[#allocation3 + $0x5c8] sm:$0xff] }
  0x33   :  { %478 = vmatpush.msrb.mxu2 %v190_v8  ;;  %501 = vmatpush.msrb.mxu3 %v254_v13  ;;  %v236_v23 = vld [vmem:[#allocation3 + $0x320] sm:$0xff]  ;;  %v218_v50 = vld [vmem:[#allocation3 + $0x290] sm:$0xff]  ;;  %v259_v8 = vld [vmem:[#allocation3 + $0x3d8] sm:$0xff] }
  0x34   :  { %364 = vmatpush.msrb.mxu1 %v248_v11  ;;  %525 = vmatpush.msrb.mxu0 %v314_v14  ;;  %v232_v27 = vld [vmem:[#allocation3 + $0x300] sm:$0xff]  ;;  %v278_v51 = vld [vmem:[#allocation3 + $0x470] sm:$0xff]  ;;  %v327_v9 = vld [vmem:[#allocation3 + $0x5f8] sm:$0xff] }
  0x35   :  { %479 = vmatpush.msrb.mxu2 %v186_v12  ;;  %502 = vmatpush.msrb.mxu3 %v250_v17  ;;  %v228_v31 = vld [vmem:[#allocation3 + $0x2e0] sm:$0xff]  ;;  %v146_v53 = vld [vmem:[#allocation3 + $0x50] sm:$0xff]  ;;  %v317_v11 = vld [vmem:[#allocation3 + $0x5a8] sm:$0xff] }
  0x36   :  { %365 = vmatpush.msrb.mxu1 %v244_v15  ;;  %526 = vmatpush.msrb.mxu0 %v310_v18  ;;  %v224_v36 = vld [vmem:[#allocation3 + $0x2c0] sm:$0xff]  ;;  %v214_v55 = vld [vmem:[#allocation3 + $0x270] sm:$0xff]  ;;  %v255_v12 = vld [vmem:[#allocation3 + $0x3b8] sm:$0xff] }
  0x37   :  { %480 = vmatpush.msrb.mxu2 %v182_v16  ;;  %503 = vmatpush.msrb.mxu3 %v246_v21  ;;  %v220_v40 = vld [vmem:[#allocation3 + $0x2a0] sm:$0xff]  ;;  %v274_v56 = vld [vmem:[#allocation3 + $0x450] sm:$0xff]  ;;  %v323_v13 = vld [vmem:[#allocation3 + $0x5d8] sm:$0xff] }
  0x38   :  { %366 = vmatpush.msrb.mxu1 %v240_v19  ;;  %527 = vmatpush.msrb.mxu0 %v306_v22  ;;  %v216_v44 = vld [vmem:[#allocation3 + $0x280] sm:$0xff]  ;;  %v142_v57 = vld [vmem:[#allocation3 + $0x30] sm:$0xff]  ;;  %v313_v15 = vld [vmem:[#allocation3 + $0x588] sm:$0xff] }
  0x39   :  { %481 = vmatpush.msrb.mxu2 %v178_v20  ;;  %504 = vmatpush.msrb.mxu3 %v242_v25  ;;  %v212_v48 = vld [vmem:[#allocation3 + $0x260] sm:$0xff]  ;;  %v210_v59 = vld [vmem:[#allocation3 + $0x250] sm:$0xff]  ;;  %v251_v16 = vld [vmem:[#allocation3 + $0x398] sm:$0xff] }
  0x3a   :  { %367 = vmatpush.msrb.mxu1 %v236_v23  ;;  %528 = vmatpush.msrb.mxu0 %v302_v26  ;;  %v208_v54 = vld [vmem:[#allocation3 + $0x240] sm:$0xff]  ;;  %v270_v60 = vld [vmem:[#allocation3 + $0x430] sm:$0xff]  ;;  %v319_v17 = vld [vmem:[#allocation3 + $0x5b8] sm:$0xff] }
  0x3b   :  { %482 = vmatpush.msrb.mxu2 %v174_v24  ;;  %505 = vmatpush.msrb.mxu3 %v238_v29  ;;  %v204_v58 = vld [vmem:[#allocation3 + $0x220] sm:$0xff]  ;;  %v138_v0 = vld [vmem:[#allocation3 + $0x10] sm:$0xff]  ;;  %v309_v19 = vld [vmem:[#allocation3 + $0x568] sm:$0xff] }
  0x3c   :  { %368 = vmatpush.msrb.mxu1 %v232_v27  ;;  %529 = vmatpush.msrb.mxu0 %v298_v30  ;;  %v2413_v61 = vld [vmem:[%s3385_s0 + $0x10] sm:$0xff]  ;;  %v206_v1 = vld [vmem:[#allocation3 + $0x230] sm:$0xff]  ;;  %v247_v21 = vld [vmem:[#allocation3 + $0x378] sm:$0xff] }
  0x3d   :  { %483 = vmatpush.msrb.mxu2 %v170_v28  ;;  %506 = vmatpush.msrb.mxu3 %v234_v33  ;;  %v200_v62 = vld [vmem:[#allocation3 + $0x200] sm:$0xff]  ;;  %v266_v2 = vld [vmem:[#allocation3 + $0x410] sm:$0xff]  ;;  %v315_v22 = vld [vmem:[#allocation3 + $0x598] sm:$0xff] }
  0x3e   :  { %369 = vmatpush.msrb.mxu1 %v228_v31  ;;  %530 = vmatpush.msrb.mxu0 %v294_v34  ;;  %v2422_v5 = vld [vmem:[#allocation6 + $0x1e0] sm:$0xff]  ;;  %v202_v6 = vld [vmem:[#allocation3 + $0x210] sm:$0xff]  ;;  %v305_v24 = vld [vmem:[#allocation3 + $0x548] sm:$0xff] }
  0x3f   :  { %484 = vmatpush.msrb.mxu2 %v166_v32  ;;  %354 = vmatmul.f32.vlgmr.msra.gmra.mxu1 %v2401_v35  ;;  %v2426_v10 = vld [vmem:[#allocation6 + $0x1c0] sm:$0xff]  ;;  %v2438_v20 = vld [vmem:[%s3385_s0 + $0x20] sm:$0xff]  ;;  %v243_v25 = vld [vmem:[#allocation3 + $0x358] sm:$0xff] }
  0x40   :  { %370 = vmatpush.msrb.mxu1 %v224_v36  ;;  %507 = vmatpush.msrb.mxu3 %v230_v38  ;;  %v2429_v14 = vld [vmem:[#allocation6 + $0x1a0] sm:$0xff]  ;;  %v311_v26 = vld [vmem:[#allocation3 + $0x578] sm:$0xff]  ;;  %v301_v28 = vld [vmem:[#allocation3 + $0x528] sm:$0xff] }
  0x41   :  { %485 = vmatpush.msrb.mxu2 %v162_v37  ;;  %531 = vmatpush.msrb.mxu0 %v290_v39  ;;  %v2432_v18 = vld [vmem:[#allocation6 + $0x180] sm:$0xff]  ;;  %v239_v29 = vld [vmem:[#allocation3 + $0x338] sm:$0xff]  ;;  %v297_v32 = vld [vmem:[#allocation3 + $0x508] sm:$0xff] }
  0x42   :  { %371 = vmatpush.msrb.mxu1 %v220_v40  ;;  %508 = vmatpush.msrb.mxu3 %v226_v42  ;;  %v2440_v23 = vld [vmem:[#allocation6 + $0x160] sm:$0xff]  ;;  %v307_v30 = vld [vmem:[#allocation3 + $0x558] sm:$0xff]  ;;  %v293_v37 = vld [vmem:[#allocation3 + $0x4e8] sm:$0xff] }
  0x43   :  { %486 = vmatpush.msrb.mxu2 %v158_v41  ;;  %532 = vmatpush.msrb.mxu0 %v286_v43  ;;  %v2444_v27 = vld [vmem:[#allocation6 + $0x140] sm:$0xff]  ;;  %v235_v33 = vld [vmem:[#allocation3 + $0x318] sm:$0xff]  ;;  %v289_v41 = vld [vmem:[#allocation3 + $0x4c8] sm:$0xff] }
  0x44   :  { %372 = vmatpush.msrb.mxu1 %v216_v44  ;;  %509 = vmatpush.msrb.mxu3 %v222_v46  ;;  %v2447_v31 = vld [vmem:[#allocation6 + $0x120] sm:$0xff]  ;;  %v303_v34 = vld [vmem:[#allocation3 + $0x538] sm:$0xff] }
  0x45   :  { %487 = vmatpush.msrb.mxu2 %v154_v45  ;;  %533 = vmatpush.msrb.mxu0 %v282_v47  ;;  %v2450_v36 = vld [vmem:[#allocation6 + $0x100] sm:$0xff]  ;;  %v231_v38 = vld [vmem:[#allocation3 + $0x2f8] sm:$0xff]  ;;  %v285_v45 = vld [vmem:[#allocation3 + $0x4a8] sm:$0xff] }
  0x46   :  { %373 = vmatpush.msrb.mxu1 %v212_v48  ;;  %510 = vmatpush.msrb.mxu3 %v218_v50  ;;  %v299_v39 = vld [vmem:[#allocation3 + $0x518] sm:$0xff]  ;;  %v2454_v40 = vld [vmem:[#allocation6 + $0xe0] sm:$0xff]  ;;  %v281_v50 = vld [vmem:[#allocation3 + $0x488] sm:$0xff] }
  0x47   :  { %488 = vmatpush.msrb.mxu2 %v150_v49  ;;  %534 = vmatpush.msrb.mxu0 %v278_v51  ;;  %v227_v42 = vld [vmem:[#allocation3 + $0x2d8] sm:$0xff]  ;;  %v2457_v44 = vld [vmem:[#allocation6 + $0xc0] sm:$0xff] }
  0x48   :  { %357 = vmatmul.f32.gmra.mxu1 %v2407_v52  ;;  %511 = vmatpush.msrb.mxu3 %v214_v55  ;;  %v295_v43 = vld [vmem:[#allocation3 + $0x4f8] sm:$0xff]  ;;  %v2460_v48 = vld [vmem:[#allocation6 + $0xa0] sm:$0xff]  ;;  %v277_v55 = vld [vmem:[#allocation3 + $0x468] sm:$0xff] }
  0x49   :  { %489 = vmatpush.msrb.mxu2 %v146_v53  ;;  %374 = vmatpush.msrb.mxu1 %v208_v54  ;;  %v223_v46 = vld [vmem:[#allocation3 + $0x2b8] sm:$0xff]  ;;  %3492 = vst [vmem:[#allocation15_spill] sm:$0xff] %v2460_v48  ;;  %v2468_v54 = vld [vmem:[#allocation6 + $0x80] sm:$0xff] }
  0x4a   :  { %535 = vmatpush.msrb.mxu0 %v274_v56  ;;  %512 = vmatpush.msrb.mxu3 %v210_v59  ;;  %v291_v47 = vld [vmem:[#allocation3 + $0x4d8] sm:$0xff]  ;;  %3493 = vst [vmem:[#allocation16_spill] sm:$0xff] %v2468_v54 }
  0x4b   :  { %490 = vmatpush.msrb.mxu2 %v142_v57  ;;  %375 = vmatpush.msrb.mxu1 %v204_v58  ;;  %v2465_v49 = vld [vmem:[%s3385_s0 + $0x28] sm:$0xff]  ;;  %v2473_v58 = vld [vmem:[#allocation6 + $0x60] sm:$0xff] }
  0x4c   :  { %536 = vmatpush.msrb.mxu0 %v270_v60  ;;  %400 = vmatmul.f32.vlgmr.msra.gmra.mxu2 %v2413_v61  ;;  %v219_v51 = vld [vmem:[#allocation3 + $0x298] sm:$0xff]  ;;  %3494 = vst [vmem:[#allocation17_spill] sm:$0xff] %v2473_v58  ;;  %v273_v60 = vld [vmem:[#allocation3 + $0x448] sm:$0xff] }
  0x4d   :  { %376 = vmatpush.msrb.mxu1 %v200_v62  ;;  %446 = vmatmul.f32.vlgmr.msra.gmra.mxu0 %v2418_v63  ;;  %v287_v53 = vld [vmem:[#allocation3 + $0x4b8] sm:$0xff] }
  0x4e   :  { %491 = vmatpush.msrb.mxu2 %v138_v0  ;;  %513 = vmatpush.msrb.mxu3 %v206_v1  ;;  %v215_v56 = vld [vmem:[#allocation3 + $0x278] sm:$0xff]  ;;  %v2478_v0 = vld [vmem:[#allocation6 + $0x40] sm:$0xff] }
  0x4f   :  { %537 = vmatpush.msrb.mxu0 %v266_v2  ;;  %453 = vmatpush.msra.mxu1 %v325_v3  ;;  %v283_v57 = vld [vmem:[#allocation3 + $0x498] sm:$0xff]  ;;  %3495 = vst [vmem:[#allocation18_spill] sm:$0xff] %v2478_v0  ;;  %v269_v2 = vld [vmem:[#allocation3 + $0x428] sm:$0xff] }
  0x50   :  { %568 = vmatpush.msra.mxu2 %v263_v4  ;;  %514 = vmatpush.msrb.mxu3 %v202_v6  ;;  %v211_v59 = vld [vmem:[#allocation3 + $0x258] sm:$0xff]  ;;  %v2481_v4 = vld [vmem:[#allocation6 + $0x20] sm:$0xff]  ;;  %v265_v6 = vld [vmem:[#allocation3 + $0x408] sm:$0xff] }
  0x51   :  { %616 = vmatpush.msra.mxu0 %v2422_v5  ;;  %377 = vmatmul.f32.vlgmr.msrb.gmra.mxu1 %v2418_v63  ;;  %v279_v62 = vld [vmem:[#allocation3 + $0x478] sm:$0xff]  ;;  %3496 = vst [vmem:[#allocation19_spill] sm:$0xff] %v2481_v4 }
  0x52   :  { %423 = vmatmul.f32.vlgmr.msra.gmra.mxu3 %v2401_v35  ;;  %454 = vmatpush.msra.mxu1 %v321_v7  ;;  %v207_v1 = vld [vmem:[#allocation3 + $0x238] sm:$0xff] }
  0x53   :  { %569 = vmatpush.msra.mxu2 %v259_v8  ;;  %591 = vmatpush.msra.mxu3 %v327_v9  ;;  %v275_v3 = vld [vmem:[#allocation3 + $0x458] sm:$0xff]  ;;  %v2484_v9 = vld [vmem:[#allocation6] sm:$0xff] }
  0x54   :  { %617 = vmatpush.msra.mxu0 %v2426_v10  ;;  %455 = vmatpush.msra.mxu1 %v317_v11  ;;  %v203_v7 = vld [vmem:[#allocation3 + $0x218] sm:$0xff]  ;;  %3497 = vst [vmem:[#allocation20_spill] sm:$0xff] %v2484_v9 }
  0x55   :  { %570 = vmatpush.msra.mxu2 %v255_v12  ;;  %592 = vmatpush.msra.mxu3 %v323_v13  ;;  %v271_v8 = vld [vmem:[#allocation3 + $0x438] sm:$0xff]  ;;  %v2491_v12 = vld [vmem:[%s3389_s4] sm:$0x3] }
  0x56   :  { %618 = vmatpush.msra.mxu0 %v2429_v14  ;;  %456 = vmatpush.msra.mxu1 %v313_v15  ;;  %v199_v11 = vld [vmem:[#allocation3 + $0x1f8] sm:$0xff]  ;;  %v2493_v13 = vld [vmem:[#allocation6 + $0x1f0] sm:$0xff] }
  0x57   :  { %571 = vmatpush.msra.mxu2 %v251_v16  ;;  %593 = vmatpush.msra.mxu3 %v319_v17  ;;  %v267_v15 = vld [vmem:[#allocation3 + $0x418] sm:$0xff]  ;;  %v2497_v17 = vld [vmem:[#allocation6 + $0x1d0] sm:$0xff] }
  0x58   :  { %619 = vmatpush.msra.mxu0 %v2432_v18  ;;  %457 = vmatpush.msra.mxu1 %v309_v19  ;;  %v195_v16 = vld [vmem:[#allocation3 + $0x1d8] sm:$0xff] }
  0x59   :  { %449 = vmatmul.f32.gmra.mxu0 %v2438_v20  ;;  %572 = vmatpush.msra.mxu2 %v247_v21  ;;  %v2499_v19 = vld [vmem:[#allocation6 + $0x1f8] sm:$0xff] }
  0x5a   :  { %594 = vmatpush.msra.mxu3 %v315_v22  ;;  %620 = vmatpush.msra.mxu0 %v2440_v23  ;;  %v191_v21 = vld [vmem:[#allocation3 + $0x1b8] sm:$0xff]  ;;  %v2503_v22 = vld [vmem:[#allocation6 + $0x1b0] sm:$0xff] }
  0x5b   :  { %458 = vmatpush.msra.mxu1 %v305_v24  ;;  %573 = vmatpush.msra.mxu2 %v243_v25  ;;  %v2505_v24 = vld [vmem:[#allocation6 + $0x1d8] sm:$0xff] }
  0x5c   :  { %595 = vmatpush.msra.mxu3 %v311_v26  ;;  %621 = vmatpush.msra.mxu0 %v2444_v27  ;;  %v187_v25 = vld [vmem:[#allocation3 + $0x198] sm:$0xff]  ;;  %v2509_v26 = vld [vmem:[#allocation6 + $0x190] sm:$0xff] }
  0x5d   :  { %459 = vmatpush.msra.mxu1 %v301_v28  ;;  %574 = vmatpush.msra.mxu2 %v239_v29  ;;  %v2511_v28 = vld [vmem:[#allocation6 + $0x1b8] sm:$0xff] }
  0x5e   :  { %596 = vmatpush.msra.mxu3 %v307_v30  ;;  %622 = vmatpush.msra.mxu0 %v2447_v31  ;;  %v183_v29 = vld [vmem:[#allocation3 + $0x178] sm:$0xff]  ;;  %v2517_v30 = vld [vmem:[#allocation6 + $0x170] sm:$0xff] }
  0x5f   :  { %460 = vmatpush.msra.mxu1 %v297_v32  ;;  %575 = vmatpush.msra.mxu2 %v235_v33  ;;  %v2519_v32 = vld [vmem:[#allocation6 + $0x198] sm:$0xff] }
  0x60   :  { %597 = vmatpush.msra.mxu3 %v303_v34  ;;  %623 = vmatpush.msra.mxu0 %v2450_v36  ;;  %v179_v33 = vld [vmem:[#allocation3 + $0x158] sm:$0xff]  ;;  %v2523_v34 = vld [vmem:[#allocation6 + $0x150] sm:$0xff] }
  0x61   :  { %538 = vmatmul.f32.vlgmr.msrb.gmra.mxu0 %v2413_v61  ;;  %461 = vmatpush.msra.mxu1 %v293_v37  ;;  %v2525_v37 = vld [vmem:[#allocation6 + $0x178] sm:$0xff] }
  0x62   :  { %576 = vmatpush.msra.mxu2 %v231_v38  ;;  %598 = vmatpush.msra.mxu3 %v299_v39  ;;  %v175_v38 = vld [vmem:[#allocation3 + $0x138] sm:$0xff]  ;;  %v2531_v39 = vld [vmem:[#allocation6 + $0x130] sm:$0xff] }
  0x63   :  { %624 = vmatpush.msra.mxu0 %v2454_v40  ;;  %462 = vmatpush.msra.mxu1 %v289_v41  ;;  %v2533_v41 = vld [vmem:[#allocation6 + $0x158] sm:$0xff] }
  0x64   :  { %577 = vmatpush.msra.mxu2 %v227_v42  ;;  %599 = vmatpush.msra.mxu3 %v295_v43  ;;  %v171_v42 = vld [vmem:[#allocation3 + $0x118] sm:$0xff]  ;;  %v2537_v43 = vld [vmem:[#allocation6 + $0x110] sm:$0xff] }
  0x65   :  { %625 = vmatpush.msra.mxu0 %v2457_v44  ;;  %463 = vmatpush.msra.mxu1 %v285_v45  ;;  %v2539_v45 = vld [vmem:[#allocation6 + $0x138] sm:$0xff] }
  0x66   :  { %578 = vmatpush.msra.mxu2 %v223_v46  ;;  %600 = vmatpush.msra.mxu3 %v291_v47  ;;  %v167_v46 = vld [vmem:[#allocation3 + $0xf8] sm:$0xff]  ;;  %v2545_v47 = vld [vmem:[#allocation6 + $0xf0] sm:$0xff] }
  0x67   :  { %626 = vmatpush.msra.mxu0 %v2460_v48  ;;  %403 = vmatmul.f32.gmra.mxu2 %v2465_v49 }
  0x68   :  { %464 = vmatpush.msra.mxu1 %v281_v50  ;;  %579 = vmatpush.msra.mxu2 %v219_v51  ;;  %v2549_v50 = vld [vmem:[#allocation6 + $0x118] sm:$0xff] }
  0x69   :  { %601 = vmatpush.msra.mxu3 %v287_v53  ;;  %627 = vmatpush.msra.mxu0 %v2468_v54  ;;  %v163_v51 = vld [vmem:[#allocation3 + $0xd8] sm:$0xff]  ;;  %v2554_v53 = vld [vmem:[#allocation6 + $0xd0] sm:$0xff] }
  0x6a   :  { %541 = vmatmul.f32.gmra.mxu0 %v2465_v49  ;;  %426 = vmatmul.f32.gmra.mxu3 %v2407_v52 }
  0x6b   :  { %465 = vmatpush.msra.mxu1 %v277_v55  ;;  %580 = vmatpush.msra.mxu2 %v215_v56  ;;  %v159_v55 = vld [vmem:[#allocation3 + $0xb8] sm:$0xff]  ;;  %v2561_v56 = vld [vmem:[#allocation6 + $0xb0] sm:$0xff] }
  0x6c   :  { %602 = vmatpush.msra.mxu3 %v283_v57  ;;  %628 = vmatpush.msra.mxu0 %v2473_v58  ;;  %3498 = vst [vmem:[#allocation21_spill] sm:$0xff] %v2561_v56  ;;  %v2563_v57 = vld [vmem:[#allocation6 + $0xd8] sm:$0xff] }
  0x6d   :  { %380 = vmatmul.f32.gmra.mxu1 %v2438_v20  ;;  %581 = vmatpush.msra.mxu2 %v211_v59  ;;  %v155_v59 = vld [vmem:[#allocation3 + $0x98] sm:$0xff] }
  0x6e   :  { %466 = vmatpush.msra.mxu1 %v273_v60  ;;  %603 = vmatpush.msra.mxu3 %v279_v62  ;;  %v2567_v60 = vld [vmem:[#allocation6 + $0x90] sm:$0xff]  ;;  %v2569_v62 = vld [vmem:[#allocation6 + $0xb8] sm:$0xff] }
  0x6f   :  { %629 = vmatpush.msra.mxu0 %v2478_v0  ;;  %582 = vmatpush.msra.mxu2 %v207_v1  ;;  %3499 = vst [vmem:[#allocation22_spill] sm:$0xff] %v2567_v60  ;;  %v2575_v1 = vld [vmem:[#allocation6 + $0x70] sm:$0xff] }
  0x70   :  { %467 = vmatpush.msra.mxu1 %v269_v2  ;;  %604 = vmatpush.msra.mxu3 %v275_v3  ;;  %3500 = vst [vmem:[#allocation23_spill] sm:$0xff] %v2569_v62  ;;  %v2577_v2 = vld [vmem:[#allocation6 + $0x98] sm:$0xff] }
  0x71   :  { %630 = vmatpush.msra.mxu0 %v2481_v4  ;;  %492 = vmatmul.f32.vlgmr.msrb.gmra.mxu2 %v2401_v35  ;;  %3501 = vst [vmem:[#allocation24_spill] sm:$0xff] %v2575_v1  ;;  %v147_v3 = vld [vmem:[#allocation3 + $0x58] sm:$0xff] }
  0x72   :  { %468 = vmatpush.msra.mxu1 %v265_v6  ;;  %583 = vmatpush.msra.mxu2 %v203_v7  ;;  %3502 = vst [vmem:[#allocation25_spill] sm:$0xff] %v2577_v2  ;;  %v2581_v6 = vld [vmem:[#allocation6 + $0x50] sm:$0xff]  ;;  %v2586_v7 = vld [vmem:[#allocation6 + $0x78] sm:$0xff] }
  0x73   :  { %605 = vmatpush.msra.mxu3 %v271_v8  ;;  %631 = vmatpush.msra.mxu0 %v2484_v9  ;;  %3503 = vst [vmem:[#allocation26_spill] sm:$0xff] %v2581_v6  ;;  %v2590_v8 = vld [vmem:[#allocation6 + $0x30] sm:$0xff] }
  0x74   :  { %545 = vmatpush.msrb.mxu1 %v199_v11  ;;  %632 = vmatmul.f32.vlgmr.msra.gmra.mxu0 %v2491_v12  ;;  %3504 = vst [vmem:[#allocation27_spill] sm:$0xff] %v2586_v7  ;;  %v2593_v11 = vld [vmem:[#allocation6 + $0x58] sm:$0xff] }
  0x75   :  { %656 = vmatpush.msrb.mxu2 %v2493_v13  ;;  %515 = vmatmul.f32.vlgmr.msrb.gmra.mxu3 %v2418_v63  ;;  %3505 = vst [vmem:[#allocation28_spill] sm:$0xff] %v2590_v8 }
  0x76   :  { %606 = vmatpush.msra.mxu3 %v267_v15  ;;  %546 = vmatpush.msrb.mxu1 %v195_v16  ;;  %3506 = vst [vmem:[#allocation29_spill] sm:$0xff] %v2593_v11  ;;  %v139_v15 = vld [vmem:[#allocation3 + $0x18] sm:$0xff]  ;;  %v2596_v16 = vld [vmem:[#allocation6 + $0x10] sm:$0xff] }
  0x77   :  { %657 = vmatpush.msrb.mxu2 %v2497_v17  ;;  %764 = vmatpush.msrb.mxu0 %v2422_v5  ;;  %3507 = vst [vmem:[#allocation30_spill] sm:$0xff] %v2596_v16 }
  0x78   :  { %676 = vmatpush.msrb.mxu3 %v2499_v19  ;;  %547 = vmatpush.msrb.mxu1 %v191_v21  ;;  %v2600_v21 = vld [vmem:[#allocation6 + $0x38] sm:$0xff] }
  0x79   :  { %658 = vmatpush.msrb.mxu2 %v2503_v22  ;;  %765 = vmatpush.msrb.mxu0 %v2426_v10  ;;  %3508 = vst [vmem:[#allocation31_spill] sm:$0xff] %v2600_v21 }
  0x7a   :  { %677 = vmatpush.msrb.mxu3 %v2505_v24  ;;  %548 = vmatpush.msrb.mxu1 %v187_v25  ;;  %v2607_v25 = vld [vmem:[#allocation6 + $0x18] sm:$0xff] }
  0x7b   :  { %495 = vmatmul.f32.gmra.mxu2 %v2407_v52  ;;  %766 = vmatpush.msrb.mxu0 %v2429_v14  ;;  %3509 = vst [vmem:[#allocation32_spill] sm:$0xff] %v2607_v25 }
  0x7c   :  { %659 = vmatpush.msrb.mxu2 %v2509_v26  ;;  %678 = vmatpush.msrb.mxu3 %v2511_v28 }
  0x7d   :  { %549 = vmatpush.msrb.mxu1 %v183_v29  ;;  %518 = vmatmul.f32.gmra.mxu3 %v2438_v20  ;;  %v2611_v29 = vld [vmem:[#allocation6 + $0x1c8] sm:$0xff] }
  0x7e   :  { %660 = vmatpush.msrb.mxu2 %v2517_v30  ;;  %679 = vmatpush.msrb.mxu3 %v2519_v32 }
  0x7f   :  { %550 = vmatpush.msrb.mxu1 %v179_v33  ;;  %767 = vmatpush.msrb.mxu0 %v2432_v18  ;;  %v2617_v33 = vld [vmem:[#allocation6 + $0x1a8] sm:$0xff] }
  0x80   :  { %661 = vmatpush.msrb.mxu2 %v2523_v34  ;;  %680 = vmatpush.msrb.mxu3 %v2525_v37 }
  0x81   :  { %551 = vmatpush.msrb.mxu1 %v175_v38  ;;  %768 = vmatpush.msrb.mxu0 %v2440_v23  ;;  %v2621_v38 = vld [vmem:[#allocation6 + $0x188] sm:$0xff] }
  0x82   :  { %662 = vmatpush.msrb.mxu2 %v2531_v39  ;;  %681 = vmatpush.msrb.mxu3 %v2533_v41 }
  0x83   :  { %552 = vmatpush.msrb.mxu1 %v171_v42  ;;  %584 = vmatmul.f32.vlgmr.msra.gmra.mxu2 %v2418_v63  ;;  %v2556_v63 = vld [vmem:[#allocation6 + $0xf8] sm:$0xff]  ;;  %v2627_v42 = vld [vmem:[#allocation6 + $0x168] sm:$0xff] }
  0x84   :  { %663 = vmatpush.msrb.mxu2 %v2537_v43  ;;  %682 = vmatpush.msrb.mxu3 %v2539_v45 }
  0x85   :  { %469 = vmatmul.f32.vlgmr.msra.gmra.mxu1 %v2413_v61  ;;  %607 = vmatmul.f32.vlgmr.msra.gmra.mxu3 %v2413_v61  ;;  %v151_v61 = vld [vmem:[#allocation3 + $0x78] sm:$0xff] }
  0x86   :  { %553 = vmatpush.msrb.mxu1 %v167_v46  ;;  %664 = vmatpush.msrb.mxu2 %v2545_v47  ;;  %v2639_v46 = vld [vmem:[#allocation6 + $0x128] sm:$0xff] }
  0x87   :  { %683 = vmatpush.msrb.mxu3 %v2549_v50  ;;  %769 = vmatpush.msrb.mxu0 %v2444_v27 }
  0x88   :  { %554 = vmatpush.msrb.mxu1 %v163_v51  ;;  %665 = vmatpush.msrb.mxu2 %v2554_v53  ;;  %v2645_v51 = vld [vmem:[#allocation6 + $0x108] sm:$0xff] }
  0x89   :  { %684 = vmatpush.msrb.mxu3 %v2556_v63  ;;  %770 = vmatpush.msrb.mxu0 %v2447_v31 }
  0x8a   :  { %555 = vmatpush.msrb.mxu1 %v159_v55  ;;  %666 = vmatpush.msrb.mxu2 %v2561_v56  ;;  %v2651_v55 = vld [vmem:[#allocation6 + $0xe8] sm:$0xff] }
  0x8b   :  { %685 = vmatpush.msrb.mxu3 %v2563_v57  ;;  %587 = vmatmul.f32.gmra.mxu2 %v2438_v20  ;;  %v143_v20 = vld [vmem:[#allocation3 + $0x38] sm:$0xff] }
  0x8c   :  { %556 = vmatpush.msrb.mxu1 %v155_v59  ;;  %667 = vmatpush.msrb.mxu2 %v2567_v60  ;;  %v2663_v59 = vld [vmem:[#allocation6 + $0xa8] sm:$0xff] }
  0x8d   :  { %686 = vmatpush.msrb.mxu3 %v2569_v62  ;;  %472 = vmatmul.f32.gmra.mxu1 %v2465_v49  ;;  %3510 = vst [vmem:[#allocation33_spill] sm:$0xff] %v2663_v59 }
  0x8e   :  { %557 = vmatpush.msrb.mxu1 %v151_v61  ;;  %668 = vmatpush.msrb.mxu2 %v2575_v1  ;;  %v2669_v61 = vld [vmem:[#allocation6 + $0x88] sm:$0xff] }
  0x8f   :  { %687 = vmatpush.msrb.mxu3 %v2577_v2  ;;  %771 = vmatpush.msrb.mxu0 %v2450_v36  ;;  %3511 = vst [vmem:[#allocation34_spill] sm:$0xff] %v2669_v61 }
  0x90   :  { %610 = vmatmul.f32.gmra.mxu3 %v2465_v49  ;;  %558 = vmatpush.msrb.mxu1 %v147_v3  ;;  %v2602_v49 = vld [vmem:[#allocation6 + $0x1e8] sm:$0xff] }
  0x91   :  { %669 = vmatpush.msrb.mxu2 %v2581_v6  ;;  %688 = vmatpush.msrb.mxu3 %v2586_v7  ;;  %v2675_v3 = vld [vmem:[#allocation6 + $0x68] sm:$0xff] }
  0x92   :  { %559 = vmatpush.msrb.mxu1 %v143_v20  ;;  %772 = vmatpush.msrb.mxu0 %v2454_v40  ;;  %3512 = vst [vmem:[#allocation35_spill] sm:$0xff] %v2675_v3 }
  0x93   :  { %670 = vmatpush.msrb.mxu2 %v2590_v8  ;;  %689 = vmatpush.msrb.mxu3 %v2593_v11 }
  0x94   :  { %560 = vmatpush.msrb.mxu1 %v139_v15  ;;  %773 = vmatpush.msrb.mxu0 %v2457_v44 }
  0x95   :  { %671 = vmatpush.msrb.mxu2 %v2596_v16  ;;  %690 = vmatpush.msrb.mxu3 %v2600_v21 }
  0x96   :  { %636 = vmatpush.msra.mxu1 %v2602_v49  ;;  %672 = vmatmul.f32.vlgmr.msrb.gmra.mxu2 %v2491_v12 }
  0x97   :  { %691 = vmatpush.msrb.mxu3 %v2607_v25  ;;  %561 = vmatmul.f32.vlgmr.msrb.gmra.mxu1 %v2401_v35  ;;  %v2633_v35 = vld [vmem:[#allocation6 + $0x148] sm:$0xff] }
  0x98   :  { %637 = vmatpush.msra.mxu1 %v2611_v29  ;;  %692 = vmatmul.f32.vlgmr.msrb.gmra.mxu3 %v2491_v12 }
  0x99   :  { %804 = vmatpush.msra.mxu2 %v2493_v13  ;;  %824 = vmatpush.msra.mxu3 %v2499_v19 }
  0x9a   :  { %638 = vmatpush.msra.mxu1 %v2617_v33  ;;  %774 = vmatpush.msrb.mxu0 %v2460_v48 }
  0x9b   :  { %805 = vmatpush.msra.mxu2 %v2497_v17  ;;  %825 = vmatpush.msra.mxu3 %v2505_v24 }
  0x9c   :  { %639 = vmatpush.msra.mxu1 %v2621_v38  ;;  %775 = vmatpush.msrb.mxu0 %v2468_v54 }
  0x9d   :  { %806 = vmatpush.msra.mxu2 %v2503_v22  ;;  %826 = vmatpush.msra.mxu3 %v2511_v28 }
  0x9e   :  { %640 = vmatpush.msra.mxu1 %v2627_v42  ;;  %776 = vmatpush.msrb.mxu0 %v2473_v58 }
  0x9f   :  { %564 = vmatmul.f32.gmra.mxu1 %v2407_v52  ;;  %807 = vmatpush.msra.mxu2 %v2509_v26  ;;  %v2657_v52 = vld [vmem:[#allocation6 + $0xc8] sm:$0xff] }
  0xa0   :  { %641 = vmatpush.msra.mxu1 %v2633_v35  ;;  %827 = vmatpush.msra.mxu3 %v2519_v32 }
  0xa1   :  { %808 = vmatpush.msra.mxu2 %v2517_v30  ;;  %777 = vmatpush.msrb.mxu0 %v2478_v0 }
  0xa2   :  { %642 = vmatpush.msra.mxu1 %v2639_v46  ;;  %828 = vmatpush.msra.mxu3 %v2525_v37 }
  0xa3   :  { %809 = vmatpush.msra.mxu2 %v2523_v34  ;;  %778 = vmatpush.msrb.mxu0 %v2481_v4 }
  0xa4   :  { %643 = vmatpush.msra.mxu1 %v2645_v51  ;;  %829 = vmatpush.msra.mxu3 %v2533_v41 }
  0xa5   :  { %810 = vmatpush.msra.mxu2 %v2531_v39  ;;  %779 = vmatpush.msrb.mxu0 %v2484_v9 }
  0xa6   :  { %644 = vmatpush.msra.mxu1 %v2651_v55  ;;  %830 = vmatpush.msra.mxu3 %v2539_v45 }
  0xa7   :  { %811 = vmatpush.msra.mxu2 %v2537_v43  ;;  %930 = vmatpush.msra.mxu0 %v2422_v5  ;;  %v2681_v5 = vld [vmem:[#allocation6 + $0x48] sm:$0xff] }
  0xa8   :  { %645 = vmatpush.msra.mxu1 %v2657_v52  ;;  %831 = vmatpush.msra.mxu3 %v2549_v50  ;;  %3513 = vst [vmem:[#allocation36_spill] sm:$0xff] %v2681_v5 }
  0xa9   :  { %812 = vmatpush.msra.mxu2 %v2545_v47  ;;  %931 = vmatpush.msra.mxu0 %v2426_v10  ;;  %v2687_v10 = vld [vmem:[#allocation6 + $0x28] sm:$0xff] }
  0xaa   :  { %646 = vmatpush.msra.mxu1 %v2663_v59  ;;  %832 = vmatpush.msra.mxu3 %v2556_v63  ;;  %3514 = vst [vmem:[#allocation37_spill] sm:$0xff] %v2687_v10 }
  0xab   :  { %813 = vmatpush.msra.mxu2 %v2554_v53  ;;  %932 = vmatpush.msra.mxu0 %v2429_v14  ;;  %v2693_v14 = vld [vmem:[#allocation6 + $0x8] sm:$0xff] }
  0xac   :  { %647 = vmatpush.msra.mxu1 %v2669_v61  ;;  %833 = vmatpush.msra.mxu3 %v2563_v57  ;;  %3515 = vst [vmem:[#allocation38_spill] sm:$0xff] %v2693_v14 }
  0xad   :  { %814 = vmatpush.msra.mxu2 %v2561_v56  ;;  %933 = vmatpush.msra.mxu0 %v2432_v18 }
  0xae   :  { %648 = vmatpush.msra.mxu1 %v2675_v3  ;;  %834 = vmatpush.msra.mxu3 %v2569_v62 }
  0xaf   :  { %815 = vmatpush.msra.mxu2 %v2567_v60  ;;  %934 = vmatpush.msra.mxu0 %v2440_v23  ;;  %v2732_v23 = vld [vmem:[%s3388_s3] sm:$0xf] }
  0xb0   :  { %649 = vmatpush.msra.mxu1 %v2681_v5  ;;  %835 = vmatpush.msra.mxu3 %v2577_v2 }
  0xb1   :  { %816 = vmatpush.msra.mxu2 %v2575_v1  ;;  %935 = vmatpush.msra.mxu0 %v2444_v27  ;;  %v3396_v27 = vperm.slane %v2732_v23, 0 }
  0xb2   :  { %650 = vmatpush.msra.mxu1 %v2687_v10  ;;  %836 = vmatpush.msra.mxu3 %v2586_v7 }
  0xb3   :  { %817 = vmatpush.msra.mxu2 %v2581_v6  ;;  %936 = vmatpush.msra.mxu0 %v2447_v31 }
  0xb4   :  { %651 = vmatpush.msra.mxu1 %v2693_v14  ;;  %837 = vmatpush.msra.mxu3 %v2593_v11 }
  0xb5   :  { %652 = vmatmul.f32.vlgmr.msra.gmra.mxu1 %v2491_v12  ;;  %818 = vmatpush.msra.mxu2 %v2590_v8 }
  0xb6   :  { %784 = vmatpush.msrb.mxu1 %v2602_v49  ;;  %838 = vmatpush.msra.mxu3 %v2600_v21 }
  0xb7   :  { %819 = vmatpush.msra.mxu2 %v2596_v16  ;;  %937 = vmatpush.msra.mxu0 %v2450_v36 }
  0xb8   :  { %785 = vmatpush.msrb.mxu1 %v2611_v29  ;;  %839 = vmatpush.msra.mxu3 %v2607_v25 }
  0xb9   :  { %970 = vmatpush.msrb.mxu2 %v2493_v13  ;;  %938 = vmatpush.msra.mxu0 %v2454_v40 }
  0xba   :  { %990 = vmatpush.msrb.mxu3 %v2499_v19  ;;  %786 = vmatpush.msrb.mxu1 %v2617_v33 }
  0xbb   :  { %971 = vmatpush.msrb.mxu2 %v2497_v17  ;;  %939 = vmatpush.msra.mxu0 %v2457_v44 }
  0xbc   :  { %991 = vmatpush.msrb.mxu3 %v2505_v24  ;;  %v2717_v18 = vpop.f32.mrf.mxu1  ;;  %787 = vmatpush.msrb.mxu1 %v2621_v38 }
  0xbd   :  { %972 = vmatpush.msrb.mxu2 %v2503_v22  ;;  %940 = vmatpush.msra.mxu0 %v2460_v48 }
  0xbe   :  { %992 = vmatpush.msrb.mxu3 %v2511_v28  ;;  %788 = vmatpush.msrb.mxu1 %v2627_v42 }
  0xbf   :  { %973 = vmatpush.msrb.mxu2 %v2509_v26  ;;  %941 = vmatpush.msra.mxu0 %v2468_v54  ;;  %v333_v54 = vperm.slane %v2732_v23, 3 }
  0xc0   :  { %993 = vmatpush.msrb.mxu3 %v2519_v32  ;;  %789 = vmatpush.msrb.mxu1 %v2633_v35 }
  0xc1   :  { %974 = vmatpush.msrb.mxu2 %v2517_v30  ;;  %942 = vmatpush.msra.mxu0 %v2473_v58 }
  0xc2   :  { %994 = vmatpush.msrb.mxu3 %v2525_v37  ;;  %790 = vmatpush.msrb.mxu1 %v2639_v46 }
  0xc3   :  { %975 = vmatpush.msrb.mxu2 %v2523_v34  ;;  %943 = vmatpush.msra.mxu0 %v2478_v0 }
  0xc4   :  { %995 = vmatpush.msrb.mxu3 %v2533_v41  ;;  %791 = vmatpush.msrb.mxu1 %v2645_v51 }
  0xc5   :  { %v358_v31 = vpop.f32.mrf.mxu1  ;;  %976 = vmatpush.msrb.mxu2 %v2531_v39  ;;  %944 = vmatpush.msra.mxu0 %v2481_v4 }
  0xc6   :  { %996 = vmatpush.msrb.mxu3 %v2539_v45  ;;  %v359_v36 = vadd.f32 %v358_v31, %v3396_v27  ;;  %792 = vmatpush.msrb.mxu1 %v2651_v55 }
  0xc7   :  { %977 = vmatpush.msrb.mxu2 %v2537_v43  ;;  %945 = vmatpush.msra.mxu0 %v2484_v9  ;;  %v331_v9 = vperm.slane %v2732_v23, 1 }
  0xc8   :  { %997 = vmatpush.msrb.mxu3 %v2549_v50  ;;  %793 = vmatpush.msrb.mxu1 %v2657_v52 }
  0xc9   :  { %978 = vmatpush.msrb.mxu2 %v2545_v47 }
  0xca   :  { %998 = vmatpush.msrb.mxu3 %v2556_v63  ;;  %794 = vmatpush.msrb.mxu1 %v2663_v59  ;;  %v447_v31 = vpop.f32.mrf.mxu0 }
  0xcb   :  { %979 = vmatpush.msrb.mxu2 %v2554_v53 }
  0xcc   :  { %999 = vmatpush.msrb.mxu3 %v2563_v57  ;;  %795 = vmatpush.msrb.mxu1 %v2669_v61 }
  0xcd   :  { %980 = vmatpush.msrb.mxu2 %v2561_v56 }
  0xce   :  { %1000 = vmatpush.msrb.mxu3 %v2569_v62  ;;  %796 = vmatpush.msrb.mxu1 %v2675_v3  ;;  %v378_v12 = vpop.f32.mrf.mxu1 }
  0xcf   :  { %981 = vmatpush.msrb.mxu2 %v2567_v60  ;;  %v401_v20 = vpop.f32.mrf.mxu2 }
  0xd0   :  { %1001 = vmatpush.msrb.mxu3 %v2577_v2  ;;  %797 = vmatpush.msrb.mxu1 %v2681_v5 }
  0xd1   :  { %982 = vmatpush.msrb.mxu2 %v2575_v1 }
  0xd2   :  { %1002 = vmatpush.msrb.mxu3 %v2586_v7  ;;  %798 = vmatpush.msrb.mxu1 %v2687_v10  ;;  %v332_v7 = vperm.slane %v2732_v23, 2 }
  0xd3   :  { %983 = vmatpush.msrb.mxu2 %v2581_v6 }
  0xd4   :  { %1003 = vmatpush.msrb.mxu3 %v2593_v11  ;;  %799 = vmatpush.msrb.mxu1 %v2693_v14 }
  0xd5   :  { %984 = vmatpush.msrb.mxu2 %v2590_v8  ;;  %v424_v15 = vpop.f32.mrf.mxu3 }
  0xd6   :  { %950 = vmatpush.msra.mxu1 %v2602_v49  ;;  %1004 = vmatpush.msrb.mxu3 %v2600_v21  ;;  %v450_v11 = vpop.f32.mrf.mxu0 }
  0xd7   :  { %985 = vmatpush.msrb.mxu2 %v2596_v16 }
  0xd8   :  { %951 = vmatpush.msra.mxu1 %v2611_v29  ;;  %1005 = vmatpush.msrb.mxu3 %v2607_v25 }
  0xda   :  { %952 = vmatpush.msra.mxu1 %v2617_v33 }
  0xdc   :  { %953 = vmatpush.msra.mxu1 %v2621_v38 }
  0xde   :  { %954 = vmatpush.msra.mxu1 %v2627_v42 }
  0xe0   :  { %955 = vmatpush.msra.mxu1 %v2633_v35 }
  0xe2   :  { %956 = vmatpush.msra.mxu1 %v2639_v46 }
  0xe4   :  { %957 = vmatpush.msra.mxu1 %v2645_v51 }
  0xe6   :  { %958 = vmatpush.msra.mxu1 %v2651_v55 }
  0xe8   :  { %959 = vmatpush.msra.mxu1 %v2657_v52 }
  0xea   :  { %960 = vmatpush.msra.mxu1 %v2663_v59  ;;  %v381_v27 = vpop.f32.mrf.mxu1  ;;  %v404_v25 = vpop.f32.mrf.mxu2 }
  0xeb   :  { %v382_v16 = vadd.f32 %v381_v27, %v359_v36  ;;  %v539_v36 = vpop.f32.mrf.mxu0 }
  0xec   :  { %961 = vmatpush.msra.mxu1 %v2669_v61 }
  0xed   :  { %v2788_v21 = vadd.f32 %v404_v25, %v382_v16  ;;  %v427_v8 = vpop.f32.mrf.mxu3 }
  0xee   :  { %962 = vmatpush.msra.mxu1 %v2675_v3  ;;  %v428_v4 = vadd.f32 %v427_v8, %v331_v9 }
  0xef   :  { %3516 = vst [vmem:[#allocation39_spill] sm:$0xff] %v2788_v21 }
  0xf0   :  { %963 = vmatpush.msra.mxu1 %v2681_v5  ;;  %v451_v6 = vadd.f32 %v450_v11, %v428_v4 }
  0xf2   :  { %964 = vmatpush.msra.mxu1 %v2687_v10 }
  0xf3   :  { %v542_v58 = vpop.f32.mrf.mxu0 }
  0xf4   :  { %965 = vmatpush.msra.mxu1 %v2693_v14  ;;  %v493_v0 = vpop.f32.mrf.mxu2  ;;  %v3519_v14 = vperm.slane %v2732_v23, 0 }
  0xf6   :  { %v356_v60 = vadd.f32 %v2717_v18, %v3519_v14  ;;  %v425_v14 = vadd.f32 %v424_v15, %v331_v9 }
  0xf8   :  { %v516_v27 = vpop.f32.mrf.mxu3  ;;  %v379_v61 = vadd.f32 %v378_v12, %v356_v60  ;;  %v448_v23 = vadd.f32 %v447_v31, %v425_v14 }
  0xfe   :  { %v496_v1 = vpop.f32.mrf.mxu2 }
  0xff   :  { %v497_v16 = vadd.f32 %v496_v1, %v332_v7  ;;  %v633_v1 = vpop.f32.mrf.mxu0 }
 0x100   :  { %v519_v25 = vpop.f32.mrf.mxu3 }
 0x101   :  { %v520_v21 = vadd.f32 %v519_v25, %v497_v16  ;;  %v2803_v16 = vadd.f32 %v401_v20, %v379_v61 }
 0x102   :  { %v470_v3 = vpop.f32.mrf.mxu1 }
 0x103   :  { %v2795_v8 = vadd.f32 %v542_v58, %v520_v21  ;;  %3520 = vst [vmem:[#allocation42_spill] sm:$0xff] %v2803_v16  ;;  %v2811_v20 = vadd.f32 %v470_v3, %v448_v23 }
 0x105   :  { %3517 = vst [vmem:[#allocation40_spill] sm:$0xff] %v2795_v8 }
 0x106   :  { %v585_v11 = vpop.f32.mrf.mxu2  ;;  %3523 = vst [vmem:[#allocation45_spill] sm:$0xff] %v2811_v20 }
 0x108   :  { %v608_v4 = vpop.f32.mrf.mxu3 }
 0x10a   :  { %v473_v2 = vpop.f32.mrf.mxu1 }
 0x10b   :  { %v2797_v5 = vadd.f32 %v473_v2, %v451_v6  ;;  %v696_v2 = vadd.f32 %v633_v1, %v2803_v16 }
 0x10d   :  { %3518 = vst [vmem:[#allocation41_spill] sm:$0xff] %v2797_v5  ;;  %v1996_v59 = vmul.f32 -1.442695, %v696_v2 }
 0x10e   :  { %v588_v21 = vpop.f32.mrf.mxu2 }
 0x10f   :  { %2027 = vpow2.f32 %v1996_v59 }
 0x113   :  { %v611_v25 = vpop.f32.mrf.mxu3 }
 0x114   :  { %v562_v10 = vpop.f32.mrf.mxu1 }
 0x115   :  { %v563_v8 = vadd.f32 %v562_v10, %v333_v54  ;;  %v2028_v61 = vpop.eup %2027 }
 0x117   :  { %v586_v56 = vadd.f32 %v585_v11, %v563_v8 }
 0x119   :  { %v2808_v48 = vadd.f32 %v608_v4, %v586_v56  ;;  %v494_v4 = vadd.f32 %v493_v0, %v332_v7 }
 0x11b   :  { %3522 = vst [vmem:[#allocation44_spill] sm:$0xff] %v2808_v48  ;;  %v693_v60 = vpop.f32.mrf.mxu3  ;;  %v517_v9 = vadd.f32 %v516_v27, %v494_v4 }
 0x11c   :  { %v565_v62 = vpop.f32.mrf.mxu1  ;;  %v699_v18 = vadd.f32 %v693_v60, %v2808_v48 }
 0x11d   :  { %v566_v58 = vadd.f32 %v565_v62, %v333_v54  ;;  %v703_v62 = vadd.f32 1.0, %v2028_v61  ;;  %v2814_v31 = vadd.f32 %v539_v36, %v517_v9  ;;  %v615_v9 = vld [vmem:[%s3390_s5] sm:$0x3] }
 0x11e   :  { %v1998_v12 = vmul.f32 -1.442695, %v699_v18 }
 0x11f   :  { %v589_v6 = vadd.f32 %v588_v21, %v566_v58  ;;  %3524 = vst [vmem:[#allocation46_spill] sm:$0xff] %v2814_v31  ;;  %v673_v58 = vpop.f32.mrf.mxu2  ;;  %vm709_vm1 = vweird.f32 %v703_v62  ;;  %v715_v18 = vand.u32 2147483648, %v703_v62  ;;  %v713_v23 = vand.u32 2147483647, %v703_v62 }
 0x120   :  { %2029 = vpow2.f32 %v1998_v12  ;;  %v698_v21 = vadd.f32 %v673_v58, %v2814_v31 }
 0x121   :  { %v2806_v5 = vadd.f32 %v611_v25, %v589_v6  ;;  %2031 = vrcp.f32 %v703_v62  ;;  %v716_v4 = vor.u32 1.1754944e-38, %v715_v18  ;;  %vm714_vm6 = vcmp.eq.f32.partialorder %v713_v23, 8.507059e+37  ;;  %v2823_v23 = vld [vmem:[#allocation6 + $0x1e0] sm:$0xff] }
 0x123   :  { %3521 = vst [vmem:[#allocation43_spill] sm:$0xff] %v2806_v5 }
 0x126   :  { %v2030_v56 = vpop.eup %2029 }
 0x127   :  { %v2032_v59 = vpop.eup %2031  ;;  %v742_v11 = vadd.f32 1.0, %v2030_v56 }
 0x128   :  { %v705_v1 = vmul.f32 %v2032_v59, %v703_v62  ;;  %vm710_vm0 = vweird.f32 %v2032_v59 }
 0x129   :  { %vm711_vm3 = vmor %vm709_vm1, %vm710_vm0  ;;  %vm748_vm8 = vweird.f32 %v742_v11 }
 0x12a   :  { %v706_v3 = vsub.f32 1.0, %v705_v1 }
 0x12c   :  { %v707_v6 = vmul.f32 %v2032_v59, %v706_v3 }
 0x12e   :  { %v708_v7 = vadd.f32 %v2032_v59, %v707_v6 }
 0x132   :  { %v653_v54 = vpop.f32.mrf.mxu1 }
 0x133   :  { %v697_v10 = vadd.f32 %v653_v54, %v2811_v20 }
 0x135   :  { %v1997_v8 = vmul.f32 -1.442695, %v697_v10  ;;  %v712_v10 = vsel %vm711_vm3, %v2032_v59, %v708_v7  ;;  %v754_v59 = vand.u32 2147483648, %v742_v11 }
 0x136   :  { %v717_v62 = vsel %vm714_vm6, %v716_v4, %v712_v10  ;;  %v3545_v10 = vld [vmem:[#allocation20_spill] sm:$0xff] }
 0x137   :  { %2033 = vpow2.f32 %v1997_v8  ;;  %v755_v7 = vor.u32 1.1754944e-38, %v754_v59  ;;  %v3548_v4 = vld [vmem:[#allocation32_spill] sm:$0xff] }
 0x138   :  { %2035 = vrcp.f32 %v742_v11 }
 0x13d   :  { %v2034_v15 = vpop.eup %2033 }
 0x13e   :  { %v722_v25 = vadd.f32 1.0, %v2034_v15  ;;  %v2036_v2 = vpop.eup %2035 }
 0x13f   :  { %v744_v0 = vmul.f32 %v2036_v2, %v742_v11  ;;  %vm749_vm9 = vweird.f32 %v2036_v2 }
 0x140   :  { %2037 = vrcp.f32 %v722_v25  ;;  %v734_v61 = vand.u32 2147483648, %v722_v25  ;;  %v732_v12 = vand.u32 2147483647, %v722_v25  ;;  %vm728_vm4 = vweird.f32 %v722_v25  ;;  %vm750_vm10 = vmor %vm748_vm8, %vm749_vm9 }
 0x141   :  { %2039 = vtanh.f32 %v698_v21  ;;  %v745_v54 = vsub.f32 1.0, %v744_v0  ;;  %v752_v0 = vand.u32 2147483647, %v742_v11  ;;  %v2829_v11 = vld [vmem:[#allocation6 + $0x1c0] sm:$0xff] }
 0x142   :  { %v735_v15 = vor.u32 1.1754944e-38, %v734_v61  ;;  %vm733_vm7 = vcmp.eq.f32.partialorder %v732_v12, 8.507059e+37  ;;  %v3543_v12 = vld [vmem:[#allocation28_spill] sm:$0xff] }
 0x143   :  { %v746_v3 = vmul.f32 %v2036_v2, %v745_v54  ;;  %vm753_vm11 = vcmp.eq.f32.partialorder %v752_v0, 8.507059e+37  ;;  %v3544_v54 = vld [vmem:[#allocation31_spill] sm:$0xff] }
 0x146   :  { %v2038_v60 = vpop.eup %2037 }
 0x147   :  { %v724_v14 = vmul.f32 %v2038_v60, %v722_v25  ;;  %vm729_vm2 = vweird.f32 %v2038_v60  ;;  %v2040_v56 = vpop.eup %2039 }
 0x148   :  { %vm730_vm5 = vmor %vm728_vm4, %vm729_vm2  ;;  %v759_v21 = vmul.f32 %v2040_v56, %v717_v62  ;;  %v3547_v56 = vld [vmem:[#allocation30_spill] sm:$0xff] }
 0x149   :  { %v725_v27 = vsub.f32 1.0, %v724_v14  ;;  %v747_v14 = vadd.f32 %v2036_v2, %v746_v3 }
 0x14b   :  { %v726_v36 = vmul.f32 %v2038_v60, %v725_v27  ;;  %v751_v27 = vsel %vm750_vm10, %v2036_v2, %v747_v14  ;;  %v2835_v2 = vld [vmem:[#allocation6 + $0x1a0] sm:$0xff] }
 0x14c   :  { %v756_v18 = vsel %vm753_vm11, %v755_v7, %v751_v27 }
 0x14d   :  { %v727_v8 = vadd.f32 %v2038_v60, %v726_v36  ;;  %v3542_v36 = vld [vmem:[#allocation37_spill] sm:$0xff] }
 0x14f   :  { %v731_v1 = vsel %vm730_vm5, %v2038_v60, %v727_v8  ;;  %v3546_v8 = vld [vmem:[#allocation38_spill] sm:$0xff] }
 0x150   :  { %v736_v58 = vsel %vm733_vm7, %v735_v15, %v731_v1 }
 0x151   :  { %v758_v6 = vmul.f32 %v736_v58, %v615_v9 }
 0x153   :  { %v2820_v25 = vadd.f32 %v759_v21, %v758_v6 }
 0x155   :  { %2041 = vtanh.f32 %v2820_v25 }
 0x15b   :  { %v2042_v60 = vpop.eup %2041 }
 0x15c   :  { %v762_v61 = vmul.f32 %v2042_v60, %v756_v18 }
 0x15e   :  { %763 = vst [vmem:[#allocation2] sm:$0x3] %v762_v61  ;;  %780 = vmatmul.f32.vlgmr.msrb.gmra.mxu0 %v762_v61  ;;  %800 = vmatmul.f32.vlgmr.msrb.gmra.mxu1 %v762_v61 }
 0x15f   :  { %820 = vmatmul.f32.vlgmr.msra.gmra.mxu2 %v762_v61  ;;  %840 = vmatmul.f32.vlgmr.msra.gmra.mxu3 %v762_v61 }
 0x160   :  { %1096 = vmatpush.msrb.mxu0 %v2823_v23  ;;  %1116 = vmatpush.msrb.mxu1 %v2602_v49 }
 0x161   :  { %1136 = vmatpush.msra.mxu2 %v2493_v13  ;;  %1156 = vmatpush.msra.mxu3 %v2499_v19  ;;  %v2841_v13 = vld [vmem:[#allocation6 + $0x180] sm:$0xff] }
 0x162   :  { %1097 = vmatpush.msrb.mxu0 %v2829_v11  ;;  %1117 = vmatpush.msrb.mxu1 %v2611_v29  ;;  %v2853_v19 = vld [vmem:[#allocation6 + $0x140] sm:$0xff] }
 0x163   :  { %1137 = vmatpush.msra.mxu2 %v2497_v17  ;;  %1157 = vmatpush.msra.mxu3 %v2505_v24  ;;  %v2847_v17 = vld [vmem:[#allocation6 + $0x160] sm:$0xff] }
 0x164   :  { %1098 = vmatpush.msrb.mxu0 %v2835_v2  ;;  %1118 = vmatpush.msrb.mxu1 %v2617_v33  ;;  %v2865_v24 = vld [vmem:[#allocation6 + $0x100] sm:$0xff] }
 0x165   :  { %1138 = vmatpush.msra.mxu2 %v2503_v22  ;;  %1158 = vmatpush.msra.mxu3 %v2511_v28  ;;  %v2859_v22 = vld [vmem:[#allocation6 + $0x120] sm:$0xff]  ;;  %v3526_v28 = vld [vmem:[#allocation33_spill] sm:$0xff] }
 0x166   :  { %1099 = vmatpush.msrb.mxu0 %v2841_v13  ;;  %1119 = vmatpush.msrb.mxu1 %v2621_v38 }
 0x167   :  { %1139 = vmatpush.msra.mxu2 %v2509_v26  ;;  %1159 = vmatpush.msra.mxu3 %v2519_v32  ;;  %v3525_v26 = vld [vmem:[#allocation15_spill] sm:$0xff]  ;;  %v3529_v32 = vld [vmem:[#allocation16_spill] sm:$0xff] }
 0x168   :  { %1100 = vmatpush.msrb.mxu0 %v2847_v17  ;;  %1120 = vmatpush.msrb.mxu1 %v2627_v42 }
 0x169   :  { %1140 = vmatpush.msra.mxu2 %v2517_v30  ;;  %1160 = vmatpush.msra.mxu3 %v2525_v37  ;;  %v3527_v30 = vld [vmem:[#allocation21_spill] sm:$0xff]  ;;  %v3531_v37 = vld [vmem:[#allocation22_spill] sm:$0xff] }
 0x16a   :  { %1101 = vmatpush.msrb.mxu0 %v2853_v19  ;;  %1121 = vmatpush.msrb.mxu1 %v2633_v35 }
 0x16b   :  { %1141 = vmatpush.msra.mxu2 %v2523_v34  ;;  %1161 = vmatpush.msra.mxu3 %v2533_v41  ;;  %v3530_v34 = vld [vmem:[#allocation34_spill] sm:$0xff]  ;;  %v3534_v41 = vld [vmem:[#allocation35_spill] sm:$0xff] }
 0x16c   :  { %1102 = vmatpush.msrb.mxu0 %v2859_v22  ;;  %1122 = vmatpush.msrb.mxu1 %v2639_v46 }
 0x16d   :  { %1142 = vmatpush.msra.mxu2 %v2531_v39  ;;  %1162 = vmatpush.msra.mxu3 %v2539_v45  ;;  %v3533_v39 = vld [vmem:[#allocation17_spill] sm:$0xff]  ;;  %v3536_v45 = vld [vmem:[#allocation27_spill] sm:$0xff] }
 0x16e   :  { %1103 = vmatpush.msrb.mxu0 %v2865_v24  ;;  %1123 = vmatpush.msrb.mxu1 %v2645_v51 }
 0x16f   :  { %1143 = vmatpush.msra.mxu2 %v2537_v43  ;;  %1163 = vmatpush.msra.mxu3 %v2549_v50  ;;  %v3535_v43 = vld [vmem:[#allocation24_spill] sm:$0xff] }
 0x170   :  { %1104 = vmatpush.msrb.mxu0 %v2454_v40  ;;  %1124 = vmatpush.msrb.mxu1 %v2651_v55  ;;  %v3528_v40 = vld [vmem:[#allocation23_spill] sm:$0xff]  ;;  %v3538_v50 = vld [vmem:[#allocation36_spill] sm:$0xff] }
 0x171   :  { %1144 = vmatpush.msra.mxu2 %v2545_v47  ;;  %1164 = vmatpush.msra.mxu3 %v2556_v63  ;;  %v3537_v47 = vld [vmem:[#allocation18_spill] sm:$0xff]  ;;  %v3540_v63 = vld [vmem:[#allocation29_spill] sm:$0xff] }
 0x172   :  { %1105 = vmatpush.msrb.mxu0 %v2457_v44  ;;  %1125 = vmatpush.msrb.mxu1 %v2657_v52  ;;  %v3532_v44 = vld [vmem:[#allocation25_spill] sm:$0xff] }
 0x173   :  { %1145 = vmatpush.msra.mxu2 %v2554_v53  ;;  %1165 = vmatpush.msra.mxu3 %v2563_v57  ;;  %v3539_v53 = vld [vmem:[#allocation26_spill] sm:$0xff]  ;;  %v3541_v57 = vld [vmem:[#allocation19_spill] sm:$0xff] }
 0x174   :  { %1106 = vmatpush.msrb.mxu0 %v3525_v26  ;;  %1126 = vmatpush.msrb.mxu1 %v3526_v28 }
 0x175   :  { %1146 = vmatpush.msra.mxu2 %v3527_v30  ;;  %1166 = vmatpush.msra.mxu3 %v3528_v40 }
 0x176   :  { %1107 = vmatpush.msrb.mxu0 %v3529_v32  ;;  %1127 = vmatpush.msrb.mxu1 %v3530_v34 }
 0x177   :  { %1147 = vmatpush.msra.mxu2 %v3531_v37  ;;  %1167 = vmatpush.msra.mxu3 %v3532_v44 }
 0x178   :  { %1108 = vmatpush.msrb.mxu0 %v3533_v39  ;;  %1128 = vmatpush.msrb.mxu1 %v3534_v41 }
 0x179   :  { %1148 = vmatpush.msra.mxu2 %v3535_v43  ;;  %1168 = vmatpush.msra.mxu3 %v3536_v45 }
 0x17a   :  { %1109 = vmatpush.msrb.mxu0 %v3537_v47  ;;  %1129 = vmatpush.msrb.mxu1 %v3538_v50 }
 0x17b   :  { %1149 = vmatpush.msra.mxu2 %v3539_v53  ;;  %1169 = vmatpush.msra.mxu3 %v3540_v63 }
 0x17c   :  { %1110 = vmatpush.msrb.mxu0 %v3541_v57  ;;  %1130 = vmatpush.msrb.mxu1 %v3542_v36 }
 0x17d   :  { %1150 = vmatpush.msra.mxu2 %v3543_v12  ;;  %1170 = vmatpush.msra.mxu3 %v3544_v54 }
 0x17e   :  { %1111 = vmatpush.msrb.mxu0 %v3545_v10  ;;  %1131 = vmatpush.msrb.mxu1 %v3546_v8 }
 0x17f   :  { %1151 = vmatpush.msra.mxu2 %v3547_v56  ;;  %1171 = vmatpush.msra.mxu3 %v3548_v4 }
 0x1db   :  { %v781_v9 = vpop.f32.mrf.mxu0  ;;  %v801_v15 = vpop.f32.mrf.mxu1 }
 0x1dc   :  { %v848_v1 = vrot.slane %v781_v9, 6  ;;  %v849_v62 = vrot.slane %v801_v15, 6 }
 0x1de   :  { %v856_v3 = vadd.f32 %v848_v1, %v2803_v16  ;;  %v857_v58 = vadd.f32 %v849_v62, %v2811_v20 }
 0x1e0   :  { %v1999_v21 = vmul.f32 -1.442695, %v856_v3  ;;  %v2000_v6 = vmul.f32 -1.442695, %v857_v58 }
 0x1e2   :  { %2043 = vpow2.f32 %v1999_v21  ;;  %v841_v59 = vpop.f32.mrf.mxu3  ;;  %v821_v26 = vpop.f32.mrf.mxu2 }
 0x1e3   :  { %2045 = vpow2.f32 %v2000_v6  ;;  %v851_v14 = vrot.slane %v841_v59, 6  ;;  %v850_v30 = vrot.slane %v821_v26, 6 }
 0x1e5   :  { %v859_v0 = vadd.f32 %v851_v14, %v2808_v48  ;;  %v858_v44 = vadd.f32 %v850_v30, %v2814_v31 }
 0x1e7   :  { %v2001_v7 = vmul.f32 -1.442695, %v859_v0 }
 0x1e8   :  { %v2044_v27 = vpop.eup %2043 }
 0x1e9   :  { %v2046_v60 = vpop.eup %2045  ;;  %v863_v18 = vadd.f32 1.0, %v2044_v27  ;;  %2047 = vpow2.f32 %v2001_v7  ;;  %v919_v7 = vrot.slane %v2820_v25, 6 }
 0x1ea   :  { %v882_v61 = vadd.f32 1.0, %v2046_v60 }
 0x1eb   :  { %2049 = vrcp.f32 %v863_v18  ;;  %v875_v12 = vand.u32 2147483648, %v863_v18  ;;  %v873_v15 = vand.u32 2147483647, %v863_v18  ;;  %vm869_vm14 = vweird.f32 %v863_v18 }
 0x1ec   :  { %2051 = vrcp.f32 %v882_v61  ;;  %v894_v10 = vand.u32 2147483648, %v882_v61  ;;  %v892_v62 = vand.u32 2147483647, %v882_v61  ;;  %vm888_vm15 = vweird.f32 %v882_v61 }
 0x1ed   :  { %v876_v21 = vor.u32 1.1754944e-38, %v875_v12  ;;  %vm874_vm2 = vcmp.eq.f32.partialorder %v873_v15, 8.507059e+37  ;;  %v2913_v15 = vld [vmem:[#allocation6 + $0x1f0] sm:$0xff] }
 0x1ee   :  { %v895_v14 = vor.u32 1.1754944e-38, %v894_v10  ;;  %vm893_vm3 = vcmp.eq.f32.partialorder %v892_v62, 8.507059e+37  ;;  %v2924_v62 = vld [vmem:[#allocation6 + $0x1d8] sm:$0xff] }
 0x1ef   :  { %v2048_v40 = vpop.eup %2047 }
 0x1f0   :  { %v902_v32 = vadd.f32 1.0, %v2048_v40 }
 0x1f1   :  { %v2050_v37 = vpop.eup %2049 }
 0x1f2   :  { %v2052_v39 = vpop.eup %2051  ;;  %v865_v43 = vmul.f32 %v2050_v37, %v863_v18  ;;  %2053 = vrcp.f32 %v902_v32  ;;  %vm870_vm12 = vweird.f32 %v2050_v37  ;;  %vm908_vm5 = vweird.f32 %v902_v32 }
 0x1f3   :  { %v884_v47 = vmul.f32 %v2052_v39, %v882_v61  ;;  %2055 = vtanh.f32 %v858_v44  ;;  %vm889_vm13 = vweird.f32 %v2052_v39  ;;  %vm871_vm0 = vmor %vm869_vm14, %vm870_vm12 }
 0x1f4   :  { %v866_v53 = vsub.f32 1.0, %v865_v43  ;;  %vm890_vm1 = vmor %vm888_vm15, %vm889_vm13 }
 0x1f5   :  { %v885_v57 = vsub.f32 1.0, %v884_v47 }
 0x1f6   :  { %v867_v9 = vmul.f32 %v2050_v37, %v866_v53  ;;  %v914_v53 = vand.u32 2147483648, %v902_v32 }
 0x1f7   :  { %v886_v1 = vmul.f32 %v2052_v39, %v885_v57 }
 0x1f8   :  { %v2054_v3 = vpop.eup %2053  ;;  %v868_v58 = vadd.f32 %v2050_v37, %v867_v9  ;;  %v915_v57 = vor.u32 1.1754944e-38, %v914_v53 }
 0x1f9   :  { %v887_v6 = vadd.f32 %v2052_v39, %v886_v1  ;;  %v904_v59 = vmul.f32 %v2054_v3, %v902_v32  ;;  %v2056_v27 = vpop.eup %2055  ;;  %vm909_vm4 = vweird.f32 %v2054_v3  ;;  %v2921_v1 = vld [vmem:[#allocation6 + $0x1d0] sm:$0xff] }
 0x1fa   :  { %v872_v0 = vsel %vm871_vm0, %v2050_v37, %v868_v58  ;;  %v912_v37 = vand.u32 2147483647, %v902_v32  ;;  %vm910_vm6 = vmor %vm908_vm5, %vm909_vm4  ;;  %v2916_v32 = vld [vmem:[#allocation6 + $0x1f8] sm:$0xff] }
 0x1fb   :  { %v877_v60 = vsel %vm874_vm2, %v876_v21, %v872_v0  ;;  %v891_v26 = vsel %vm890_vm1, %v2052_v39, %v887_v6  ;;  %v905_v30 = vsub.f32 1.0, %v904_v59  ;;  %v2940_v58 = vld [vmem:[#allocation6 + $0x198] sm:$0xff]  ;;  %v2979_v0 = vld [vmem:[#allocation6 + $0xf0] sm:$0xff] }
 0x1fc   :  { %v896_v40 = vsel %vm893_vm3, %v895_v14, %v891_v26  ;;  %v922_v44 = vmul.f32 %v2056_v27, %v877_v60  ;;  %vm913_vm7 = vcmp.eq.f32.partialorder %v912_v37, 8.507059e+37  ;;  %v2948_v21 = vld [vmem:[#allocation6 + $0x178] sm:$0xff]  ;;  %v2989_v27 = vld [vmem:[#allocation6 + $0xd0] sm:$0xff] }
 0x1fd   :  { %v921_v43 = vmul.f32 %v919_v7, %v896_v40  ;;  %v906_v18 = vmul.f32 %v2054_v3, %v905_v30  ;;  %v2956_v6 = vld [vmem:[#allocation6 + $0x158] sm:$0xff]  ;;  %3549 = vst [vmem:[#allocation15_spill] sm:$0xff] %v2989_v27  ;;  %v2999_v26 = vld [vmem:[#allocation6 + $0xb0] sm:$0xff] }
 0x1fe   :  { %v2964_v59 = vld [vmem:[#allocation6 + $0x138] sm:$0xff]  ;;  %3552 = vst [vmem:[#allocation23_spill] sm:$0xff] %v2999_v26  ;;  %v3009_v40 = vld [vmem:[#allocation6 + $0x90] sm:$0xff] }
 0x1ff   :  { %v2908_v61 = vadd.f32 %v922_v44, %v921_v43  ;;  %v907_v47 = vadd.f32 %v2054_v3, %v906_v18  ;;  %v2972_v14 = vld [vmem:[#allocation6 + $0x118] sm:$0xff]  ;;  %3555 = vst [vmem:[#allocation22_spill] sm:$0xff] %v3009_v40  ;;  %v3019_v43 = vld [vmem:[#allocation6 + $0x70] sm:$0xff] }
 0x200   :  { %v2982_v7 = vld [vmem:[#allocation6 + $0xf8] sm:$0xff]  ;;  %3558 = vst [vmem:[#allocation35_spill] sm:$0xff] %v3019_v43  ;;  %v3027_v18 = vld [vmem:[#allocation6 + $0x50] sm:$0xff] }
 0x201   :  { %2057 = vtanh.f32 %v2908_v61  ;;  %v911_v25 = vsel %vm910_vm6, %v2054_v3, %v907_v47  ;;  %v2932_v3 = vld [vmem:[#allocation6 + $0x1b8] sm:$0xff]  ;;  %3560 = vst [vmem:[#allocation27_spill] sm:$0xff] %v3027_v18  ;;  %v3031_v47 = vld [vmem:[#allocation6 + $0x20] sm:$0xff] }
 0x202   :  { %v916_v12 = vsel %vm913_vm7, %v915_v57, %v911_v25  ;;  %v2992_v60 = vld [vmem:[#allocation6 + $0xd8] sm:$0xff]  ;;  %3561 = vst [vmem:[#allocation18_spill] sm:$0xff] %v3031_v47 }
 0x203   :  { %3550 = vst [vmem:[#allocation33_spill] sm:$0xff] %v2992_v60  ;;  %v3002_v30 = vld [vmem:[#allocation6 + $0xb8] sm:$0xff] }
 0x204   :  { %3553 = vst [vmem:[#allocation16_spill] sm:$0xff] %v3002_v30  ;;  %v3012_v44 = vld [vmem:[#allocation6 + $0x98] sm:$0xff] }
 0x205   :  { %3556 = vst [vmem:[#allocation25_spill] sm:$0xff] %v3012_v44 }
 0x207   :  { %v2058_v39 = vpop.eup %2057 }
 0x208   :  { %v925_v10 = vmul.f32 %v2058_v39, %v916_v12 }
 0x20a   :  { %926 = vst [vmem:[#allocation2] sm:$0xc] %v925_v10  ;;  %v928_v9 = vrot.slane %v925_v10, 2 }
 0x20c   :  { %946 = vmatmul.f32.vlgmr.msra.gmra.mxu0 %v928_v9  ;;  %966 = vmatmul.f32.vlgmr.msra.gmra.mxu1 %v928_v9 }
 0x20d   :  { %986 = vmatmul.f32.vlgmr.msrb.gmra.mxu2 %v928_v9  ;;  %1006 = vmatmul.f32.vlgmr.msrb.gmra.mxu3 %v928_v9 }
 0x20e   :  { %1262 = vmatpush.msra.mxu0 %v2823_v23  ;;  %1282 = vmatpush.msra.mxu1 %v2602_v49  ;;  %v2929_v49 = vld [vmem:[#allocation6 + $0x1b0] sm:$0xff] }
 0x20f   :  { %1302 = vmatpush.msrb.mxu2 %v2913_v15  ;;  %1322 = vmatpush.msrb.mxu3 %v2916_v32 }
 0x210   :  { %1263 = vmatpush.msra.mxu0 %v2829_v11  ;;  %1283 = vmatpush.msra.mxu1 %v2611_v29  ;;  %v2937_v29 = vld [vmem:[#allocation6 + $0x190] sm:$0xff] }
 0x211   :  { %1303 = vmatpush.msrb.mxu2 %v2921_v1  ;;  %1323 = vmatpush.msrb.mxu3 %v2924_v62 }
 0x212   :  { %1264 = vmatpush.msra.mxu0 %v2835_v2  ;;  %1284 = vmatpush.msra.mxu1 %v2617_v33  ;;  %v2945_v33 = vld [vmem:[#allocation6 + $0x170] sm:$0xff] }
 0x213   :  { %1304 = vmatpush.msrb.mxu2 %v2929_v49  ;;  %1324 = vmatpush.msrb.mxu3 %v2932_v3 }
 0x214   :  { %1265 = vmatpush.msra.mxu0 %v2841_v13  ;;  %1285 = vmatpush.msra.mxu1 %v2621_v38  ;;  %v2953_v38 = vld [vmem:[#allocation6 + $0x150] sm:$0xff] }
 0x215   :  { %1305 = vmatpush.msrb.mxu2 %v2937_v29  ;;  %1325 = vmatpush.msrb.mxu3 %v2940_v58 }
 0x216   :  { %1266 = vmatpush.msra.mxu0 %v2847_v17  ;;  %1286 = vmatpush.msra.mxu1 %v2627_v42  ;;  %v2961_v42 = vld [vmem:[#allocation6 + $0x130] sm:$0xff] }
 0x217   :  { %1306 = vmatpush.msrb.mxu2 %v2945_v33  ;;  %1326 = vmatpush.msrb.mxu3 %v2948_v21 }
 0x218   :  { %1267 = vmatpush.msra.mxu0 %v2853_v19  ;;  %1287 = vmatpush.msra.mxu1 %v2633_v35  ;;  %v2969_v35 = vld [vmem:[#allocation6 + $0x110] sm:$0xff] }
 0x219   :  { %1307 = vmatpush.msrb.mxu2 %v2953_v38  ;;  %1327 = vmatpush.msrb.mxu3 %v2956_v6 }
 0x21a   :  { %1268 = vmatpush.msra.mxu0 %v2859_v22  ;;  %1288 = vmatpush.msra.mxu1 %v2639_v46  ;;  %v2975_v46 = vld [vmem:[#allocation6 + $0xe0] sm:$0xff] }
 0x21b   :  { %1308 = vmatpush.msrb.mxu2 %v2961_v42  ;;  %1328 = vmatpush.msrb.mxu3 %v2964_v59 }
 0x21c   :  { %1269 = vmatpush.msra.mxu0 %v2865_v24  ;;  %1289 = vmatpush.msra.mxu1 %v2645_v51  ;;  %v2985_v51 = vld [vmem:[#allocation6 + $0xc0] sm:$0xff] }
 0x21d   :  { %1309 = vmatpush.msrb.mxu2 %v2969_v35  ;;  %1329 = vmatpush.msrb.mxu3 %v2972_v14 }
 0x21e   :  { %1270 = vmatpush.msra.mxu0 %v2975_v46  ;;  %1290 = vmatpush.msra.mxu1 %v2651_v55  ;;  %v2995_v55 = vld [vmem:[#allocation6 + $0xa0] sm:$0xff] }
 0x21f   :  { %1310 = vmatpush.msrb.mxu2 %v2979_v0  ;;  %1330 = vmatpush.msrb.mxu3 %v2982_v7  ;;  %3551 = vst [vmem:[#allocation21_spill] sm:$0xff] %v2995_v55 }
 0x220   :  { %1271 = vmatpush.msra.mxu0 %v2985_v51  ;;  %1291 = vmatpush.msra.mxu1 %v2657_v52  ;;  %v3005_v52 = vld [vmem:[#allocation6 + $0x80] sm:$0xff] }
 0x221   :  { %1311 = vmatpush.msrb.mxu2 %v2989_v27  ;;  %1331 = vmatpush.msrb.mxu3 %v2992_v60  ;;  %3554 = vst [vmem:[#allocation34_spill] sm:$0xff] %v3005_v52 }
 0x222   :  { %1272 = vmatpush.msra.mxu0 %v2995_v55  ;;  %1292 = vmatpush.msra.mxu1 %v3526_v28  ;;  %v3015_v28 = vld [vmem:[#allocation6 + $0x60] sm:$0xff] }
 0x223   :  { %1312 = vmatpush.msrb.mxu2 %v2999_v26  ;;  %1332 = vmatpush.msrb.mxu3 %v3002_v30  ;;  %3557 = vst [vmem:[#allocation17_spill] sm:$0xff] %v3015_v28 }
 0x224   :  { %1273 = vmatpush.msra.mxu0 %v3005_v52  ;;  %1293 = vmatpush.msra.mxu1 %v3530_v34  ;;  %v3023_v34 = vld [vmem:[#allocation6 + $0x40] sm:$0xff] }
 0x225   :  { %1313 = vmatpush.msrb.mxu2 %v3009_v40  ;;  %1333 = vmatpush.msrb.mxu3 %v3012_v44  ;;  %3559 = vst [vmem:[#allocation24_spill] sm:$0xff] %v3023_v34 }
 0x226   :  { %1274 = vmatpush.msra.mxu0 %v3015_v28  ;;  %1294 = vmatpush.msra.mxu1 %v3534_v41  ;;  %v3035_v41 = vld [vmem:[#allocation6 + $0x30] sm:$0xff] }
 0x227   :  { %1314 = vmatpush.msrb.mxu2 %v3019_v43  ;;  %1334 = vmatpush.msrb.mxu3 %v3536_v45  ;;  %3562 = vst [vmem:[#allocation36_spill] sm:$0xff] %v3035_v41  ;;  %v3039_v45 = vld [vmem:[#allocation6] sm:$0xff] }
 0x228   :  { %1275 = vmatpush.msra.mxu0 %v3023_v34  ;;  %1295 = vmatpush.msra.mxu1 %v3538_v50  ;;  %3563 = vst [vmem:[#allocation26_spill] sm:$0xff] %v3039_v45 }
 0x229   :  { %1315 = vmatpush.msrb.mxu2 %v3027_v18  ;;  %1335 = vmatpush.msrb.mxu3 %v3540_v63 }
 0x22a   :  { %1276 = vmatpush.msra.mxu0 %v3031_v47  ;;  %1296 = vmatpush.msra.mxu1 %v3542_v36 }
 0x22b   :  { %1316 = vmatpush.msrb.mxu2 %v3035_v41  ;;  %1336 = vmatpush.msrb.mxu3 %v3544_v54 }
 0x22c   :  { %1277 = vmatpush.msra.mxu0 %v3039_v45  ;;  %1297 = vmatpush.msra.mxu1 %v3546_v8 }
 0x22d   :  { %1317 = vmatpush.msrb.mxu2 %v3547_v56  ;;  %1337 = vmatpush.msrb.mxu3 %v3548_v4 }
 0x289   :  { %v947_v50 = vpop.f32.mrf.mxu0  ;;  %v967_v63 = vpop.f32.mrf.mxu1 }
 0x28a   :  { %v1014_v53 = vrot.slane %v947_v50, 4  ;;  %v1015_v36 = vrot.slane %v967_v63, 4 }
 0x28c   :  { %v1022_v37 = vadd.f32 %v1014_v53, %v2803_v16  ;;  %v1023_v25 = vadd.f32 %v1015_v36, %v2811_v20 }
 0x28e   :  { %v2002_v57 = vmul.f32 -1.442695, %v1022_v37  ;;  %v2003_v54 = vmul.f32 -1.442695, %v1023_v25 }
 0x290   :  { %2059 = vpow2.f32 %v2002_v57  ;;  %v1007_v39 = vpop.f32.mrf.mxu3  ;;  %v987_v50 = vpop.f32.mrf.mxu2 }
 0x291   :  { %2061 = vpow2.f32 %v2003_v54  ;;  %v1017_v12 = vrot.slane %v1007_v39, 4  ;;  %v1016_v63 = vrot.slane %v987_v50, 4 }
 0x293   :  { %v1025_v8 = vadd.f32 %v1017_v12, %v2808_v48  ;;  %v1024_v25 = vadd.f32 %v1016_v63, %v2814_v31 }
 0x295   :  { %v2004_v10 = vmul.f32 -1.442695, %v1025_v8 }
 0x296   :  { %v2060_v56 = vpop.eup %2059 }
 0x297   :  { %v2062_v9 = vpop.eup %2061  ;;  %v1029_v4 = vadd.f32 1.0, %v2060_v56  ;;  %2063 = vpow2.f32 %v2004_v10 }
 0x298   :  { %v1048_v5 = vadd.f32 1.0, %v2062_v9 }
 0x299   :  { %2065 = vrcp.f32 %v1029_v4  ;;  %v1041_v48 = vand.u32 2147483648, %v1029_v4  ;;  %v1039_v9 = vand.u32 2147483647, %v1029_v4  ;;  %vm1035_vm10 = vweird.f32 %v1029_v4 }
 0x29a   :  { %2067 = vrcp.f32 %v1048_v5  ;;  %v1060_v56 = vand.u32 2147483648, %v1048_v5  ;;  %v1058_v50 = vand.u32 2147483647, %v1048_v5  ;;  %vm1054_vm11 = vweird.f32 %v1048_v5 }
 0x29b   :  { %v1042_v63 = vor.u32 1.1754944e-38, %v1041_v48  ;;  %vm1040_vm14 = vcmp.eq.f32.partialorder %v1039_v9, 8.507059e+37  ;;  %v3084_v9 = vld [vmem:[#allocation6 + $0x148] sm:$0xff] }
 0x29c   :  { %vm1059_vm15 = vcmp.eq.f32.partialorder %v1058_v50, 8.507059e+37  ;;  %v3090_v50 = vld [vmem:[#allocation6 + $0x128] sm:$0xff] }
 0x29d   :  { %v2064_v53 = vpop.eup %2063 }
 0x29e   :  { %v1068_v36 = vadd.f32 1.0, %v2064_v53 }
 0x29f   :  { %v2066_v37 = vpop.eup %2065 }
 0x2a0   :  { %v2068_v57 = vpop.eup %2067  ;;  %v1031_v54 = vmul.f32 %v2066_v37, %v1029_v4  ;;  %2069 = vrcp.f32 %v1068_v36  ;;  %vm1036_vm8 = vweird.f32 %v2066_v37  ;;  %vm1074_vm1 = vweird.f32 %v1068_v36 }
 0x2a1   :  { %v1050_v39 = vmul.f32 %v2068_v57, %v1048_v5  ;;  %2071 = vtanh.f32 %v1024_v25  ;;  %vm1055_vm9 = vweird.f32 %v2068_v57  ;;  %vm1037_vm12 = vmor %vm1035_vm10, %vm1036_vm8 }
 0x2a2   :  { %v1032_v12 = vsub.f32 1.0, %v1031_v54  ;;  %v1085_v54 = vrot.slane %v2908_v61, 6  ;;  %vm1056_vm13 = vmor %vm1054_vm11, %vm1055_vm9  ;;  %v1078_v61 = vand.u32 2147483647, %v1068_v36 }
 0x2a3   :  { %v1051_v8 = vsub.f32 1.0, %v1050_v39  ;;  %v1061_v39 = vor.u32 1.1754944e-38, %v1060_v56 }
 0x2a4   :  { %v1033_v10 = vmul.f32 %v2066_v37, %v1032_v12  ;;  %vm1079_vm3 = vcmp.eq.f32.partialorder %v1078_v61, 8.507059e+37  ;;  %v3572_v61 = vld [vmem:[#allocation18_spill] sm:$0xff] }
 0x2a5   :  { %v1052_v20 = vmul.f32 %v2068_v57, %v1051_v8 }
 0x2a6   :  { %v2070_v16 = vpop.eup %2069  ;;  %v1034_v53 = vadd.f32 %v2066_v37, %v1033_v10 }
 0x2a7   :  { %v1053_v31 = vadd.f32 %v2068_v57, %v1052_v20  ;;  %v1070_v45 = vmul.f32 %v2070_v16, %v1068_v36  ;;  %v2072_v12 = vpop.eup %2071  ;;  %vm1075_vm0 = vweird.f32 %v2070_v16  ;;  %v1080_v20 = vand.u32 2147483648, %v1068_v36  ;;  %v3078_v36 = vld [vmem:[#allocation6 + $0x168] sm:$0xff] }
 0x2a8   :  { %v1038_v25 = vsel %vm1037_vm12, %v2066_v37, %v1034_v53  ;;  %vm1076_vm2 = vmor %vm1074_vm1, %vm1075_vm0  ;;  %v3096_v53 = vld [vmem:[#allocation6 + $0x108] sm:$0xff] }
 0x2a9   :  { %v1043_v41 = vsel %vm1040_vm14, %v1042_v63, %v1038_v25  ;;  %v1057_v47 = vsel %vm1056_vm13, %v2068_v57, %v1053_v31  ;;  %v1071_v8 = vsub.f32 1.0, %v1070_v45  ;;  %v1081_v56 = vor.u32 1.1754944e-38, %v1080_v20  ;;  %v3102_v63 = vld [vmem:[#allocation6 + $0xe8] sm:$0xff]  ;;  %v3138_v20 = vld [vmem:[#allocation6 + $0x58] sm:$0xff] }
 0x2aa   :  { %v1062_v18 = vsel %vm1059_vm15, %v1061_v39, %v1057_v47  ;;  %v1088_v34 = vmul.f32 %v2072_v12, %v1043_v41  ;;  %v3072_v41 = vld [vmem:[#allocation6 + $0x188] sm:$0xff]  ;;  %3571 = vst [vmem:[#allocation20_spill] sm:$0xff] %v3138_v20 }
 0x2ab   :  { %v1087_v10 = vmul.f32 %v1085_v54, %v1062_v18  ;;  %v1072_v4 = vmul.f32 %v2070_v16, %v1071_v8  ;;  %v3066_v18 = vld [vmem:[#allocation6 + $0x1a8] sm:$0xff]  ;;  %v3130_v8 = vld [vmem:[#allocation6 + $0x78] sm:$0xff] }
 0x2ac   :  { %v3108_v54 = vld [vmem:[#allocation6 + $0xc8] sm:$0xff]  ;;  %3567 = vst [vmem:[#allocation28_spill] sm:$0xff] %v3130_v8 }
 0x2ad   :  { %v3050_v5 = vadd.f32 %v1088_v34, %v1087_v10  ;;  %v1073_v48 = vadd.f32 %v2070_v16, %v1072_v4  ;;  %v3054_v34 = vld [vmem:[#allocation6 + $0x1e8] sm:$0xff] }
 0x2ae   :  { %v3114_v39 = vld [vmem:[#allocation6 + $0xa8] sm:$0xff] }
 0x2af   :  { %2073 = vtanh.f32 %v3050_v5  ;;  %v1077_v37 = vsel %vm1076_vm2, %v2070_v16, %v1073_v48  ;;  %v3060_v16 = vld [vmem:[#allocation6 + $0x1c8] sm:$0xff]  ;;  %3564 = vst [vmem:[#allocation29_spill] sm:$0xff] %v3114_v39 }
 0x2b0   :  { %v1082_v57 = vsel %vm1079_vm3, %v1081_v56, %v1077_v37  ;;  %v3120_v25 = vld [vmem:[#allocation6 + $0x88] sm:$0xff] }
 0x2b1   :  { %3565 = vst [vmem:[#allocation19_spill] sm:$0xff] %v3120_v25  ;;  %v3126_v12 = vld [vmem:[#allocation6 + $0x68] sm:$0xff] }
 0x2b2   :  { %3566 = vst [vmem:[#allocation37_spill] sm:$0xff] %v3126_v12  ;;  %v3568_v10 = vld [vmem:[#allocation24_spill] sm:$0xff]  ;;  %v3570_v48 = vld [vmem:[#allocation27_spill] sm:$0xff] }
 0x2b3   :  { %v3134_v4 = vld [vmem:[#allocation6 + $0x48] sm:$0xff] }
 0x2b4   :  { %3569 = vst [vmem:[#allocation31_spill] sm:$0xff] %v3134_v4  ;;  %v3142_v37 = vld [vmem:[#allocation6 + $0x28] sm:$0xff] }
 0x2b5   :  { %v2074_v31 = vpop.eup %2073  ;;  %3573 = vst [vmem:[#allocation38_spill] sm:$0xff] %v3142_v37  ;;  %v3574_v56 = vld [vmem:[#allocation36_spill] sm:$0xff] }
 0x2b6   :  { %v1091_v45 = vmul.f32 %v2074_v31, %v1082_v57  ;;  %v3146_v31 = vld [vmem:[#allocation6 + $0x38] sm:$0xff] }
 0x2b7   :  { %3575 = vst [vmem:[#allocation30_spill] sm:$0xff] %v3146_v31  ;;  %v3576_v57 = vld [vmem:[#allocation26_spill] sm:$0xff] }
 0x2b8   :  { %1092 = vst [vmem:[#allocation2] sm:$0x30] %v1091_v45  ;;  %v1094_v47 = vrot.slane %v1091_v45, 4  ;;  %v3150_v45 = vld [vmem:[#allocation6 + $0x8] sm:$0xff] }
 0x2b9   :  { %3577 = vst [vmem:[#allocation32_spill] sm:$0xff] %v3150_v45 }
 0x2ba   :  { %1112 = vmatmul.f32.vlgmr.msrb.gmra.mxu0 %v1094_v47  ;;  %1132 = vmatmul.f32.vlgmr.msrb.gmra.mxu1 %v1094_v47 }
 0x2bb   :  { %1152 = vmatmul.f32.vlgmr.msra.gmra.mxu2 %v1094_v47  ;;  %1172 = vmatmul.f32.vlgmr.msra.gmra.mxu3 %v1094_v47  ;;  %v3153_v47 = vld [vmem:[#allocation6 + $0x10] sm:$0xff] }
 0x2bc   :  { %1413 = vmatpush.msrb.mxu0 %v2823_v23  ;;  %1433 = vmatpush.msrb.mxu1 %v3054_v34  ;;  %3578 = vst [vmem:[#allocation47_spill] sm:$0xff] %v3153_v47 }
 0x2bd   :  { %1453 = vmatpush.msra.mxu2 %v2913_v15  ;;  %1473 = vmatpush.msra.mxu3 %v2916_v32 }
 0x2be   :  { %1414 = vmatpush.msrb.mxu0 %v2829_v11  ;;  %1434 = vmatpush.msrb.mxu1 %v3060_v16 }
 0x2bf   :  { %1454 = vmatpush.msra.mxu2 %v2921_v1  ;;  %1474 = vmatpush.msra.mxu3 %v2924_v62 }
 0x2c0   :  { %1415 = vmatpush.msrb.mxu0 %v2835_v2  ;;  %1435 = vmatpush.msrb.mxu1 %v3066_v18 }
 0x2c1   :  { %1455 = vmatpush.msra.mxu2 %v2929_v49  ;;  %1475 = vmatpush.msra.mxu3 %v2932_v3 }
 0x2c2   :  { %1416 = vmatpush.msrb.mxu0 %v2841_v13  ;;  %1436 = vmatpush.msrb.mxu1 %v3072_v41 }
 0x2c3   :  { %1456 = vmatpush.msra.mxu2 %v2937_v29  ;;  %1476 = vmatpush.msra.mxu3 %v2940_v58 }
 0x2c4   :  { %1417 = vmatpush.msrb.mxu0 %v2847_v17  ;;  %1437 = vmatpush.msrb.mxu1 %v3078_v36 }
 0x2c5   :  { %1457 = vmatpush.msra.mxu2 %v2945_v33  ;;  %1477 = vmatpush.msra.mxu3 %v2948_v21 }
 0x2c6   :  { %1418 = vmatpush.msrb.mxu0 %v2853_v19  ;;  %1438 = vmatpush.msrb.mxu1 %v3084_v9 }
 0x2c7   :  { %1458 = vmatpush.msra.mxu2 %v2953_v38  ;;  %1478 = vmatpush.msra.mxu3 %v2956_v6 }
 0x2c8   :  { %1419 = vmatpush.msrb.mxu0 %v2859_v22  ;;  %1439 = vmatpush.msrb.mxu1 %v3090_v50 }
 0x2c9   :  { %1459 = vmatpush.msra.mxu2 %v2961_v42  ;;  %1479 = vmatpush.msra.mxu3 %v2964_v59 }
 0x2ca   :  { %1420 = vmatpush.msrb.mxu0 %v2865_v24  ;;  %1440 = vmatpush.msrb.mxu1 %v3096_v53 }
 0x2cb   :  { %1460 = vmatpush.msra.mxu2 %v2969_v35  ;;  %1480 = vmatpush.msra.mxu3 %v2972_v14 }
 0x2cc   :  { %1421 = vmatpush.msrb.mxu0 %v2975_v46  ;;  %1441 = vmatpush.msrb.mxu1 %v3102_v63 }
 0x2cd   :  { %1461 = vmatpush.msra.mxu2 %v2979_v0  ;;  %1481 = vmatpush.msra.mxu3 %v2982_v7 }
 0x2ce   :  { %1422 = vmatpush.msrb.mxu0 %v2985_v51  ;;  %1442 = vmatpush.msrb.mxu1 %v3108_v54 }
 0x2cf   :  { %1462 = vmatpush.msra.mxu2 %v2989_v27  ;;  %1482 = vmatpush.msra.mxu3 %v2992_v60 }
 0x2d0   :  { %1423 = vmatpush.msrb.mxu0 %v2995_v55  ;;  %1443 = vmatpush.msrb.mxu1 %v3114_v39 }
 0x2d1   :  { %1463 = vmatpush.msra.mxu2 %v2999_v26  ;;  %1483 = vmatpush.msra.mxu3 %v3002_v30 }
 0x2d2   :  { %1424 = vmatpush.msrb.mxu0 %v3005_v52  ;;  %1444 = vmatpush.msrb.mxu1 %v3120_v25 }
 0x2d3   :  { %1464 = vmatpush.msra.mxu2 %v3009_v40  ;;  %1484 = vmatpush.msra.mxu3 %v3012_v44 }
 0x2d4   :  { %1425 = vmatpush.msrb.mxu0 %v3015_v28  ;;  %1445 = vmatpush.msrb.mxu1 %v3126_v12  ;;  %v3582_v28 = vld [vmem:[#allocation44_spill] sm:$0xff] }
 0x2d5   :  { %1465 = vmatpush.msra.mxu2 %v3019_v43  ;;  %1485 = vmatpush.msra.mxu3 %v3130_v8 }
 0x2d6   :  { %1426 = vmatpush.msrb.mxu0 %v3568_v10  ;;  %1446 = vmatpush.msrb.mxu1 %v3134_v4  ;;  %v3580_v4 = vld [vmem:[#allocation42_spill] sm:$0xff]  ;;  %v3581_v10 = vld [vmem:[#allocation45_spill] sm:$0xff] }
 0x2d7   :  { %1466 = vmatpush.msra.mxu2 %v3570_v48  ;;  %1486 = vmatpush.msra.mxu3 %v3138_v20 }
 0x2d8   :  { %1427 = vmatpush.msrb.mxu0 %v3572_v61  ;;  %1447 = vmatpush.msrb.mxu1 %v3142_v37  ;;  %v3156_v61 = vld [vmem:[#allocation6 + $0x18] sm:$0xff] }
 0x2d9   :  { %1467 = vmatpush.msra.mxu2 %v3574_v56  ;;  %1487 = vmatpush.msra.mxu3 %v3146_v31  ;;  %3579 = vst [vmem:[#allocation48_spill] sm:$0xff] %v3156_v61 }
 0x2da   :  { %1428 = vmatpush.msrb.mxu0 %v3576_v57  ;;  %1448 = vmatpush.msrb.mxu1 %v3150_v45 }
 0x2db   :  { %1468 = vmatpush.msra.mxu2 %v3153_v47  ;;  %1488 = vmatpush.msra.mxu3 %v3156_v61 }
 0x337   :  { %v1113_v37 = vpop.f32.mrf.mxu0  ;;  %v1133_v56 = vpop.f32.mrf.mxu1 }
 0x338   :  { %v1180_v20 = vrot.slane %v1113_v37, 2  ;;  %v1181_v48 = vrot.slane %v1133_v56, 2  ;;  %v3583_v56 = vld [vmem:[#allocation46_spill] sm:$0xff] }
 0x33a   :  { %v1188_v31 = vadd.f32 %v1180_v20, %v3580_v4  ;;  %v1189_v57 = vadd.f32 %v1181_v48, %v3581_v10 }
 0x33c   :  { %v2005_v8 = vmul.f32 -1.442695, %v1188_v31  ;;  %v2006_v43 = vmul.f32 -1.442695, %v1189_v57 }
 0x33e   :  { %2075 = vpow2.f32 %v2005_v8  ;;  %v1173_v45 = vpop.f32.mrf.mxu3  ;;  %v1153_v37 = vpop.f32.mrf.mxu2 }
 0x33f   :  { %2077 = vpow2.f32 %v2006_v43  ;;  %v1183_v12 = vrot.slane %v1173_v45, 2  ;;  %v1182_v4 = vrot.slane %v1153_v37, 2 }
 0x341   :  { %v1191_v47 = vadd.f32 %v1183_v12, %v3582_v28  ;;  %v1190_v8 = vadd.f32 %v1182_v4, %v3583_v56 }
 0x343   :  { %v2007_v44 = vmul.f32 -1.442695, %v1191_v47 }
 0x344   :  { %v2076_v40 = vpop.eup %2075 }
 0x345   :  { %v2078_v25 = vpop.eup %2077  ;;  %v1195_v61 = vadd.f32 1.0, %v2076_v40  ;;  %2079 = vpow2.f32 %v2007_v44 }
 0x346   :  { %v1214_v52 = vadd.f32 1.0, %v2078_v25 }
 0x347   :  { %2081 = vrcp.f32 %v1195_v61  ;;  %v1207_v45 = vand.u32 2147483648, %v1195_v61  ;;  %v1205_v25 = vand.u32 2147483647, %v1195_v61  ;;  %vm1201_vm6 = vweird.f32 %v1195_v61 }
 0x348   :  { %2083 = vrcp.f32 %v1214_v52  ;;  %v1226_v40 = vand.u32 2147483648, %v1214_v52  ;;  %v1224_v37 = vand.u32 2147483647, %v1214_v52  ;;  %vm1220_vm7 = vweird.f32 %v1214_v52 }
 0x349   :  { %v1208_v4 = vor.u32 1.1754944e-38, %v1207_v45  ;;  %vm1206_vm10 = vcmp.eq.f32.partialorder %v1205_v25, 8.507059e+37 }
 0x34a   :  { %vm1225_vm11 = vcmp.eq.f32.partialorder %v1224_v37, 8.507059e+37  ;;  %v3597_v37 = vld [vmem:[#allocation28_spill] sm:$0xff] }
 0x34b   :  { %v2080_v20 = vpop.eup %2079 }
 0x34c   :  { %v1234_v10 = vadd.f32 1.0, %v2080_v20 }
 0x34d   :  { %v2082_v48 = vpop.eup %2081 }
 0x34e   :  { %v2084_v31 = vpop.eup %2083  ;;  %v1197_v43 = vmul.f32 %v2082_v48, %v1195_v61  ;;  %2085 = vrcp.f32 %v1234_v10  ;;  %vm1202_vm4 = vweird.f32 %v2082_v48  ;;  %vm1240_vm13 = vweird.f32 %v1234_v10 }
 0x34f   :  { %v1216_v57 = vmul.f32 %v2084_v31, %v1214_v52  ;;  %2087 = vtanh.f32 %v1190_v8  ;;  %vm1221_vm5 = vweird.f32 %v2084_v31  ;;  %vm1203_vm8 = vmor %vm1201_vm6, %vm1202_vm4 }
 0x350   :  { %v1198_v28 = vsub.f32 1.0, %v1197_v43  ;;  %v1251_v43 = vrot.slane %v3050_v5, 6  ;;  %vm1222_vm9 = vmor %vm1220_vm7, %vm1221_vm5  ;;  %v1246_v5 = vand.u32 2147483648, %v1234_v10 }
 0x351   :  { %v1217_v12 = vsub.f32 1.0, %v1216_v57  ;;  %v1227_v57 = vor.u32 1.1754944e-38, %v1226_v40  ;;  %v1244_v40 = vand.u32 2147483647, %v1234_v10 }
 0x352   :  { %v1199_v44 = vmul.f32 %v2082_v48, %v1198_v28  ;;  %v1247_v25 = vor.u32 1.1754944e-38, %v1246_v5  ;;  %v3609_v5 = vld [vmem:[#allocation48_spill] sm:$0xff] }
 0x353   :  { %v1218_v47 = vmul.f32 %v2084_v31, %v1217_v12  ;;  %vm1245_vm15 = vcmp.eq.f32.partialorder %v1244_v40, 8.507059e+37 }
 0x354   :  { %v2086_v30 = vpop.eup %2085  ;;  %v1200_v20 = vadd.f32 %v2082_v48, %v1199_v44 }
 0x355   :  { %v1219_v56 = vadd.f32 %v2084_v31, %v1218_v47  ;;  %v1236_v26 = vmul.f32 %v2086_v30, %v1234_v10  ;;  %v2088_v28 = vpop.eup %2087  ;;  %vm1241_vm12 = vweird.f32 %v2086_v30  ;;  %v3596_v10 = vld [vmem:[#allocation35_spill] sm:$0xff] }
 0x356   :  { %v1204_v8 = vsel %vm1203_vm8, %v2082_v48, %v1200_v20  ;;  %vm1242_vm14 = vmor %vm1240_vm13, %vm1241_vm12  ;;  %v3598_v20 = vld [vmem:[#allocation24_spill] sm:$0xff] }
 0x357   :  { %v1209_v39 = vsel %vm1206_vm10, %v1208_v4, %v1204_v8  ;;  %v1223_v55 = vsel %vm1222_vm9, %v2084_v31, %v1219_v56  ;;  %v1237_v12 = vsub.f32 1.0, %v1236_v26  ;;  %v3599_v4 = vld [vmem:[#allocation31_spill] sm:$0xff]  ;;  %v3603_v8 = vld [vmem:[#allocation38_spill] sm:$0xff] }
 0x358   :  { %v1228_v60 = vsel %vm1225_vm11, %v1227_v57, %v1223_v55  ;;  %v1254_v27 = vmul.f32 %v2088_v28, %v1209_v39  ;;  %v3595_v39 = vld [vmem:[#allocation37_spill] sm:$0xff]  ;;  %v3600_v56 = vld [vmem:[#allocation27_spill] sm:$0xff]  ;;  %v3602_v57 = vld [vmem:[#allocation18_spill] sm:$0xff] }
 0x359   :  { %v1253_v44 = vmul.f32 %v1251_v43, %v1228_v60  ;;  %v1238_v61 = vmul.f32 %v2086_v30, %v1237_v12  ;;  %v3593_v60 = vld [vmem:[#allocation25_spill] sm:$0xff]  ;;  %v3601_v43 = vld [vmem:[#allocation20_spill] sm:$0xff]  ;;  %v3605_v12 = vld [vmem:[#allocation30_spill] sm:$0xff] }
 0x35a   :  { %v3604_v28 = vld [vmem:[#allocation36_spill] sm:$0xff] }
 0x35b   :  { %v3164_v52 = vadd.f32 %v1254_v27, %v1253_v44  ;;  %v1239_v45 = vadd.f32 %v2086_v30, %v1238_v61  ;;  %v3592_v27 = vld [vmem:[#allocation22_spill] sm:$0xff]  ;;  %v3607_v61 = vld [vmem:[#allocation32_spill] sm:$0xff] }
 0x35c   :  { %v3606_v44 = vld [vmem:[#allocation26_spill] sm:$0xff] }
 0x35d   :  { %2089 = vtanh.f32 %v3164_v52  ;;  %v1243_v48 = vsel %vm1242_vm14, %v2086_v30, %v1239_v45  ;;  %v3594_v30 = vld [vmem:[#allocation17_spill] sm:$0xff]  ;;  %v3608_v45 = vld [vmem:[#allocation47_spill] sm:$0xff] }
 0x35e   :  { %v1248_v47 = vsel %vm1245_vm15, %v1247_v25, %v1243_v48  ;;  %v3610_v25 = vld [vmem:[#allocation39_spill] sm:$0xff] }
 0x363   :  { %v2090_v31 = vpop.eup %2089 }
 0x364   :  { %v1257_v26 = vmul.f32 %v2090_v31, %v1248_v47  ;;  %v3611_v47 = vld [vmem:[#allocation41_spill] sm:$0xff] }
 0x366   :  { %1258 = vst [vmem:[#allocation2] sm:$0xc0] %v1257_v26  ;;  %v1260_v55 = vrot.slane %v1257_v26, 6 }
 0x368   :  { %1278 = vmatmul.f32.vlgmr.msra.gmra.mxu0 %v1260_v55  ;;  %1298 = vmatmul.f32.vlgmr.msra.gmra.mxu1 %v1260_v55 }
 0x369   :  { %1318 = vmatmul.f32.vlgmr.msrb.gmra.mxu2 %v1260_v55  ;;  %1338 = vmatmul.f32.vlgmr.msrb.gmra.mxu3 %v1260_v55 }
 0x36a   :  { %1579 = vmatpush.msra.mxu0 %v2823_v23  ;;  %1599 = vmatpush.msra.mxu1 %v3054_v34  ;;  %v3584_v23 = vld [vmem:[#allocation15_spill] sm:$0xff] }
 0x36b   :  { %1619 = vmatpush.msrb.mxu2 %v2913_v15  ;;  %1639 = vmatpush.msrb.mxu3 %v2916_v32 }
 0x36c   :  { %1580 = vmatpush.msra.mxu0 %v2829_v11  ;;  %1600 = vmatpush.msra.mxu1 %v3060_v16  ;;  %v3585_v11 = vld [vmem:[#allocation33_spill] sm:$0xff] }
 0x36d   :  { %1620 = vmatpush.msrb.mxu2 %v2921_v1  ;;  %1640 = vmatpush.msrb.mxu3 %v2924_v62 }
 0x36e   :  { %1581 = vmatpush.msra.mxu0 %v2835_v2  ;;  %1601 = vmatpush.msra.mxu1 %v3066_v18  ;;  %v3586_v2 = vld [vmem:[#allocation21_spill] sm:$0xff] }
 0x36f   :  { %1621 = vmatpush.msrb.mxu2 %v2929_v49  ;;  %1641 = vmatpush.msrb.mxu3 %v2932_v3 }
 0x370   :  { %1582 = vmatpush.msra.mxu0 %v2841_v13  ;;  %1602 = vmatpush.msra.mxu1 %v3072_v41  ;;  %v3587_v13 = vld [vmem:[#allocation29_spill] sm:$0xff] }
 0x371   :  { %1622 = vmatpush.msrb.mxu2 %v2937_v29  ;;  %1642 = vmatpush.msrb.mxu3 %v2940_v58 }
 0x372   :  { %1583 = vmatpush.msra.mxu0 %v2847_v17  ;;  %1603 = vmatpush.msra.mxu1 %v3078_v36  ;;  %v3588_v17 = vld [vmem:[#allocation23_spill] sm:$0xff] }
 0x373   :  { %1623 = vmatpush.msrb.mxu2 %v2945_v33  ;;  %1643 = vmatpush.msrb.mxu3 %v2948_v21 }
 0x374   :  { %1584 = vmatpush.msra.mxu0 %v2853_v19  ;;  %1604 = vmatpush.msra.mxu1 %v3084_v9  ;;  %v3589_v19 = vld [vmem:[#allocation16_spill] sm:$0xff] }
 0x375   :  { %1624 = vmatpush.msrb.mxu2 %v2953_v38  ;;  %1644 = vmatpush.msrb.mxu3 %v2956_v6 }
 0x376   :  { %1585 = vmatpush.msra.mxu0 %v2859_v22  ;;  %1605 = vmatpush.msra.mxu1 %v3090_v50  ;;  %v3590_v22 = vld [vmem:[#allocation34_spill] sm:$0xff] }
 0x377   :  { %1625 = vmatpush.msrb.mxu2 %v2961_v42  ;;  %1645 = vmatpush.msrb.mxu3 %v2964_v59 }
 0x378   :  { %1586 = vmatpush.msra.mxu0 %v2865_v24  ;;  %1606 = vmatpush.msra.mxu1 %v3096_v53  ;;  %v3591_v24 = vld [vmem:[#allocation19_spill] sm:$0xff] }
 0x379   :  { %1626 = vmatpush.msrb.mxu2 %v2969_v35  ;;  %1646 = vmatpush.msrb.mxu3 %v2972_v14 }
 0x37a   :  { %1587 = vmatpush.msra.mxu0 %v2975_v46  ;;  %1607 = vmatpush.msra.mxu1 %v3102_v63 }
 0x37b   :  { %1627 = vmatpush.msrb.mxu2 %v2979_v0  ;;  %1647 = vmatpush.msrb.mxu3 %v2982_v7 }
 0x37c   :  { %1588 = vmatpush.msra.mxu0 %v2985_v51  ;;  %1608 = vmatpush.msra.mxu1 %v3108_v54 }
 0x37d   :  { %1628 = vmatpush.msrb.mxu2 %v3584_v23  ;;  %1648 = vmatpush.msrb.mxu3 %v3585_v11 }
 0x37e   :  { %1589 = vmatpush.msra.mxu0 %v3586_v2  ;;  %1609 = vmatpush.msra.mxu1 %v3587_v13 }
 0x37f   :  { %1629 = vmatpush.msrb.mxu2 %v3588_v17  ;;  %1649 = vmatpush.msrb.mxu3 %v3589_v19 }
 0x380   :  { %1590 = vmatpush.msra.mxu0 %v3590_v22  ;;  %1610 = vmatpush.msra.mxu1 %v3591_v24 }
 0x381   :  { %1630 = vmatpush.msrb.mxu2 %v3592_v27  ;;  %1650 = vmatpush.msrb.mxu3 %v3593_v60 }
 0x382   :  { %1591 = vmatpush.msra.mxu0 %v3594_v30  ;;  %1611 = vmatpush.msra.mxu1 %v3595_v39 }
 0x383   :  { %1631 = vmatpush.msrb.mxu2 %v3596_v10  ;;  %1651 = vmatpush.msrb.mxu3 %v3597_v37 }
 0x384   :  { %1592 = vmatpush.msra.mxu0 %v3598_v20  ;;  %1612 = vmatpush.msra.mxu1 %v3599_v4 }
 0x385   :  { %1632 = vmatpush.msrb.mxu2 %v3600_v56  ;;  %1652 = vmatpush.msrb.mxu3 %v3601_v43 }
 0x386   :  { %1593 = vmatpush.msra.mxu0 %v3602_v57  ;;  %1613 = vmatpush.msra.mxu1 %v3603_v8 }
 0x387   :  { %1633 = vmatpush.msrb.mxu2 %v3604_v28  ;;  %1653 = vmatpush.msrb.mxu3 %v3605_v12  ;;  %v3612_v12 = vld [vmem:[#allocation43_spill] sm:$0xff] }
 0x388   :  { %1594 = vmatpush.msra.mxu0 %v3606_v44  ;;  %1614 = vmatpush.msra.mxu1 %v3607_v61 }
 0x389   :  { %1634 = vmatpush.msrb.mxu2 %v3608_v45  ;;  %1654 = vmatpush.msrb.mxu3 %v3609_v5 }
 0x3e5   :  { %v1279_v40 = vpop.f32.mrf.mxu0  ;;  %v1299_v48 = vpop.f32.mrf.mxu1 }
 0x3e6   :  { %v1342_v31 = vadd.f32 %v1279_v40, %v3610_v25  ;;  %v1343_v26 = vadd.f32 %v1299_v48, %v3611_v47  ;;  %v3613_v48 = vld [vmem:[#allocation40_spill] sm:$0xff] }
 0x3e8   :  { %v2008_v55 = vmul.f32 -1.442695, %v1342_v31  ;;  %v2009_v8 = vmul.f32 -1.442695, %v1343_v26 }
 0x3ea   :  { %2091 = vpow2.f32 %v2008_v55 }
 0x3eb   :  { %2093 = vpow2.f32 %v2009_v8 }
 0x3ec   :  { %v1339_v28 = vpop.f32.mrf.mxu3  ;;  %v1319_v5 = vpop.f32.mrf.mxu2 }
 0x3ed   :  { %v1345_v57 = vadd.f32 %v1339_v28, %v3612_v12  ;;  %v1344_v31 = vadd.f32 %v1319_v5, %v3613_v48 }
 0x3ef   :  { %v2010_v44 = vmul.f32 -1.442695, %v1345_v57 }
 0x3f0   :  { %v2092_v43 = vpop.eup %2091 }
 0x3f1   :  { %v2094_v61 = vpop.eup %2093  ;;  %v1349_v56 = vadd.f32 1.0, %v2092_v43  ;;  %2095 = vpow2.f32 %v2010_v44 }
 0x3f2   :  { %v1368_v45 = vadd.f32 1.0, %v2094_v61 }
 0x3f3   :  { %2097 = vrcp.f32 %v1349_v56  ;;  %v1361_v57 = vand.u32 2147483648, %v1349_v56  ;;  %v1359_v44 = vand.u32 2147483647, %v1349_v56  ;;  %vm1355_vm2 = vweird.f32 %v1349_v56 }
 0x3f4   :  { %2099 = vrcp.f32 %v1368_v45  ;;  %v1380_v12 = vand.u32 2147483648, %v1368_v45  ;;  %v1378_v20 = vand.u32 2147483647, %v1368_v45  ;;  %vm1374_vm3 = vweird.f32 %v1368_v45 }
 0x3f5   :  { %v1362_v5 = vor.u32 1.1754944e-38, %v1361_v57  ;;  %vm1360_vm6 = vcmp.eq.f32.partialorder %v1359_v44, 8.507059e+37 }
 0x3f6   :  { %vm1379_vm7 = vcmp.eq.f32.partialorder %v1378_v20, 8.507059e+37 }
 0x3f7   :  { %v2096_v4 = vpop.eup %2095 }
 0x3f8   :  { %v1388_v40 = vadd.f32 1.0, %v2096_v4 }
 0x3f9   :  { %v2098_v25 = vpop.eup %2097 }
 0x3fa   :  { %v2100_v26 = vpop.eup %2099  ;;  %v1351_v55 = vmul.f32 %v2098_v25, %v1349_v56  ;;  %2101 = vrcp.f32 %v1388_v40  ;;  %vm1356_vm0 = vweird.f32 %v2098_v25  ;;  %vm1394_vm9 = vweird.f32 %v1388_v40 }
 0x3fb   :  { %v1370_v8 = vmul.f32 %v2100_v26, %v1368_v45  ;;  %2103 = vtanh.f32 %v1344_v31  ;;  %vm1375_vm1 = vweird.f32 %v2100_v26  ;;  %vm1357_vm4 = vmor %vm1355_vm2, %vm1356_vm0  ;;  %v1405_v31 = vrot.slane %v3164_v52, 6 }
 0x3fc   :  { %v1352_v47 = vsub.f32 1.0, %v1351_v55  ;;  %vm1376_vm5 = vmor %vm1374_vm3, %vm1375_vm1  ;;  %v1381_v55 = vor.u32 1.1754944e-38, %v1380_v12  ;;  %v1400_v12 = vand.u32 2147483648, %v1388_v40 }
 0x3fd   :  { %v1371_v28 = vsub.f32 1.0, %v1370_v8 }
 0x3fe   :  { %v1353_v43 = vmul.f32 %v2098_v25, %v1352_v47  ;;  %v1401_v44 = vor.u32 1.1754944e-38, %v1400_v12 }
 0x3ff   :  { %v1372_v61 = vmul.f32 %v2100_v26, %v1371_v28 }
 0x400   :  { %v2102_v37 = vpop.eup %2101  ;;  %v1354_v4 = vadd.f32 %v2098_v25, %v1353_v43 }
 0x401   :  { %v1373_v48 = vadd.f32 %v2100_v26, %v1372_v61  ;;  %v1390_v10 = vmul.f32 %v2102_v37, %v1388_v40  ;;  %v2104_v47 = vpop.eup %2103  ;;  %vm1395_vm8 = vweird.f32 %v2102_v37 }
 0x402   :  { %v1358_v8 = vsel %vm1357_vm4, %v2098_v25, %v1354_v4  ;;  %v1398_v25 = vand.u32 2147483647, %v1388_v40  ;;  %vm1396_vm10 = vmor %vm1394_vm9, %vm1395_vm8 }
 0x403   :  { %v1363_v39 = vsel %vm1360_vm6, %v1362_v5, %v1358_v8  ;;  %v1377_v30 = vsel %vm1376_vm5, %v2100_v26, %v1373_v48  ;;  %v1391_v28 = vsub.f32 1.0, %v1390_v10 }
 0x404   :  { %v1382_v60 = vsel %vm1379_vm7, %v1381_v55, %v1377_v30  ;;  %v1408_v27 = vmul.f32 %v2104_v47, %v1363_v39  ;;  %vm1399_vm11 = vcmp.eq.f32.partialorder %v1398_v25, 8.507059e+37  ;;  %v2221_v30 = vld [vmem:[#allocation6 + $0x1a0] sm:$0xff] }
 0x405   :  { %v1407_v43 = vmul.f32 %v1405_v31, %v1382_v60  ;;  %v1392_v56 = vmul.f32 %v2102_v37, %v1391_v28  ;;  %v2220_v60 = vld [vmem:[#allocation6 + $0x1c0] sm:$0xff]  ;;  %v3635_v31 = vld [vmem:[#allocation40_spill] sm:$0xff] }
 0x407   :  { %v3236_v45 = vadd.f32 %v1408_v27, %v1407_v43  ;;  %v1393_v57 = vadd.f32 %v2102_v37, %v1392_v56  ;;  %v2219_v27 = vld [vmem:[#allocation6 + $0x1e0] sm:$0xff] }
 0x409   :  { %2105 = vtanh.f32 %v3236_v45  ;;  %v1397_v52 = vsel %vm1396_vm10, %v2102_v37, %v1393_v57 }
 0x40a   :  { %v1402_v20 = vsel %vm1399_vm11, %v1401_v44, %v1397_v52 }
 0x40f   :  { %v2106_v48 = vpop.eup %2105 }
 0x410   :  { %v1411_v10 = vmul.f32 %v2106_v48, %v1402_v20 }
 0x412   :  { %1412 = vst [vmem:[#allocation2 + $0x8] sm:$0x3] %v1411_v10  ;;  %1429 = vmatmul.f32.vlgmr.msrb.gmra.mxu0 %v1411_v10  ;;  %1449 = vmatmul.f32.vlgmr.msrb.gmra.mxu1 %v1411_v10 }
 0x413   :  { %1469 = vmatmul.f32.vlgmr.msra.gmra.mxu2 %v1411_v10  ;;  %1489 = vmatmul.f32.vlgmr.msra.gmra.mxu3 %v1411_v10 }
 0x414   :  { %1745 = vmatpush.msrb.mxu0 %v2219_v27  ;;  %1765 = vmatpush.msrb.mxu1 %v3054_v34  ;;  %v2222_v34 = vld [vmem:[#allocation6 + $0x180] sm:$0xff] }
 0x415   :  { %1785 = vmatpush.msra.mxu2 %v2913_v15  ;;  %1805 = vmatpush.msra.mxu3 %v2916_v32  ;;  %v2223_v15 = vld [vmem:[#allocation6 + $0x160] sm:$0xff] }
 0x416   :  { %1746 = vmatpush.msrb.mxu0 %v2220_v60  ;;  %1766 = vmatpush.msrb.mxu1 %v3060_v16  ;;  %v2224_v32 = vld [vmem:[#allocation6 + $0x140] sm:$0xff] }
 0x417   :  { %1786 = vmatpush.msra.mxu2 %v2921_v1  ;;  %1806 = vmatpush.msra.mxu3 %v2924_v62  ;;  %v2225_v1 = vld [vmem:[#allocation6 + $0x120] sm:$0xff] }
 0x418   :  { %1747 = vmatpush.msrb.mxu0 %v2221_v30  ;;  %1767 = vmatpush.msrb.mxu1 %v3066_v18  ;;  %v2226_v62 = vld [vmem:[#allocation6 + $0x100] sm:$0xff]  ;;  %v3631_v18 = vld [vmem:[#allocation48_spill] sm:$0xff] }
 0x419   :  { %1787 = vmatpush.msra.mxu2 %v2929_v49  ;;  %1807 = vmatpush.msra.mxu3 %v2932_v3  ;;  %v3614_v49 = vld [vmem:[#allocation22_spill] sm:$0xff]  ;;  %v3615_v3 = vld [vmem:[#allocation25_spill] sm:$0xff]  ;;  %v3630_v16 = vld [vmem:[#allocation47_spill] sm:$0xff] }
 0x41a   :  { %1748 = vmatpush.msrb.mxu0 %v2222_v34  ;;  %1768 = vmatpush.msrb.mxu1 %v3072_v41 }
 0x41b   :  { %1788 = vmatpush.msra.mxu2 %v2937_v29  ;;  %1808 = vmatpush.msra.mxu3 %v2940_v58  ;;  %v3616_v29 = vld [vmem:[#allocation17_spill] sm:$0xff] }
 0x41c   :  { %1749 = vmatpush.msrb.mxu0 %v2223_v15  ;;  %1769 = vmatpush.msrb.mxu1 %v3078_v36  ;;  %v3617_v58 = vld [vmem:[#allocation37_spill] sm:$0xff] }
 0x41d   :  { %1789 = vmatpush.msra.mxu2 %v2945_v33  ;;  %1809 = vmatpush.msra.mxu3 %v2948_v21  ;;  %v3618_v33 = vld [vmem:[#allocation35_spill] sm:$0xff]  ;;  %v3619_v21 = vld [vmem:[#allocation28_spill] sm:$0xff] }
 0x41e   :  { %1750 = vmatpush.msrb.mxu0 %v2224_v32  ;;  %1770 = vmatpush.msrb.mxu1 %v3084_v9  ;;  %v1568_v32 = vrot.slane %v3236_v45, 6 }
 0x41f   :  { %1790 = vmatpush.msra.mxu2 %v2953_v38  ;;  %1810 = vmatpush.msra.mxu3 %v2956_v6  ;;  %v3620_v38 = vld [vmem:[#allocation24_spill] sm:$0xff]  ;;  %v3621_v6 = vld [vmem:[#allocation31_spill] sm:$0xff] }
 0x420   :  { %1751 = vmatpush.msrb.mxu0 %v2225_v1  ;;  %1771 = vmatpush.msrb.mxu1 %v3090_v50 }
 0x421   :  { %1791 = vmatpush.msra.mxu2 %v2961_v42  ;;  %1811 = vmatpush.msra.mxu3 %v2964_v59  ;;  %v3622_v42 = vld [vmem:[#allocation27_spill] sm:$0xff]  ;;  %v3623_v59 = vld [vmem:[#allocation20_spill] sm:$0xff] }
 0x422   :  { %1752 = vmatpush.msrb.mxu0 %v2226_v62  ;;  %1772 = vmatpush.msrb.mxu1 %v3096_v53  ;;  %v3632_v53 = vld [vmem:[#allocation39_spill] sm:$0xff] }
 0x423   :  { %1792 = vmatpush.msra.mxu2 %v2969_v35  ;;  %1812 = vmatpush.msra.mxu3 %v2972_v14  ;;  %v3624_v35 = vld [vmem:[#allocation18_spill] sm:$0xff] }
 0x424   :  { %1753 = vmatpush.msrb.mxu0 %v2975_v46  ;;  %1773 = vmatpush.msrb.mxu1 %v3102_v63  ;;  %v3625_v14 = vld [vmem:[#allocation38_spill] sm:$0xff]  ;;  %v3626_v46 = vld [vmem:[#allocation36_spill] sm:$0xff] }
 0x425   :  { %1793 = vmatpush.msra.mxu2 %v2979_v0  ;;  %1813 = vmatpush.msra.mxu3 %v2982_v7  ;;  %v3627_v0 = vld [vmem:[#allocation30_spill] sm:$0xff] }
 0x426   :  { %1754 = vmatpush.msrb.mxu0 %v2985_v51  ;;  %1774 = vmatpush.msrb.mxu1 %v3108_v54  ;;  %v3628_v7 = vld [vmem:[#allocation26_spill] sm:$0xff]  ;;  %v3629_v51 = vld [vmem:[#allocation32_spill] sm:$0xff]  ;;  %v3633_v54 = vld [vmem:[#allocation41_spill] sm:$0xff] }
 0x427   :  { %1794 = vmatpush.msra.mxu2 %v3584_v23  ;;  %1814 = vmatpush.msra.mxu3 %v3585_v11 }
 0x428   :  { %1755 = vmatpush.msrb.mxu0 %v3586_v2  ;;  %1775 = vmatpush.msrb.mxu1 %v3587_v13 }
 0x429   :  { %1795 = vmatpush.msra.mxu2 %v3588_v17  ;;  %1815 = vmatpush.msra.mxu3 %v3589_v19  ;;  %v3634_v19 = vld [vmem:[#allocation43_spill] sm:$0xff] }
 0x42a   :  { %1756 = vmatpush.msrb.mxu0 %v3590_v22  ;;  %1776 = vmatpush.msrb.mxu1 %v3591_v24 }
 0x42b   :  { %1796 = vmatpush.msra.mxu2 %v3614_v49  ;;  %1816 = vmatpush.msra.mxu3 %v3615_v3 }
 0x42c   :  { %1757 = vmatpush.msrb.mxu0 %v3616_v29  ;;  %1777 = vmatpush.msrb.mxu1 %v3617_v58 }
 0x42d   :  { %1797 = vmatpush.msra.mxu2 %v3618_v33  ;;  %1817 = vmatpush.msra.mxu3 %v3619_v21 }
 0x42e   :  { %1758 = vmatpush.msrb.mxu0 %v3620_v38  ;;  %1778 = vmatpush.msrb.mxu1 %v3621_v6 }
 0x42f   :  { %1798 = vmatpush.msra.mxu2 %v3622_v42  ;;  %1818 = vmatpush.msra.mxu3 %v3623_v59 }
 0x430   :  { %1759 = vmatpush.msrb.mxu0 %v3624_v35  ;;  %1779 = vmatpush.msrb.mxu1 %v3625_v14 }
 0x431   :  { %1799 = vmatpush.msra.mxu2 %v3626_v46  ;;  %1819 = vmatpush.msra.mxu3 %v3627_v0 }
 0x432   :  { %1760 = vmatpush.msrb.mxu0 %v3628_v7  ;;  %1780 = vmatpush.msrb.mxu1 %v3629_v51 }
 0x433   :  { %1800 = vmatpush.msra.mxu2 %v3630_v16  ;;  %1820 = vmatpush.msra.mxu3 %v3631_v18  ;;  %v1925_v18 = vld [vmem:[%s3391_s6 + $0x78] sm:$0xff] }
 0x48f   :  { %v1430_v41 = vpop.f32.mrf.mxu0  ;;  %v1450_v36 = vpop.f32.mrf.mxu1 }
 0x490   :  { %v1497_v9 = vrot.slane %v1430_v41, 6  ;;  %v1498_v50 = vrot.slane %v1450_v36, 6  ;;  %v1924_v41 = vld [vmem:[%s3391_s6 + $0x70] sm:$0xff]  ;;  %v1923_v36 = vld [vmem:[%s3391_s6 + $0x68] sm:$0xff] }
 0x492   :  { %v1505_v63 = vadd.f32 %v1497_v9, %v3632_v53  ;;  %v1506_v23 = vadd.f32 %v1498_v50, %v3633_v54  ;;  %v1922_v9 = vld [vmem:[%s3391_s6 + $0x60] sm:$0xff] }
 0x494   :  { %v2011_v11 = vmul.f32 -1.442695, %v1505_v63  ;;  %v2012_v2 = vmul.f32 -1.442695, %v1506_v23 }
 0x496   :  { %2107 = vpow2.f32 %v2011_v11  ;;  %v1490_v13 = vpop.f32.mrf.mxu3  ;;  %v1470_v61 = vpop.f32.mrf.mxu2 }
 0x497   :  { %2109 = vpow2.f32 %v2012_v2  ;;  %v1500_v17 = vrot.slane %v1490_v13, 6  ;;  %v1499_v4 = vrot.slane %v1470_v61, 6  ;;  %v1921_v2 = vld [vmem:[%s3391_s6 + $0x58] sm:$0xff] }
 0x498   :  { %v1917_v61 = vld [vmem:[%s3391_s6 + $0x38] sm:$0xff] }
 0x499   :  { %v1508_v22 = vadd.f32 %v1500_v17, %v3634_v19  ;;  %v1507_v47 = vadd.f32 %v1499_v4, %v3635_v31 }
 0x49b   :  { %v2013_v24 = vmul.f32 -1.442695, %v1508_v22  ;;  %v1920_v22 = vld [vmem:[%s3391_s6 + $0x50] sm:$0xff] }
 0x49c   :  { %v2108_v39 = vpop.eup %2107 }
 0x49d   :  { %v2110_v37 = vpop.eup %2109  ;;  %v1512_v40 = vadd.f32 1.0, %v2108_v39  ;;  %2111 = vpow2.f32 %v2013_v24 }
 0x49e   :  { %v1531_v26 = vadd.f32 1.0, %v2110_v37  ;;  %v1919_v37 = vld [vmem:[%s3391_s6 + $0x48] sm:$0xff] }
 0x49f   :  { %2113 = vrcp.f32 %v1512_v40  ;;  %v1524_v25 = vand.u32 2147483648, %v1512_v40  ;;  %v1522_v48 = vand.u32 2147483647, %v1512_v40  ;;  %vm1518_vm14 = vweird.f32 %v1512_v40 }
 0x4a0   :  { %2115 = vrcp.f32 %v1531_v26  ;;  %v1543_v52 = vand.u32 2147483648, %v1531_v26  ;;  %v1541_v10 = vand.u32 2147483647, %v1531_v26  ;;  %vm1537_vm15 = vweird.f32 %v1531_v26 }
 0x4a1   :  { %v1525_v30 = vor.u32 1.1754944e-38, %v1524_v25  ;;  %vm1523_vm2 = vcmp.eq.f32.partialorder %v1522_v48, 8.507059e+37  ;;  %v1912_v48 = vld [vmem:[%s3391_s6 + $0x10] sm:$0xff] }
 0x4a2   :  { %v1544_v1 = vor.u32 1.1754944e-38, %v1543_v52  ;;  %vm1542_vm3 = vcmp.eq.f32.partialorder %v1541_v10, 8.507059e+37  ;;  %v1911_v10 = vld [vmem:[%s3391_s6 + $0x8] sm:$0xff] }
 0x4a3   :  { %v2112_v5 = vpop.eup %2111 }
 0x4a4   :  { %v1551_v55 = vadd.f32 1.0, %v2112_v5  ;;  %v1916_v5 = vld [vmem:[%s3391_s6 + $0x30] sm:$0xff] }
 0x4a5   :  { %v2114_v8 = vpop.eup %2113 }
 0x4a6   :  { %v2116_v28 = vpop.eup %2115  ;;  %v1514_v43 = vmul.f32 %v2114_v8, %v1512_v40  ;;  %2117 = vrcp.f32 %v1551_v55  ;;  %vm1519_vm12 = vweird.f32 %v2114_v8  ;;  %v1563_v45 = vand.u32 2147483648, %v1551_v55  ;;  %v1918_v40 = vld [vmem:[%s3391_s6 + $0x40] sm:$0xff] }
 0x4a7   :  { %v1533_v56 = vmul.f32 %v2116_v28, %v1531_v26  ;;  %2119 = vtanh.f32 %v1507_v47  ;;  %vm1538_vm13 = vweird.f32 %v2116_v28  ;;  %vm1520_vm0 = vmor %vm1518_vm14, %vm1519_vm12  ;;  %vm1557_vm5 = vweird.f32 %v1551_v55 }
 0x4a8   :  { %v1515_v57 = vsub.f32 1.0, %v1514_v43  ;;  %vm1539_vm1 = vmor %vm1537_vm15, %vm1538_vm13  ;;  %v1561_v35 = vand.u32 2147483647, %v1551_v55  ;;  %v1564_v46 = vor.u32 1.1754944e-38, %v1563_v45  ;;  %v1914_v43 = vld [vmem:[%s3391_s6 + $0x20] sm:$0xff] }
 0x4a9   :  { %v1534_v12 = vsub.f32 1.0, %v1533_v56 }
 0x4aa   :  { %v1516_v44 = vmul.f32 %v2114_v8, %v1515_v57  ;;  %vm1562_vm7 = vcmp.eq.f32.partialorder %v1561_v35, 8.507059e+37 }
 0x4ab   :  { %v1535_v20 = vmul.f32 %v2116_v28, %v1534_v12 }
 0x4ac   :  { %v2118_v27 = vpop.eup %2117  ;;  %v1517_v60 = vadd.f32 %v2114_v8, %v1516_v44  ;;  %v1913_v44 = vld [vmem:[%s3391_s6 + $0x18] sm:$0xff] }
 0x4ad   :  { %v1536_v34 = vadd.f32 %v2116_v28, %v1535_v20  ;;  %v1553_v15 = vmul.f32 %v2118_v27, %v1551_v55  ;;  %v2120_v49 = vpop.eup %2119  ;;  %vm1558_vm4 = vweird.f32 %v2118_v27 }
 0x4ae   :  { %v1521_v62 = vsel %vm1520_vm0, %v2114_v8, %v1517_v60  ;;  %vm1559_vm6 = vmor %vm1557_vm5, %vm1558_vm4  ;;  %v1915_v8 = vld [vmem:[%s3391_s6 + $0x28] sm:$0xff]  ;;  %vm1953_vm4 = vcmask 261120  }
 0x4af   :  { %v1526_v3 = vsel %vm1523_vm2, %v1525_v30, %v1521_v62  ;;  %v1540_v29 = vsel %vm1539_vm1, %v2116_v28, %v1536_v34  ;;  %v1554_v58 = vsub.f32 1.0, %v1553_v15  ;;  %v1910_v34 = vld [vmem:[%s3391_s6] sm:$0xff] }
 0x4b0   :  { %v1545_v33 = vsel %vm1542_vm3, %v1544_v1, %v1540_v29  ;;  %v1571_v21 = vmul.f32 %v2120_v49, %v1526_v3 }
 0x4b1   :  { %v1570_v38 = vmul.f32 %v1568_v32, %v1545_v33  ;;  %v1555_v6 = vmul.f32 %v2118_v27, %v1554_v58 }
 0x4b3   :  { %v3300_v42 = vadd.f32 %v1571_v21, %v1570_v38  ;;  %v1556_v59 = vadd.f32 %v2118_v27, %v1555_v6 }
 0x4b5   :  { %2121 = vtanh.f32 %v3300_v42  ;;  %v1560_v14 = vsel %vm1559_vm6, %v2118_v27, %v1556_v59 }
 0x4b6   :  { %v1565_v7 = vsel %vm1562_vm7, %v1564_v46, %v1560_v14  ;;  %v1734_v46 = vrot.slane %v3300_v42, 6 }
 0x4bb   :  { %v2122_v0 = vpop.eup %2121 }
 0x4bc   :  { %v1574_v51 = vmul.f32 %v2122_v0, %v1565_v7 }
 0x4be   :  { %1575 = vst [vmem:[#allocation2 + $0x8] sm:$0xc] %v1574_v51  ;;  %v1577_v16 = vrot.slane %v1574_v51, 2 }
 0x4c0   :  { %1595 = vmatmul.f32.vlgmr.msra.gmra.mxu0 %v1577_v16  ;;  %1615 = vmatmul.f32.vlgmr.msra.gmra.mxu1 %v1577_v16 }
 0x4c1   :  { %1635 = vmatmul.f32.vlgmr.msrb.gmra.mxu2 %v1577_v16  ;;  %1655 = vmatmul.f32.vlgmr.msrb.gmra.mxu3 %v1577_v16 }
 0x4c2   :  { %1930 = vmatpush.msra.mxu0 %v1925_v18 }
 0x4c4   :  { %1931 = vmatpush.msra.mxu0 %v1924_v41 }
 0x4c6   :  { %1932 = vmatpush.msra.mxu0 %v1923_v36 }
 0x4c8   :  { %1933 = vmatpush.msra.mxu0 %v1922_v9 }
 0x4ca   :  { %1934 = vmatpush.msra.mxu0 %v1921_v2 }
 0x4cc   :  { %1935 = vmatpush.msra.mxu0 %v1920_v22 }
 0x4ce   :  { %1936 = vmatpush.msra.mxu0 %v1919_v37 }
 0x4d0   :  { %1937 = vmatpush.msra.mxu0 %v1918_v40  ;;  %v1908_v40 = vld [vmem:[#allocation2] sm:$0xff] }
 0x4d2   :  { %1938 = vmatpush.msra.mxu0 %v1917_v61 }
 0x4d4   :  { %1939 = vmatpush.msra.mxu0 %v1916_v5 }
 0x4d6   :  { %1940 = vmatpush.msra.mxu0 %v1915_v8 }
 0x4d8   :  { %1941 = vmatpush.msra.mxu0 %v1914_v43  ;;  %v3364_v43 = vld [vmem:[%s3392_s7] ss:$0 sm:$0xff]  ;;  %s2335_s7 = smov [#allocation8]  }
 0x4d9   :  { %s1965_s2 = sshll.u32 %s2335_s7, 4  ;;  %s1966_s2 = int_to_ptr.vmem [resolvable:$true] %s1965_s2 }
 0x4da   :  { %1942 = vmatpush.msra.mxu0 %v1913_v44 }
 0x4dc   :  { %1943 = vmatpush.msra.mxu0 %v1912_v48 }
 0x4de   :  { %1944 = vmatpush.msra.mxu0 %v1911_v10 }
 0x4e0   :  { %1945 = vmatpush.msra.mxu0 %v1910_v34 }
 0x53d   :  { %v1596_v50 = vpop.f32.mrf.mxu0  ;;  %v1616_v63 = vpop.f32.mrf.mxu1 }
 0x53e   :  { %v1663_v23 = vrot.slane %v1596_v50, 4  ;;  %v1664_v11 = vrot.slane %v1616_v63, 4 }
 0x540   :  { %v1671_v13 = vadd.f32 %v1663_v23, %v3632_v53  ;;  %v1672_v17 = vadd.f32 %v1664_v11, %v3633_v54 }
 0x542   :  { %v2014_v24 = vmul.f32 -1.442695, %v1671_v13  ;;  %v2015_v39 = vmul.f32 -1.442695, %v1672_v17 }
 0x544   :  { %2123 = vpow2.f32 %v2014_v24  ;;  %v1656_v26 = vpop.f32.mrf.mxu3  ;;  %v1636_v25 = vpop.f32.mrf.mxu2 }
 0x545   :  { %2125 = vpow2.f32 %v2015_v39  ;;  %v1666_v4 = vrot.slane %v1656_v26, 4  ;;  %v1665_v52 = vrot.slane %v1636_v25, 4 }
 0x547   :  { %v1674_v55 = vadd.f32 %v1666_v4, %v3634_v19  ;;  %v1673_v30 = vadd.f32 %v1665_v52, %v3635_v31 }
 0x549   :  { %v2016_v47 = vmul.f32 -1.442695, %v1674_v55 }
 0x54a   :  { %v2124_v28 = vpop.eup %2123 }
 0x54b   :  { %v2126_v56 = vpop.eup %2125  ;;  %v1678_v57 = vadd.f32 1.0, %v2124_v28  ;;  %2127 = vpow2.f32 %v2016_v47 }
 0x54c   :  { %v1697_v12 = vadd.f32 1.0, %v2126_v56 }
 0x54d   :  { %2129 = vrcp.f32 %v1678_v57  ;;  %v1690_v3 = vand.u32 2147483648, %v1678_v57  ;;  %v1688_v33 = vand.u32 2147483647, %v1678_v57  ;;  %vm1684_vm10 = vweird.f32 %v1678_v57 }
 0x54e   :  { %2131 = vrcp.f32 %v1697_v12  ;;  %v1709_v29 = vand.u32 2147483648, %v1697_v12  ;;  %v1707_v38 = vand.u32 2147483647, %v1697_v12  ;;  %vm1703_vm11 = vweird.f32 %v1697_v12 }
 0x54f   :  { %v1691_v45 = vor.u32 1.1754944e-38, %v1690_v3  ;;  %vm1689_vm14 = vcmp.eq.f32.partialorder %v1688_v33, 8.507059e+37 }
 0x550   :  { %v1710_v0 = vor.u32 1.1754944e-38, %v1709_v29  ;;  %vm1708_vm15 = vcmp.eq.f32.partialorder %v1707_v38, 8.507059e+37 }
 0x551   :  { %v2128_v20 = vpop.eup %2127 }
 0x552   :  { %v1717_v27 = vadd.f32 1.0, %v2128_v20 }
 0x553   :  { %v2130_v60 = vpop.eup %2129 }
 0x554   :  { %v2132_v15 = vpop.eup %2131  ;;  %v1680_v32 = vmul.f32 %v2130_v60, %v1678_v57  ;;  %2133 = vrcp.f32 %v1717_v27  ;;  %vm1685_vm8 = vweird.f32 %v2130_v60  ;;  %v1729_v42 = vand.u32 2147483648, %v1717_v27 }
 0x555   :  { %v1699_v1 = vmul.f32 %v2132_v15, %v1697_v12  ;;  %2135 = vtanh.f32 %v1673_v30  ;;  %vm1704_vm9 = vweird.f32 %v2132_v15  ;;  %vm1686_vm12 = vmor %vm1684_vm10, %vm1685_vm8  ;;  %vm1723_vm1 = vweird.f32 %v1717_v27 }
 0x556   :  { %v1681_v62 = vsub.f32 1.0, %v1680_v32  ;;  %vm1705_vm13 = vmor %vm1703_vm11, %vm1704_vm9  ;;  %v1727_v2 = vand.u32 2147483647, %v1717_v27  ;;  %v1730_v17 = vor.u32 1.1754944e-38, %v1729_v42 }
 0x557   :  { %v1700_v49 = vsub.f32 1.0, %v1699_v1 }
 0x558   :  { %v1682_v58 = vmul.f32 %v2130_v60, %v1681_v62  ;;  %vm1728_vm3 = vcmp.eq.f32.partialorder %v1727_v2, 8.507059e+37 }
 0x559   :  { %v1701_v21 = vmul.f32 %v2132_v15, %v1700_v49 }
 0x55a   :  { %v2134_v6 = vpop.eup %2133  ;;  %v1683_v59 = vadd.f32 %v2130_v60, %v1682_v58 }
 0x55b   :  { %v1702_v35 = vadd.f32 %v2132_v15, %v1701_v21  ;;  %v1719_v14 = vmul.f32 %v2134_v6, %v1717_v27  ;;  %v2136_v51 = vpop.eup %2135  ;;  %vm1724_vm0 = vweird.f32 %v2134_v6 }
 0x55c   :  { %v1687_v7 = vsel %vm1686_vm12, %v2130_v60, %v1683_v59  ;;  %vm1725_vm2 = vmor %vm1723_vm1, %vm1724_vm0 }
 0x55d   :  { %v1692_v16 = vsel %vm1689_vm14, %v1691_v45, %v1687_v7  ;;  %v1706_v18 = vsel %vm1705_vm13, %v2132_v15, %v1702_v35  ;;  %v1720_v41 = vsub.f32 1.0, %v1719_v14 }
 0x55e   :  { %v1711_v36 = vsel %vm1708_vm15, %v1710_v0, %v1706_v18  ;;  %v1737_v9 = vmul.f32 %v2136_v51, %v1692_v16 }
 0x55f   :  { %v1736_v50 = vmul.f32 %v1734_v46, %v1711_v36  ;;  %v1721_v63 = vmul.f32 %v2134_v6, %v1720_v41 }
 0x561   :  { %v3356_v23 = vadd.f32 %v1737_v9, %v1736_v50  ;;  %v1722_v11 = vadd.f32 %v2134_v6, %v1721_v63 }
 0x563   :  { %2137 = vtanh.f32 %v3356_v23  ;;  %v1726_v13 = vsel %vm1725_vm2, %v2134_v6, %v1722_v11  ;;  %v1900_v14 = vrot.slane %v3356_v23, 6 }
 0x564   :  { %v1731_v24 = vsel %vm1728_vm3, %v1730_v17, %v1726_v13 }
 0x569   :  { %v2138_v22 = vpop.eup %2137 }
 0x56a   :  { %v1740_v39 = vmul.f32 %v2138_v22, %v1731_v24 }
 0x56c   :  { %1741 = vst [vmem:[#allocation2 + $0x8] sm:$0x30] %v1740_v39  ;;  %v1743_v37 = vrot.slane %v1740_v39, 4 }
 0x56e   :  { %1761 = vmatmul.f32.vlgmr.msrb.gmra.mxu0 %v1743_v37  ;;  %1781 = vmatmul.f32.vlgmr.msrb.gmra.mxu1 %v1743_v37 }
 0x56f   :  { %1801 = vmatmul.f32.vlgmr.msra.gmra.mxu2 %v1743_v37  ;;  %1821 = vmatmul.f32.vlgmr.msra.gmra.mxu3 %v1743_v37 }
 0x576   :  { %1946 = vmatmul.f32.vlgmr.msra.gmra.mxu0 %v1908_v40 }
 0x5eb   :  { %v1762_v26 = vpop.f32.mrf.mxu0  ;;  %v1782_v61 = vpop.f32.mrf.mxu1 }
 0x5ec   :  { %v1829_v4 = vrot.slane %v1762_v26, 2  ;;  %v1830_v5 = vrot.slane %v1782_v61, 2 }
 0x5ee   :  { %v1837_v55 = vadd.f32 %v1829_v4, %v3632_v53  ;;  %v1838_v8 = vadd.f32 %v1830_v5, %v3633_v54 }
 0x5f0   :  { %v2017_v47 = vmul.f32 -1.442695, %v1837_v55  ;;  %v2018_v28 = vmul.f32 -1.442695, %v1838_v8 }
 0x5f2   :  { %2139 = vpow2.f32 %v2017_v47  ;;  %v1822_v56 = vpop.f32.mrf.mxu3  ;;  %v1802_v10 = vpop.f32.mrf.mxu2 }
 0x5f3   :  { %2141 = vpow2.f32 %v2018_v28  ;;  %v1832_v57 = vrot.slane %v1822_v56, 2  ;;  %v1947_v12 = vpop.f32.mrf.mxu0  ;;  %v1831_v27 = vrot.slane %v1802_v10, 2 }
 0x5f4   :  { %v1948_v25 = vadd.f32 %v3364_v43, %v1947_v12 }
 0x5f5   :  { %v1840_v52 = vadd.f32 %v1832_v57, %v3634_v19  ;;  %v1839_v19 = vadd.f32 %v1831_v27, %v3635_v31 }
 0x5f6   :  { %1954 = vst.msk [vmem:[%s3393_s8] sm:$0xff] %vm1953_vm4, %v1948_v25 }
 0x5f7   :  { %v2019_v53 = vmul.f32 -1.442695, %v1840_v52 }
 0x5f8   :  { %v2140_v54 = vpop.eup %2139 }
 0x5f9   :  { %v2142_v44 = vpop.eup %2141  ;;  %v1844_v48 = vadd.f32 1.0, %v2140_v54  ;;  %2143 = vpow2.f32 %v2019_v53 }
 0x5fa   :  { %v1863_v20 = vadd.f32 1.0, %v2142_v44 }
 0x5fb   :  { %2145 = vrcp.f32 %v1844_v48  ;;  %v1856_v3 = vand.u32 2147483648, %v1844_v48  ;;  %v1854_v33 = vand.u32 2147483647, %v1844_v48  ;;  %vm1850_vm7 = vweird.f32 %v1844_v48 }
 0x5fc   :  { %2147 = vrcp.f32 %v1863_v20  ;;  %v1875_v29 = vand.u32 2147483648, %v1863_v20  ;;  %v1873_v38 = vand.u32 2147483647, %v1863_v20  ;;  %vm1869_vm8 = vweird.f32 %v1863_v20 }
 0x5fd   :  { %v1857_v31 = vor.u32 1.1754944e-38, %v1856_v3  ;;  %vm1855_vm11 = vcmp.eq.f32.partialorder %v1854_v33, 8.507059e+37 }
 0x5fe   :  { %v1876_v46 = vor.u32 1.1754944e-38, %v1875_v29  ;;  %vm1874_vm12 = vcmp.eq.f32.partialorder %v1873_v38, 8.507059e+37 }
 0x5ff   :  { %v2144_v60 = vpop.eup %2143 }
 0x600   :  { %v1883_v30 = vadd.f32 1.0, %v2144_v60 }
 0x601   :  { %v2146_v34 = vpop.eup %2145 }
 0x602   :  { %v2148_v15 = vpop.eup %2147  ;;  %v1846_v32 = vmul.f32 %v2146_v34, %v1844_v48  ;;  %2149 = vrcp.f32 %v1883_v30  ;;  %vm1851_vm5 = vweird.f32 %v2146_v34  ;;  %v1895_v42 = vand.u32 2147483648, %v1883_v30 }
 0x603   :  { %v1865_v1 = vmul.f32 %v2148_v15, %v1863_v20  ;;  %2151 = vtanh.f32 %v1839_v19  ;;  %vm1870_vm6 = vweird.f32 %v2148_v15  ;;  %vm1852_vm9 = vmor %vm1850_vm7, %vm1851_vm5  ;;  %vm1889_vm14 = vweird.f32 %v1883_v30 }
 0x604   :  { %v1847_v62 = vsub.f32 1.0, %v1846_v32  ;;  %vm1871_vm10 = vmor %vm1869_vm8, %vm1870_vm6  ;;  %v1893_v23 = vand.u32 2147483647, %v1883_v30  ;;  %v1896_v13 = vor.u32 1.1754944e-38, %v1895_v42 }
 0x605   :  { %v1866_v49 = vsub.f32 1.0, %v1865_v1 }
 0x606   :  { %v1848_v58 = vmul.f32 %v2146_v34, %v1847_v62  ;;  %vm1894_vm0 = vcmp.eq.f32.partialorder %v1893_v23, 8.507059e+37 }
 0x607   :  { %v1867_v21 = vmul.f32 %v2148_v15, %v1866_v49 }
 0x608   :  { %v2150_v6 = vpop.eup %2149  ;;  %v1849_v59 = vadd.f32 %v2146_v34, %v1848_v58 }
 0x609   :  { %v1868_v45 = vadd.f32 %v2148_v15, %v1867_v21  ;;  %v1885_v35 = vmul.f32 %v2150_v6, %v1883_v30  ;;  %v2152_v7 = vpop.eup %2151  ;;  %vm1890_vm13 = vweird.f32 %v2150_v6 }
 0x60a   :  { %v1853_v0 = vsel %vm1852_vm9, %v2146_v34, %v1849_v59  ;;  %vm1891_vm15 = vmor %vm1889_vm14, %vm1890_vm13 }
 0x60b   :  { %v1858_v51 = vsel %vm1855_vm11, %v1857_v31, %v1853_v0  ;;  %v1872_v16 = vsel %vm1871_vm10, %v2148_v15, %v1868_v45  ;;  %v1886_v18 = vsub.f32 1.0, %v1885_v35 }
 0x60c   :  { %v1877_v41 = vsel %vm1874_vm12, %v1876_v46, %v1872_v16  ;;  %v1903_v36 = vmul.f32 %v2152_v7, %v1858_v51 }
 0x60d   :  { %v1902_v9 = vmul.f32 %v1900_v14, %v1877_v41  ;;  %v1887_v50 = vmul.f32 %v2150_v6, %v1886_v18 }
 0x60f   :  { %v1904_v63 = vadd.f32 %v1903_v36, %v1902_v9  ;;  %v1888_v11 = vadd.f32 %v2150_v6, %v1887_v50 }
 0x611   :  { %2153 = vtanh.f32 %v1904_v63  ;;  %1957 = vst [vmem:[#allocation9 - $0x6] sm:$0xc0] %v1904_v63  ;;  %v1892_v2 = vsel %vm1891_vm15, %v2150_v6, %v1888_v11 }
 0x612   :  { %v1897_v22 = vsel %vm1894_vm0, %v1896_v13, %v1892_v2  ;;  %1981 = dma.vmem_to_hbm [thread:$0]  %s1977_s29, 32, %s1979_s12, [#allocation10]  }
 0x617   :  { %v2154_v17 = vpop.eup %2153 }
 0x618   :  { %v1906_v24 = vmul.f32 %v2154_v17, %v1897_v22 }
 0x61a   :  { %1907 = vst [vmem:[#allocation2 + $0x8] sm:$0xc0] %v1906_v24 }
 0x61b   :  { %1956 = vst [vmem:[#allocation8 - $0x6] sm:$0xc0] %v1906_v24 }
 0x61c   :  { %1970 = dma.vmem_to_hbm [thread:$0]  %s1966_s2, 32, %s1968_s27, [#allocation5]  }
 0x621   :  { %v1909_v39 = vld [vmem:[#allocation2 + $0x8] sm:$0xff] }
 0x622   :  { %1949 = vmatmul.f32.gmra.mxu0 %v1909_v39 }
 0x69f   :  { %v1950_v37 = vpop.f32.mrf.mxu0 }
 0x6a0   :  { %v1951_v40 = vadd.f32 %v3364_v43, %v1950_v37 }
 0x6a2   :  { %1955 = vst.msk [vmem:[%s3393_s8 + $0x8] sm:$0xff] %vm1953_vm4, %v1951_v40 }
 0x6a3   :  { %2327 = dma.done.wait [#allocation5], 32  }
 0x6a4   :  { %2328 = vsyncadd [#allocation5], 4294967264 }
 0x6a5   :  { %2329 = dma.done.wait [#allocation10], 32  }
 0x6a6   :  { %2330 = vsyncadd [#allocation10], 4294967264 }
 0x6a7   :  { %1992 = vsyncpa [#allocation4], 1 }
 0x6a8   :  { %1993 = vsyncpa [#allocation7], 1 }
 0x6a9   :  { %1994 = vsyncpa [#allocation5], 1 }
 0x6aa   :  { %1995 = vsyncpa [#allocation10], 1 }

</bundles_post_ra>
